<compile_context>
chip_gen: v6e
topology: v6e:2x2x1
jax: 0.10.0
libtpu: 0.0.40
codegen_flags: <defaults>
</compile_context>

<pallas_src>
import math

import jax
import jax.numpy as jnp
from jax import lax
from jax.experimental import pallas as pl
from jax.experimental.pallas import tpu as pltpu

_VMEM = pltpu.MemorySpace.VMEM
_NT = (((1,), (1,)), ((), ()))   # A @ B^T  (rhs-transposed contraction)


def _round_up(x, m):
    return ((x + m - 1) // m) * m


def _clamp_vmem(nbytes):
    # floor at 32 MiB (safe everywhere), cap at 64 MiB (v7x physical VMEM/TC)
    return int(min(max(nbytes + (8 << 20), 32 << 20), 64 << 20))


# ----------------------------------------------------------------------------
# Kernel 1: fused node projections (4 small MXU matmuls, whole arrays in VMEM)
# ----------------------------------------------------------------------------
def _proj_kernel(xo_ref, wkv_ref, bkv_ref, wop_ref, bop_ref,
                 xr_ref, wq_ref, bq_ref, ws_ref, bs_ref,
                 ordkv_ref, ordp_ref, ridq_ref, skip_ref):
    xo = xo_ref[...]
    xr = xr_ref[...]
    ordkv_ref[...] = (jnp.dot(xo, wkv_ref[...], preferred_element_type=jnp.float32)
                      + bkv_ref[...])
    ordp_ref[...] = (jnp.dot(xo, wop_ref[...], preferred_element_type=jnp.float32)
                     + bop_ref[...])
    ridq_ref[...] = (jnp.dot(xr, wq_ref[...], preferred_element_type=jnp.float32)
                     + bq_ref[...])
    skip_ref[...] = (jnp.dot(xr, ws_ref[...], preferred_element_type=jnp.float32)
                     + bs_ref[...])


# ----------------------------------------------------------------------------
# Kernel 2: TransformerConv -- single-pass online segment softmax over edges.
# Grid = (n_edge_tiles,); per-rider state (m, l, acc) lives in VMEM scratch.
# ----------------------------------------------------------------------------
def _make_conv_kernel(num_edges, hidden):
    h = hidden

    def kernel(oidx_ref, ridxc_ref, ridxr_ref, eattr_ref, ordkv_ref, ridq_ref,
               skip_ref, wedge_ref, out_ref, m_scr, l_scr, acc_scr):
        et = pl.program_id(0)
        n_et = pl.num_programs(0)

        tile_e = oidx_ref.shape[0]
        no_pad = ordkv_ref.shape[0]
        nr_pad = ridq_ref.shape[0]

        @pl.when(et == 0)
        def _init():
            m_scr[...] = jnp.full(m_scr.shape, -1e30, jnp.float32)
            l_scr[...] = jnp.zeros(l_scr.shape, jnp.float32)
            acc_scr[...] = jnp.zeros(acc_scr.shape, jnp.float32)

        oidx = oidx_ref[...]                                   # [TILE_E, 1] int32
        ridx_c = ridxc_ref[...]                                # [TILE_E, 1] int32
        ridx_r = ridxr_ref[...]                                # [1, TILE_E] int32

        # validity of (possibly padded) edges in this tile, lane-oriented
        cols = lax.broadcasted_iota(jnp.int32, (1, tile_e), 1)
        valid_row = (et * tile_e + cols) < num_edges           # [1, TILE_E] bool
        validf_row = valid_row.astype(jnp.float32)

        # in-kernel one-hot gather matrices (never materialized in HBM)
        onehot_o = (lax.broadcasted_iota(jnp.int32, (tile_e, no_pad), 1)
                    == oidx).astype(jnp.float32)               # [TILE_E, No]
        onehot_r = (lax.broadcasted_iota(jnp.int32, (tile_e, nr_pad), 1)
                    == ridx_c).astype(jnp.float32)             # [TILE_E, Nr]
        onehot_rtb = (lax.broadcasted_iota(jnp.int32, (nr_pad, tile_e), 0)
                      == ridx_r)                               # [Nr, TILE_E] bool

        eproj = jnp.dot(eattr_ref[...], wedge_ref[...],
                        preferred_element_type=jnp.float32)    # [TILE_E, H]
        # fused key|value gather: one MXU call instead of two
        kv_e = jnp.dot(onehot_o, ordkv_ref[...],
                       preferred_element_type=jnp.float32)     # [TILE_E, 2H]
        key_e = kv_e[:, 0:h] + eproj
        val_e = kv_e[:, h:2 * h] + eproj
        qry_e = jnp.dot(onehot_r, ridq_ref[...],               # query pre-scaled
                        preferred_element_type=jnp.float32)    # [TILE_E, H]

        # lane-dense per-edge attention logits (1/sqrt(H) folded into qry)
        ones_h = jnp.full((1, h), 1.0, jnp.float32)
        alpha_row = lax.dot_general(ones_h, qry_e * key_e, _NT,
                                    preferred_element_type=jnp.float32)  # [1,TILE_E]
        alpha_row = jnp.where(valid_row, alpha_row, -1e30)

        # ---- online-softmax running-state update (single pass over edges) ----
        masked_t = jnp.where(onehot_rtb, alpha_row, -1e30)     # [Nr, TILE_E]
        tile_max = jnp.max(masked_t, axis=1, keepdims=True)    # [Nr, 1]
        m_old = m_scr[...]
        m_new = jnp.maximum(m_old, tile_max)
        rescale = jnp.exp(m_old - m_new)                       # [Nr, 1]
        m_scr[...] = m_new

        # gather the (updated) per-rider max back to edges (select + reduce)
        max_e_row = jnp.sum(jnp.where(onehot_rtb, m_new, 0.0),
                            axis=0, keepdims=True)             # [1, TILE_E]
        ex_row = jnp.exp(alpha_row - max_e_row) * validf_row   # [1, TILE_E]

        # ex-weighted one-hot: drives both the denominator and the scatter-add
        exmat_t = jnp.where(onehot_rtb, ex_row, 0.0)           # [Nr, TILE_E]
        l_scr[...] = (l_scr[...] * rescale
                      + jnp.sum(exmat_t, axis=1, keepdims=True))
        acc_scr[...] = (acc_scr[...] * rescale
                        + jnp.dot(exmat_t, val_e,
                                  preferred_element_type=jnp.float32))  # [Nr, H]

        @pl.when(et == n_et - 1)
        def _finalize():
            inv_l = pl.reciprocal(jnp.maximum(l_scr[...], 1e-30), approx=True)
            rider = acc_scr[...] * inv_l + skip_ref[...]       # + skip connection
            nsq = jnp.sum(rider * rider, axis=1, keepdims=True)
            out_ref[...] = rider * lax.rsqrt(jnp.maximum(nsq, 1e-24))

    return kernel


# ----------------------------------------------------------------------------
# Kernel 3: edge scoring (dot + residual MLP), tiled over edges, lane-dense out
# ----------------------------------------------------------------------------
def _edge_score_kernel(oidx_ref, ridx_ref, ordp_ref, ridn_ref,
                       w1o_ref, w1r_ref, b1_ref, w2r_ref, b2_ref, out_ref):
    tile_e = oidx_ref.shape[0]
    no_pad = ordp_ref.shape[0]
    nr_pad = ridn_ref.shape[0]
    h = ordp_ref.shape[1]

    onehot_o = (lax.broadcasted_iota(jnp.int32, (tile_e, no_pad), 1)
                == oidx_ref[...]).astype(jnp.float32)
    onehot_r = (lax.broadcasted_iota(jnp.int32, (tile_e, nr_pad), 1)
                == ridx_ref[...]).astype(jnp.float32)

    ord_e = jnp.dot(onehot_o, ordp_ref[...],
                    preferred_element_type=jnp.float32)        # [TILE_E, H]
    rid_e = jnp.dot(onehot_r, ridn_ref[...],
                    preferred_element_type=jnp.float32)        # [TILE_E, H]

    ones_row = jnp.full((1, h), 1.0 / math.sqrt(float(h)), jnp.float32)
    dot_row = lax.dot_general(ones_row, ord_e * rid_e, _NT,
                              preferred_element_type=jnp.float32)   # [1, TILE_E]

    # omega @ W1_omega + b1 is already folded into b1_ref on the host
    hmid = jnp.maximum(
        jnp.dot(ord_e, w1o_ref[...], preferred_element_type=jnp.float32)
        + jnp.dot(rid_e, w1r_ref[...], preferred_element_type=jnp.float32)
        + b1_ref[...],
        0.0)                                                    # [TILE_E, 128]
    res_row = lax.dot_general(w2r_ref[...], hmid, _NT,
                              preferred_element_type=jnp.float32)   # [1, TILE_E]

    out_ref[...] = jnp.clip(dot_row + res_row + b2_ref[...], -10.0, 10.0)


# ----------------------------------------------------------------------------
# Parameter init (deterministic, PyTorch-Linear-style uniform)
# ----------------------------------------------------------------------------
def _init_linear(key, in_dim, out_dim, bias=True):
    kw, kb = jax.random.split(key)
    scale = 1.0 / math.sqrt(in_dim)
    w = jax.random.uniform(kw, (out_dim, in_dim), jnp.float32, -scale, scale)
    if bias:
        b = jax.random.uniform(kb, (out_dim,), jnp.float32, -scale, scale)
    else:
        b = jnp.zeros((out_dim,), jnp.float32)
    return w.T, b  # stored pre-transposed [in, out]


def init_params(key, order_in, rider_in, edge_dim, hidden, omega_dim):
    ks = jax.random.split(key, 8)
    p = {}
    p["lin_key_w"], p["lin_key_b"] = _init_linear(ks[0], order_in, hidden)
    p["lin_query_w"], p["lin_query_b"] = _init_linear(ks[1], rider_in, hidden)
    p["lin_value_w"], p["lin_value_b"] = _init_linear(ks[2], order_in, hidden)
    p["lin_edge_w"], p["lin_edge_b"] = _init_linear(ks[3], edge_dim, hidden, bias=False)
    p["lin_skip_w"], p["lin_skip_b"] = _init_linear(ks[4], rider_in, hidden)
    p["order_proj_w"], p["order_proj_b"] = _init_linear(ks[5], order_in, hidden)
    p["res_w1"], p["res_b1"] = _init_linear(ks[6], 2 * hidden + omega_dim, 128)
    p["res_w2"], p["res_b2"] = _init_linear(ks[7], 128, 1)
    return p


# ----------------------------------------------------------------------------
# Forward pass (3 fused Pallas kernels) and a pure-JAX reference
# ----------------------------------------------------------------------------
def order_courier_forward(params, x_order, x_rider, edge_index, edge_attr,
                          omega_encoded):
    f32 = jnp.float32
    order_idx = edge_index[0].astype(jnp.int32)
    rider_idx = edge_index[1].astype(jnp.int32)

    n_ord, order_in = x_order.shape
    n_rid, rider_in = x_rider.shape
    n_edges = order_idx.shape[0]
    edge_dim = edge_attr.shape[1]
    hidden = params["lin_key_w"].shape[1]
    res_hid = params["res_w1"].shape[1]
    inv_sqrt_h = 1.0 / math.sqrt(float(hidden))

    # ---- padded sizes (lane / sublane friendly) ----
    no_pad = _round_up(max(n_ord, 8), 128)
    nr_pad = _round_up(max(n_rid, 8), 128)
    tile_e = min(512, _round_up(n_edges, 128))
    e_pad = _round_up(n_edges, tile_e)
    n_et = e_pad // tile_e
    ed_pad = _round_up(edge_dim, 8)

    # ---- fused / reshaped parameters (tiny host-side XLA ops) ----
    w_kv = jnp.concatenate([params["lin_key_w"], params["lin_value_w"]], axis=1)
    b_kv = jnp.concatenate(
        [params["lin_key_b"], params["lin_value_b"]]).reshape(1, 2 * hidden)
    w_op = params["order_proj_w"]
    b_op = params["order_proj_b"].reshape(1, hidden)
    w_q = params["lin_query_w"] * inv_sqrt_h          # 1/sqrt(H) folded into query
    b_q = (params["lin_query_b"] * inv_sqrt_h).reshape(1, hidden)
    w_s = params["lin_skip_w"]
    b_s = params["lin_skip_b"].reshape(1, hidden)
    w_edge = jnp.zeros((ed_pad, hidden), f32).at[:edge_dim].set(params["lin_edge_w"])

    w1 = params["res_w1"]                              # [2H + omega, 128]
    w1_o = w1[:hidden]
    w1_r = w1[hidden:2 * hidden]
    omega_row = omega_encoded.reshape(1, -1).astype(f32)
    # fold the edge-independent omega term into an effective bias (host-side)
    b1_eff = omega_row @ w1[2 * hidden:] + params["res_b1"].reshape(1, res_hid)
    w2_row = params["res_w2"].reshape(1, res_hid)
    b2 = params["res_b2"].reshape(1, 1)

    # ---- padded inputs ----
    xo = jnp.zeros((no_pad, order_in), f32).at[:n_ord].set(x_order)
    xr = jnp.zeros((nr_pad, rider_in), f32).at[:n_rid].set(x_rider)
    ea = jnp.zeros((e_pad, ed_pad), f32).at[:n_edges, :edge_dim].set(edge_attr)
    oidx_col = jnp.zeros((e_pad, 1), jnp.int32).at[:n_edges, 0].set(order_idx)
    ridx_col = jnp.zeros((e_pad, 1), jnp.int32).at[:n_edges, 0].set(rider_idx)
    ridx_row = jnp.zeros((1, e_pad), jnp.int32).at[0, :n_edges].set(rider_idx)

    # ---- K1: fused node projections ----
    ord_kv, ord_prj, rid_q, rid_skip = pl.pallas_call(
        _proj_kernel,
        out_shape=(jax.ShapeDtypeStruct((no_pad, 2 * hidden), f32),
                   jax.ShapeDtypeStruct((no_pad, hidden), f32),
                   jax.ShapeDtypeStruct((nr_pad, hidden), f32),
                   jax.ShapeDtypeStruct((nr_pad, hidden), f32)),
        in_specs=[pl.BlockSpec(memory_space=_VMEM)] * 10,
        out_specs=tuple(pl.BlockSpec(memory_space=_VMEM) for _ in range(4)),
    )(xo, w_kv, b_kv, w_op, b_op, xr, w_q, b_q, w_s, b_s)

    # ---- K2: TransformerConv (single-pass online segment softmax) ----
    k2_est = 4 * (2 * (tile_e * (3 + ed_pad)
                       + no_pad * 2 * hidden + 2 * nr_pad * hidden
                       + ed_pad * hidden + nr_pad * hidden)
                  + 3 * nr_pad * 128
                  + tile_e * (no_pad + 4 * nr_pad + 7 * hidden))
    conv_kernel = _make_conv_kernel(n_edges, hidden)
    rider_norm = pl.pallas_call(
        conv_kernel,
        out_shape=jax.ShapeDtypeStruct((nr_pad, hidden), f32),
        grid_spec=pltpu.PrefetchScalarGridSpec(
            num_scalar_prefetch=0,
            grid=(n_et,),
            in_specs=[
                pl.BlockSpec((tile_e, 1), lambda e: (e, 0)),         # order idx (col)
                pl.BlockSpec((tile_e, 1), lambda e: (e, 0)),         # rider idx (col)
                pl.BlockSpec((1, tile_e), lambda e: (0, e)),         # rider idx (row)
                pl.BlockSpec((tile_e, ed_pad), lambda e: (e, 0)),    # edge_attr
                pl.BlockSpec((no_pad, 2 * hidden), lambda e: (0, 0)),  # key|value
                pl.BlockSpec((nr_pad, hidden), lambda e: (0, 0)),      # query
                pl.BlockSpec((nr_pad, hidden), lambda e: (0, 0)),      # skip
                pl.BlockSpec((ed_pad, hidden), lambda e: (0, 0)),      # edge weight
            ],
            out_specs=pl.BlockSpec((nr_pad, hidden), lambda e: (0, 0)),
            scratch_shapes=[
                pltpu.VMEM((nr_pad, 1), f32),       # running per-rider max
                pltpu.VMEM((nr_pad, 1), f32),       # running denominator
                pltpu.VMEM((nr_pad, hidden), f32),  # running accumulator
            ],
        ),
        compiler_params=pltpu.CompilerParams(
            dimension_semantics=("arbitrary",),
            vmem_limit_bytes=_clamp_vmem(k2_est),
        ),
    )(oidx_col, ridx_col, ridx_row, ea, ord_kv, rid_q, rid_skip, w_edge)

    # ---- K3: edge scores (lane-dense [1, E_pad] output) ----
    k3_est = 4 * (2 * (2 * tile_e + no_pad * hidden + nr_pad * hidden
                       + 2 * hidden * res_hid + 2 * res_hid + 1 + tile_e)
                  + tile_e * (no_pad + nr_pad + 3 * hidden + res_hid))
    scores_row = pl.pallas_call(
        _edge_score_kernel,
        out_shape=jax.ShapeDtypeStruct((1, e_pad), f32),
        grid_spec=pltpu.PrefetchScalarGridSpec(
            num_scalar_prefetch=0,
            grid=(n_et,),
            in_specs=[
                pl.BlockSpec((tile_e, 1), lambda e: (e, 0)),
                pl.BlockSpec((tile_e, 1), lambda e: (e, 0)),
                pl.BlockSpec((no_pad, hidden), lambda e: (0, 0)),
                pl.BlockSpec((nr_pad, hidden), lambda e: (0, 0)),
                pl.BlockSpec((hidden, res_hid), lambda e: (0, 0)),
                pl.BlockSpec((hidden, res_hid), lambda e: (0, 0)),
                pl.BlockSpec((1, res_hid), lambda e: (0, 0)),
                pl.BlockSpec((1, res_hid), lambda e: (0, 0)),
                pl.BlockSpec((1, 1), lambda e: (0, 0)),
            ],
            out_specs=pl.BlockSpec((1, tile_e), lambda e: (0, e)),
        ),
        compiler_params=pltpu.CompilerParams(
            dimension_semantics=("parallel",),
            vmem_limit_bytes=_clamp_vmem(k3_est),
        ),
    )(oidx_col, ridx_col, ord_prj, rider_norm, w1_o, w1_r, b1_eff, w2_row, b2)

    return scores_row[0, :n_edges]


def reference_forward(params, x_order, x_rider, edge_index, edge_attr, omega):
    order_idx, rider_idx = edge_index[0], edge_index[1]
    num_riders = x_rider.shape[0]
    num_edges = order_idx.shape[0]
    hidden = params["order_proj_w"].shape[1]

    key = x_order @ params["lin_key_w"] + params["lin_key_b"]
    val = x_order @ params["lin_value_w"] + params["lin_value_b"]
    qry = x_rider @ params["lin_query_w"] + params["lin_query_b"]
    skip = x_rider @ params["lin_skip_w"] + params["lin_skip_b"]
    el = edge_attr @ params["lin_edge_w"] + params["lin_edge_b"]

    ke = key[order_idx] + el
    alpha = jnp.sum(qry[rider_idx] * ke, axis=1) / math.sqrt(hidden)
    max_r = jax.ops.segment_max(alpha, rider_idx, num_segments=num_riders)
    ex = jnp.exp(alpha - max_r[rider_idx])
    den = jax.ops.segment_sum(ex, rider_idx, num_segments=num_riders)
    attn = ex / den[rider_idx]
    msg = (val[order_idx] + el) * attn[:, None]
    rider = jax.ops.segment_sum(msg, rider_idx, num_segments=num_riders) + skip
    rider = rider / jnp.maximum(jnp.linalg.norm(rider, axis=1, keepdims=True), 1e-12)

    oproj = x_order @ params["order_proj_w"] + params["order_proj_b"]
    oe = oproj[order_idx]
    re = rider[rider_idx]
    dot = jnp.sum(oe * re, axis=1) / math.sqrt(hidden)
    omega_e = jnp.broadcast_to(omega.reshape(1, -1), (num_edges, omega.shape[-1]))
    xcat = jnp.concatenate([oe, re, omega_e], axis=-1)
    h = jnp.maximum(xcat @ params["res_w1"] + params["res_b1"], 0.0)
    res = (h @ params["res_w2"] + params["res_b2"])[:, 0]
    return jnp.clip(dot + res, -10.0, 10.0)


# ----------------------------------------------------------------------------
if __name__ == "__main__":
    ORDER_IN, RIDER_IN, EDGE_DIM, HIDDEN, OMEGA_DIM = 16, 8, 4, 32, 8
    N_ORDERS, N_RIDERS = 6, 3
    NUM_EDGES = N_ORDERS * N_RIDERS  # complete bipartite order -> rider graph

    root = jax.random.PRNGKey(0)
    k_params, k_xo, k_xr, k_ea, k_om = jax.random.split(root, 5)

    params = init_params(k_params, ORDER_IN, RIDER_IN, EDGE_DIM, HIDDEN, OMEGA_DIM)

    x_order = jax.random.normal(k_xo, (N_ORDERS, ORDER_IN), jnp.float32)
    x_rider = jax.random.normal(k_xr, (N_RIDERS, RIDER_IN), jnp.float32)
    order_idx = jnp.repeat(jnp.arange(N_ORDERS, dtype=jnp.int32), N_RIDERS)
    rider_idx = jnp.tile(jnp.arange(N_RIDERS, dtype=jnp.int32), N_ORDERS)
    edge_index = jnp.stack([order_idx, rider_idx])                 # [2, E]
    edge_attr = jax.random.normal(k_ea, (NUM_EDGES, EDGE_DIM), jnp.float32)
    omega_encoded = jax.random.normal(k_om, (OMEGA_DIM,), jnp.float32)

    fwd = jax.jit(order_courier_forward)
    edge_scores = fwd(params, x_order, x_rider, edge_index, edge_attr,
                      omega_encoded)
    edge_scores = jax.block_until_ready(edge_scores)

    ref = reference_forward(params, x_order, x_rider, edge_index, edge_attr,
                            omega_encoded)
    assert edge_scores.shape == (NUM_EDGES,)
    max_err = float(jnp.max(jnp.abs(edge_scores - ref)))
    assert jnp.allclose(edge_scores, ref, atol=5e-3, rtol=5e-3), max_err

    print("KERNEL_OK")
</pallas_src>

<mosaic_0001>
module attributes {stable_mosaic.version = 11 : i64} {
  func.func @_edge_score_kernel(%arg0: i32, %arg1: memref<128x1xi32, #tpu.memory_space<vmem>>, %arg2: memref<128x1xi32, #tpu.memory_space<vmem>>, %arg3: memref<128x32xf32, #tpu.memory_space<vmem>>, %arg4: memref<128x32xf32, #tpu.memory_space<vmem>>, %arg5: memref<32x128xf32, #tpu.memory_space<vmem>>, %arg6: memref<32x128xf32, #tpu.memory_space<vmem>>, %arg7: memref<1x128xf32, #tpu.memory_space<vmem>>, %arg8: memref<1x128xf32, #tpu.memory_space<vmem>>, %arg9: memref<1x1xf32, #tpu.memory_space<vmem>>, %arg10: memref<1x128xf32, #tpu.memory_space<vmem>>) attributes {dimension_semantics = [#tpu.dimension_semantics<parallel>], iteration_bounds = array<i64: 1>, scalar_prefetch = 0 : i64, scratch_operands = 0 : i64, tpu.core_type = #tpu.core_type<tc>, window_params = [{transform_indices = @transform_0, window_bounds = array<i64: 128, 1>}, {transform_indices = @transform_1, window_bounds = array<i64: 128, 1>}, {pipeline_mode = #tpu.pipeline_mode<synchronous>, transform_indices = @transform_2, window_bounds = array<i64: 128, 32>}, {pipeline_mode = #tpu.pipeline_mode<synchronous>, transform_indices = @transform_3, window_bounds = array<i64: 128, 32>}, {pipeline_mode = #tpu.pipeline_mode<synchronous>, transform_indices = @transform_4, window_bounds = array<i64: 32, 128>}, {pipeline_mode = #tpu.pipeline_mode<synchronous>, transform_indices = @transform_5, window_bounds = array<i64: 32, 128>}, {pipeline_mode = #tpu.pipeline_mode<synchronous>, transform_indices = @transform_6, window_bounds = array<i64: 1, 128>}, {pipeline_mode = #tpu.pipeline_mode<synchronous>, transform_indices = @transform_7, window_bounds = array<i64: 1, 128>}, {pipeline_mode = #tpu.pipeline_mode<synchronous>, transform_indices = @transform_8, window_bounds = array<i64: 1, 1>}, {transform_indices = @transform_9, window_bounds = array<i64: 1, 128>}]} {
    %0 = tpu.iota {dimensions = array<i32: 1>} : vector<128x128xi32>
    %c0 = arith.constant 0 : index
    %c0_0 = arith.constant 0 : index
    %1 = vector.load %arg1[%c0, %c0_0] : memref<128x1xi32, #tpu.memory_space<vmem>>, vector<128x1xi32>
    %2 = vector.broadcast %1 : vector<128x1xi32> to vector<128x128xi32>
    %3 = arith.cmpi eq, %0, %2 : vector<128x128xi32>
    %4 = arith.extui %3 : vector<128x128xi1> to vector<128x128xi32>
    %5 = arith.sitofp %4 : vector<128x128xi32> to vector<128x128xf32>
    %6 = tpu.iota {dimensions = array<i32: 1>} : vector<128x128xi32>
    %c0_1 = arith.constant 0 : index
    %c0_2 = arith.constant 0 : index
    %7 = vector.load %arg2[%c0_1, %c0_2] : memref<128x1xi32, #tpu.memory_space<vmem>>, vector<128x1xi32>
    %8 = vector.broadcast %7 : vector<128x1xi32> to vector<128x128xi32>
    %9 = arith.cmpi eq, %6, %8 : vector<128x128xi32>
    %10 = arith.extui %9 : vector<128x128xi1> to vector<128x128xi32>
    %11 = arith.sitofp %10 : vector<128x128xi32> to vector<128x128xf32>
    %c0_3 = arith.constant 0 : index
    %c0_4 = arith.constant 0 : index
    %12 = vector.load %arg3[%c0_3, %c0_4] : memref<128x32xf32, #tpu.memory_space<vmem>>, vector<128x32xf32>
    %cst = arith.constant dense<0.000000e+00> : vector<128x32xf32>
    %13 = tpu.matmul %5, %12, %cst {dimension_numbers = #tpu.dot_dimension_numbers<[1], [0], [0], [1], [0, 0, 1, 1], [], []>} : vector<128x128xf32>, vector<128x32xf32>, vector<128x32xf32> -> vector<128x32xf32>
    %c0_5 = arith.constant 0 : index
    %c0_6 = arith.constant 0 : index
    %14 = vector.load %arg4[%c0_5, %c0_6] : memref<128x32xf32, #tpu.memory_space<vmem>>, vector<128x32xf32>
    %cst_7 = arith.constant dense<0.000000e+00> : vector<128x32xf32>
    %15 = tpu.matmul %11, %14, %cst_7 {dimension_numbers = #tpu.dot_dimension_numbers<[1], [0], [0], [1], [0, 0, 1, 1], [], []>} : vector<128x128xf32>, vector<128x32xf32>, vector<128x32xf32> -> vector<128x32xf32>
    %cst_8 = arith.constant 0.176776692 : f32
    %16 = vector.broadcast %cst_8 : f32 to vector<1x32xf32>
    %17 = arith.mulf %13, %15 : vector<128x32xf32>
    %cst_9 = arith.constant dense<0.000000e+00> : vector<1x128xf32>
    %18 = tpu.matmul %16, %17, %cst_9 {dimension_numbers = #tpu.dot_dimension_numbers<[1], [1], [0], [0], [0, 0, 1, 0], [], []>} : vector<1x32xf32>, vector<128x32xf32>, vector<1x128xf32> -> vector<1x128xf32>
    %c0_10 = arith.constant 0 : index
    %c0_11 = arith.constant 0 : index
    %19 = vector.load %arg5[%c0_10, %c0_11] : memref<32x128xf32, #tpu.memory_space<vmem>>, vector<32x128xf32>
    %cst_12 = arith.constant dense<0.000000e+00> : vector<128x128xf32>
    %20 = tpu.matmul %13, %19, %cst_12 {dimension_numbers = #tpu.dot_dimension_numbers<[1], [0], [0], [1], [0, 0, 1, 1], [], []>} : vector<128x32xf32>, vector<32x128xf32>, vector<128x128xf32> -> vector<128x128xf32>
    %c0_13 = arith.constant 0 : index
    %c0_14 = arith.constant 0 : index
    %21 = vector.load %arg6[%c0_13, %c0_14] : memref<32x128xf32, #tpu.memory_space<vmem>>, vector<32x128xf32>
    %cst_15 = arith.constant dense<0.000000e+00> : vector<128x128xf32>
    %22 = tpu.matmul %15, %21, %cst_15 {dimension_numbers = #tpu.dot_dimension_numbers<[1], [0], [0], [1], [0, 0, 1, 1], [], []>} : vector<128x32xf32>, vector<32x128xf32>, vector<128x128xf32> -> vector<128x128xf32>
    %23 = arith.addf %20, %22 : vector<128x128xf32>
    %c0_16 = arith.constant 0 : index
    %c0_17 = arith.constant 0 : index
    %24 = vector.load %arg7[%c0_16, %c0_17] : memref<1x128xf32, #tpu.memory_space<vmem>>, vector<1x128xf32>
    %25 = vector.broadcast %24 : vector<1x128xf32> to vector<128x128xf32>
    %26 = arith.addf %23, %25 : vector<128x128xf32>
    %cst_18 = arith.constant 0.000000e+00 : f32
    %27 = vector.broadcast %cst_18 : f32 to vector<128x128xf32>
    %28 = arith.maximumf %26, %27 : vector<128x128xf32>
    %c0_19 = arith.constant 0 : index
    %c0_20 = arith.constant 0 : index
    %29 = vector.load %arg8[%c0_19, %c0_20] : memref<1x128xf32, #tpu.memory_space<vmem>>, vector<1x128xf32>
    %cst_21 = arith.constant dense<0.000000e+00> : vector<1x128xf32>
    %30 = tpu.matmul %29, %28, %cst_21 {dimension_numbers = #tpu.dot_dimension_numbers<[1], [1], [0], [0], [0, 0, 1, 0], [], []>} : vector<1x128xf32>, vector<128x128xf32>, vector<1x128xf32> -> vector<1x128xf32>
    %31 = arith.addf %18, %30 : vector<1x128xf32>
    %c0_22 = arith.constant 0 : index
    %c0_23 = arith.constant 0 : index
    %32 = vector.load %arg9[%c0_22, %c0_23] : memref<1x1xf32, #tpu.memory_space<vmem>>, vector<1x1xf32>
    %33 = vector.broadcast %32 : vector<1x1xf32> to vector<1x128xf32>
    %34 = arith.addf %31, %33 : vector<1x128xf32>
    %cst_24 = arith.constant -1.000000e+01 : f32
    %cst_25 = arith.constant 1.000000e+01 : f32
    %35 = vector.broadcast %cst_24 : f32 to vector<1x128xf32>
    %36 = arith.maximumf %35, %34 : vector<1x128xf32>
    %37 = vector.broadcast %cst_25 : f32 to vector<1x128xf32>
    %38 = arith.minimumf %37, %36 : vector<1x128xf32>
    %c0_26 = arith.constant 0 : index
    %c0_27 = arith.constant 0 : index
    %39 = vector.load %arg10[%c0_26, %c0_27] : memref<1x128xf32, #tpu.memory_space<vmem>>, vector<1x128xf32>
    tpu.vector_store %arg10[%c0_26, %c0_27], %38 {strides = array<i32>} : memref<1x128xf32, #tpu.memory_space<vmem>>, vector<1x128xf32>,
    return
  }
  func.func @transform_0(%arg0: i32) -> (i32, i32) {
    %c0_i32 = arith.constant 0 : i32
    %c0_i32_0 = arith.constant 0 : i32
    return %arg0, %c0_i32 : i32, i32
  }
  func.func @transform_1(%arg0: i32) -> (i32, i32) {
    %c0_i32 = arith.constant 0 : i32
    %c0_i32_0 = arith.constant 0 : i32
    return %arg0, %c0_i32 : i32, i32
  }
  func.func @transform_2(%arg0: i32) -> (i32, i32) {
    %c0_i32 = arith.constant 0 : i32
    %c0_i32_0 = arith.constant 0 : i32
    %c0_i32_1 = arith.constant 0 : i32
    return %c0_i32, %c0_i32_0 : i32, i32
  }
  func.func @transform_3(%arg0: i32) -> (i32, i32) {
    %c0_i32 = arith.constant 0 : i32
    %c0_i32_0 = arith.constant 0 : i32
    %c0_i32_1 = arith.constant 0 : i32
    return %c0_i32, %c0_i32_0 : i32, i32
  }
  func.func @transform_4(%arg0: i32) -> (i32, i32) {
    %c0_i32 = arith.constant 0 : i32
    %c0_i32_0 = arith.constant 0 : i32
    %c0_i32_1 = arith.constant 0 : i32
    return %c0_i32, %c0_i32_0 : i32, i32
  }
  func.func @transform_5(%arg0: i32) -> (i32, i32) {
    %c0_i32 = arith.constant 0 : i32
    %c0_i32_0 = arith.constant 0 : i32
    %c0_i32_1 = arith.constant 0 : i32
    return %c0_i32, %c0_i32_0 : i32, i32
  }
  func.func @transform_6(%arg0: i32) -> (i32, i32) {
    %c0_i32 = arith.constant 0 : i32
    %c0_i32_0 = arith.constant 0 : i32
    %c0_i32_1 = arith.constant 0 : i32
    return %c0_i32, %c0_i32_0 : i32, i32
  }
  func.func @transform_7(%arg0: i32) -> (i32, i32) {
    %c0_i32 = arith.constant 0 : i32
    %c0_i32_0 = arith.constant 0 : i32
    %c0_i32_1 = arith.constant 0 : i32
    return %c0_i32, %c0_i32_0 : i32, i32
  }
  func.func @transform_8(%arg0: i32) -> (i32, i32) {
    %c0_i32 = arith.constant 0 : i32
    %c0_i32_0 = arith.constant 0 : i32
    %c0_i32_1 = arith.constant 0 : i32
    return %c0_i32, %c0_i32_0 : i32, i32
  }
  func.func @transform_9(%arg0: i32) -> (i32, i32) {
    %c0_i32 = arith.constant 0 : i32
    %c0_i32_0 = arith.constant 0 : i32
    return %c0_i32, %arg0 : i32, i32
  }
}

module attributes {stable_mosaic.version = 11 : i64} {
  func.func @_proj_kernel(%arg0: memref<128x16xf32, #tpu.memory_space<vmem>>, %arg1: memref<16x64xf32, #tpu.memory_space<vmem>>, %arg2: memref<1x64xf32, #tpu.memory_space<vmem>>, %arg3: memref<16x32xf32, #tpu.memory_space<vmem>>, %arg4: memref<1x32xf32, #tpu.memory_space<vmem>>, %arg5: memref<128x8xf32, #tpu.memory_space<vmem>>, %arg6: memref<8x32xf32, #tpu.memory_space<vmem>>, %arg7: memref<1x32xf32, #tpu.memory_space<vmem>>, %arg8: memref<8x32xf32, #tpu.memory_space<vmem>>, %arg9: memref<1x32xf32, #tpu.memory_space<vmem>>, %arg10: memref<128x64xf32, #tpu.memory_space<vmem>>, %arg11: memref<128x32xf32, #tpu.memory_space<vmem>>, %arg12: memref<128x32xf32, #tpu.memory_space<vmem>>, %arg13: memref<128x32xf32, #tpu.memory_space<vmem>>) attributes {dimension_semantics = [], scalar_prefetch = 0 : i64, scratch_operands = 0 : i64, tpu.core_type = #tpu.core_type<tc>} {
    %c0 = arith.constant 0 : index
    %c0_0 = arith.constant 0 : index
    %0 = vector.load %arg0[%c0, %c0_0] : memref<128x16xf32, #tpu.memory_space<vmem>>, vector<128x16xf32>
    %c0_1 = arith.constant 0 : index
    %c0_2 = arith.constant 0 : index
    %1 = vector.load %arg5[%c0_1, %c0_2] : memref<128x8xf32, #tpu.memory_space<vmem>>, vector<128x8xf32>
    %c0_3 = arith.constant 0 : index
    %c0_4 = arith.constant 0 : index
    %2 = vector.load %arg1[%c0_3, %c0_4] : memref<16x64xf32, #tpu.memory_space<vmem>>, vector<16x64xf32>
    %cst = arith.constant dense<0.000000e+00> : vector<128x64xf32>
    %3 = tpu.matmul %0, %2, %cst {dimension_numbers = #tpu.dot_dimension_numbers<[1], [0], [0], [1], [0, 0, 1, 1], [], []>} : vector<128x16xf32>, vector<16x64xf32>, vector<128x64xf32> -> vector<128x64xf32>
    %c0_5 = arith.constant 0 : index
    %c0_6 = arith.constant 0 : index
    %4 = vector.load %arg2[%c0_5, %c0_6] : memref<1x64xf32, #tpu.memory_space<vmem>>, vector<1x64xf32>
    %5 = vector.broadcast %4 : vector<1x64xf32> to vector<128x64xf32>
    %6 = arith.addf %3, %5 : vector<128x64xf32>
    %c0_7 = arith.constant 0 : index
    %c0_8 = arith.constant 0 : index
    %7 = vector.load %arg10[%c0_7, %c0_8] : memref<128x64xf32, #tpu.memory_space<vmem>>, vector<128x64xf32>
    tpu.vector_store %arg10[%c0_7, %c0_8], %6 {strides = array<i32>} : memref<128x64xf32, #tpu.memory_space<vmem>>, vector<128x64xf32>,
    %c0_9 = arith.constant 0 : index
    %c0_10 = arith.constant 0 : index
    %8 = vector.load %arg3[%c0_9, %c0_10] : memref<16x32xf32, #tpu.memory_space<vmem>>, vector<16x32xf32>
    %cst_11 = arith.constant dense<0.000000e+00> : vector<128x32xf32>
    %9 = tpu.matmul %0, %8, %cst_11 {dimension_numbers = #tpu.dot_dimension_numbers<[1], [0], [0], [1], [0, 0, 1, 1], [], []>} : vector<128x16xf32>, vector<16x32xf32>, vector<128x32xf32> -> vector<128x32xf32>
    %c0_12 = arith.constant 0 : index
    %c0_13 = arith.constant 0 : index
    %10 = vector.load %arg4[%c0_12, %c0_13] : memref<1x32xf32, #tpu.memory_space<vmem>>, vector<1x32xf32>
    %11 = vector.broadcast %10 : vector<1x32xf32> to vector<128x32xf32>
    %12 = arith.addf %9, %11 : vector<128x32xf32>
    %c0_14 = arith.constant 0 : index
    %c0_15 = arith.constant 0 : index
    %13 = vector.load %arg11[%c0_14, %c0_15] : memref<128x32xf32, #tpu.memory_space<vmem>>, vector<128x32xf32>
    tpu.vector_store %arg11[%c0_14, %c0_15], %12 {strides = array<i32>} : memref<128x32xf32, #tpu.memory_space<vmem>>, vector<128x32xf32>,
    %c0_16 = arith.constant 0 : index
    %c0_17 = arith.constant 0 : index
    %14 = vector.load %arg6[%c0_16, %c0_17] : memref<8x32xf32, #tpu.memory_space<vmem>>, vector<8x32xf32>
    %cst_18 = arith.constant dense<0.000000e+00> : vector<128x32xf32>
    %15 = tpu.matmul %1, %14, %cst_18 {dimension_numbers = #tpu.dot_dimension_numbers<[1], [0], [0], [1], [0, 0, 1, 1], [], []>} : vector<128x8xf32>, vector<8x32xf32>, vector<128x32xf32> -> vector<128x32xf32>
    %c0_19 = arith.constant 0 : index
    %c0_20 = arith.constant 0 : index
    %16 = vector.load %arg7[%c0_19, %c0_20] : memref<1x32xf32, #tpu.memory_space<vmem>>, vector<1x32xf32>
    %17 = vector.broadcast %16 : vector<1x32xf32> to vector<128x32xf32>
    %18 = arith.addf %15, %17 : vector<128x32xf32>
    %c0_21 = arith.constant 0 : index
    %c0_22 = arith.constant 0 : index
    %19 = vector.load %arg12[%c0_21, %c0_22] : memref<128x32xf32, #tpu.memory_space<vmem>>, vector<128x32xf32>
    tpu.vector_store %arg12[%c0_21, %c0_22], %18 {strides = array<i32>} : memref<128x32xf32, #tpu.memory_space<vmem>>, vector<128x32xf32>,
    %c0_23 = arith.constant 0 : index
    %c0_24 = arith.constant 0 : index
    %20 = vector.load %arg8[%c0_23, %c0_24] : memref<8x32xf32, #tpu.memory_space<vmem>>, vector<8x32xf32>
    %cst_25 = arith.constant dense<0.000000e+00> : vector<128x32xf32>
    %21 = tpu.matmul %1, %20, %cst_25 {dimension_numbers = #tpu.dot_dimension_numbers<[1], [0], [0], [1], [0, 0, 1, 1], [], []>} : vector<128x8xf32>, vector<8x32xf32>, vector<128x32xf32> -> vector<128x32xf32>
    %c0_26 = arith.constant 0 : index
    %c0_27 = arith.constant 0 : index
    %22 = vector.load %arg9[%c0_26, %c0_27] : memref<1x32xf32, #tpu.memory_space<vmem>>, vector<1x32xf32>
    %23 = vector.broadcast %22 : vector<1x32xf32> to vector<128x32xf32>
    %24 = arith.addf %21, %23 : vector<128x32xf32>
    %c0_28 = arith.constant 0 : index
    %c0_29 = arith.constant 0 : index
    %25 = vector.load %arg13[%c0_28, %c0_29] : memref<128x32xf32, #tpu.memory_space<vmem>>, vector<128x32xf32>
    tpu.vector_store %arg13[%c0_28, %c0_29], %24 {strides = array<i32>} : memref<128x32xf32, #tpu.memory_space<vmem>>, vector<128x32xf32>,
    return
  }
}

module attributes {stable_mosaic.version = 11 : i64} {
  func.func @kernel(%arg0: i32, %arg1: memref<128x1xi32, #tpu.memory_space<vmem>>, %arg2: memref<128x1xi32, #tpu.memory_space<vmem>>, %arg3: memref<1x128xi32, #tpu.memory_space<vmem>>, %arg4: memref<128x8xf32, #tpu.memory_space<vmem>>, %arg5: memref<128x64xf32, #tpu.memory_space<vmem>>, %arg6: memref<128x32xf32, #tpu.memory_space<vmem>>, %arg7: memref<128x32xf32, #tpu.memory_space<vmem>>, %arg8: memref<8x32xf32, #tpu.memory_space<vmem>>, %arg9: memref<128x32xf32, #tpu.memory_space<vmem>>, %arg10: memref<128x1xf32, #tpu.memory_space<vmem>>, %arg11: memref<128x1xf32, #tpu.memory_space<vmem>>, %arg12: memref<128x32xf32, #tpu.memory_space<vmem>>) attributes {dimension_semantics = [#tpu.dimension_semantics<arbitrary>], iteration_bounds = array<i64: 1>, scalar_prefetch = 0 : i64, scratch_operands = 3 : i64, tpu.core_type = #tpu.core_type<tc>, window_params = [{transform_indices = @transform_0, window_bounds = array<i64: 128, 1>}, {transform_indices = @transform_1, window_bounds = array<i64: 128, 1>}, {transform_indices = @transform_2, window_bounds = array<i64: 1, 128>}, {transform_indices = @transform_3, window_bounds = array<i64: 128, 8>}, {pipeline_mode = #tpu.pipeline_mode<synchronous>, transform_indices = @transform_4, window_bounds = array<i64: 128, 64>}, {pipeline_mode = #tpu.pipeline_mode<synchronous>, transform_indices = @transform_5, window_bounds = array<i64: 128, 32>}, {pipeline_mode = #tpu.pipeline_mode<synchronous>, transform_indices = @transform_6, window_bounds = array<i64: 128, 32>}, {pipeline_mode = #tpu.pipeline_mode<synchronous>, transform_indices = @transform_7, window_bounds = array<i64: 8, 32>}, {pipeline_mode = #tpu.pipeline_mode<synchronous>, transform_indices = @transform_8, window_bounds = array<i64: 128, 32>}]} {
    %c0_i32 = arith.constant 0 : i32
    %0 = arith.cmpi eq, %arg0, %c0_i32 : i32
    %1 = arith.extui %0 : i1 to i32
    %c0_i32_0 = arith.constant 0 : i32
    %2 = arith.cmpi ne, %1, %c0_i32_0 : i32
    scf.if %2 {
      %cst_40 = arith.constant -1.000000e+30 : f32
      %82 = vector.broadcast %cst_40 : f32 to vector<128x1xf32>
      %c0_41 = arith.constant 0 : index
      %c0_42 = arith.constant 0 : index
      %83 = vector.load %arg10[%c0_41, %c0_42] : memref<128x1xf32, #tpu.memory_space<vmem>>, vector<128x1xf32>
      tpu.vector_store %arg10[%c0_41, %c0_42], %82 {strides = array<i32>} : memref<128x1xf32, #tpu.memory_space<vmem>>, vector<128x1xf32>,
      %cst_43 = arith.constant 0.000000e+00 : f32
      %84 = vector.broadcast %cst_43 : f32 to vector<128x1xf32>
      %c0_44 = arith.constant 0 : index
      %c0_45 = arith.constant 0 : index
      %85 = vector.load %arg11[%c0_44, %c0_45] : memref<128x1xf32, #tpu.memory_space<vmem>>, vector<128x1xf32>
      tpu.vector_store %arg11[%c0_44, %c0_45], %84 {strides = array<i32>} : memref<128x1xf32, #tpu.memory_space<vmem>>, vector<128x1xf32>,
      %cst_46 = arith.constant 0.000000e+00 : f32
      %86 = vector.broadcast %cst_46 : f32 to vector<128x32xf32>
      %c0_47 = arith.constant 0 : index
      %c0_48 = arith.constant 0 : index
      %87 = vector.load %arg12[%c0_47, %c0_48] : memref<128x32xf32, #tpu.memory_space<vmem>>, vector<128x32xf32>
      tpu.vector_store %arg12[%c0_47, %c0_48], %86 {strides = array<i32>} : memref<128x32xf32, #tpu.memory_space<vmem>>, vector<128x32xf32>,
    } else {
    }
    %c0 = arith.constant 0 : index
    %c0_1 = arith.constant 0 : index
    %3 = vector.load %arg1[%c0, %c0_1] : memref<128x1xi32, #tpu.memory_space<vmem>>, vector<128x1xi32>
    %c0_2 = arith.constant 0 : index
    %c0_3 = arith.constant 0 : index
    %4 = vector.load %arg2[%c0_2, %c0_3] : memref<128x1xi32, #tpu.memory_space<vmem>>, vector<128x1xi32>
    %c0_4 = arith.constant 0 : index
    %c0_5 = arith.constant 0 : index
    %5 = vector.load %arg3[%c0_4, %c0_5] : memref<1x128xi32, #tpu.memory_space<vmem>>, vector<1x128xi32>
    %6 = tpu.iota {dimensions = array<i32: 1>} : vector<1x128xi32>
    %c128_i32 = arith.constant 128 : i32
    %7 = arith.muli %arg0, %c128_i32 : i32
    %8 = vector.broadcast %7 : i32 to vector<1x128xi32>
    %9 = arith.addi %8, %6 : vector<1x128xi32>
    %c18_i32 = arith.constant 18 : i32
    %10 = vector.broadcast %c18_i32 : i32 to vector<1x128xi32>
    %11 = arith.cmpi slt, %9, %10 : vector<1x128xi32>
    %12 = arith.extui %11 : vector<1x128xi1> to vector<1x128xi32>
    %13 = arith.sitofp %12 : vector<1x128xi32> to vector<1x128xf32>
    %14 = tpu.iota {dimensions = array<i32: 1>} : vector<128x128xi32>
    %15 = vector.broadcast %3 : vector<128x1xi32> to vector<128x128xi32>
    %16 = arith.cmpi eq, %14, %15 : vector<128x128xi32>
    %17 = arith.extui %16 : vector<128x128xi1> to vector<128x128xi32>
    %18 = arith.sitofp %17 : vector<128x128xi32> to vector<128x128xf32>
    %19 = tpu.iota {dimensions = array<i32: 1>} : vector<128x128xi32>
    %20 = vector.broadcast %4 : vector<128x1xi32> to vector<128x128xi32>
    %21 = arith.cmpi eq, %19, %20 : vector<128x128xi32>
    %22 = arith.extui %21 : vector<128x128xi1> to vector<128x128xi32>
    %23 = arith.sitofp %22 : vector<128x128xi32> to vector<128x128xf32>
    %24 = tpu.iota {dimensions = array<i32: 0>} : vector<128x128xi32>
    %25 = vector.broadcast %5 : vector<1x128xi32> to vector<128x128xi32>
    %26 = arith.cmpi eq, %24, %25 : vector<128x128xi32>
    %c0_6 = arith.constant 0 : index
    %c0_7 = arith.constant 0 : index
    %27 = vector.load %arg4[%c0_6, %c0_7] : memref<128x8xf32, #tpu.memory_space<vmem>>, vector<128x8xf32>
    %c0_8 = arith.constant 0 : index
    %c0_9 = arith.constant 0 : index
    %28 = vector.load %arg8[%c0_8, %c0_9] : memref<8x32xf32, #tpu.memory_space<vmem>>, vector<8x32xf32>
    %cst = arith.constant dense<0.000000e+00> : vector<128x32xf32>
    %29 = tpu.matmul %27, %28, %cst {dimension_numbers = #tpu.dot_dimension_numbers<[1], [0], [0], [1], [0, 0, 1, 1], [], []>} : vector<128x8xf32>, vector<8x32xf32>, vector<128x32xf32> -> vector<128x32xf32>
    %c0_10 = arith.constant 0 : index
    %c0_11 = arith.constant 0 : index
    %30 = vector.load %arg5[%c0_10, %c0_11] : memref<128x64xf32, #tpu.memory_space<vmem>>, vector<128x64xf32>
    %cst_12 = arith.constant dense<0.000000e+00> : vector<128x64xf32>
    %31 = tpu.matmul %18, %30, %cst_12 {dimension_numbers = #tpu.dot_dimension_numbers<[1], [0], [0], [1], [0, 0, 1, 1], [], []>} : vector<128x128xf32>, vector<128x64xf32>, vector<128x64xf32> -> vector<128x64xf32>
    %32 = vector.extract_strided_slice %31 {offsets = [0, 0], sizes = [128, 32], strides = [1, 1]} : vector<128x64xf32> to vector<128x32xf32>
    %33 = arith.addf %32, %29 : vector<128x32xf32>
    %34 = vector.extract_strided_slice %31 {offsets = [0, 32], sizes = [128, 32], strides = [1, 1]} : vector<128x64xf32> to vector<128x32xf32>
    %35 = arith.addf %34, %29 : vector<128x32xf32>
    %c0_13 = arith.constant 0 : index
    %c0_14 = arith.constant 0 : index
    %36 = vector.load %arg6[%c0_13, %c0_14] : memref<128x32xf32, #tpu.memory_space<vmem>>, vector<128x32xf32>
    %cst_15 = arith.constant dense<0.000000e+00> : vector<128x32xf32>
    %37 = tpu.matmul %23, %36, %cst_15 {dimension_numbers = #tpu.dot_dimension_numbers<[1], [0], [0], [1], [0, 0, 1, 1], [], []>} : vector<128x128xf32>, vector<128x32xf32>, vector<128x32xf32> -> vector<128x32xf32>
    %cst_16 = arith.constant 1.000000e+00 : f32
    %38 = vector.broadcast %cst_16 : f32 to vector<1x32xf32>
    %39 = arith.mulf %37, %33 : vector<128x32xf32>
    %cst_17 = arith.constant dense<0.000000e+00> : vector<1x128xf32>
    %40 = tpu.matmul %38, %39, %cst_17 {dimension_numbers = #tpu.dot_dimension_numbers<[1], [1], [0], [0], [0, 0, 1, 0], [], []>} : vector<1x32xf32>, vector<128x32xf32>, vector<1x128xf32> -> vector<1x128xf32>
    %cst_18 = arith.constant -1.000000e+30 : f32
    %41 = vector.broadcast %cst_18 : f32 to vector<1x128xf32>
    %42 = arith.select %11, %40, %41 : vector<1x128xi1>, vector<1x128xf32>
    %cst_19 = arith.constant -1.000000e+30 : f32
    %43 = vector.shape_cast %42 : vector<1x128xf32> to vector<1x128xf32>
    %44 = vector.broadcast %43 : vector<1x128xf32> to vector<128x128xf32>
    %45 = vector.broadcast %cst_19 : f32 to vector<128x128xf32>
    %46 = arith.select %26, %44, %45 : vector<128x128xi1>, vector<128x128xf32>
    %cst_20 = arith.constant dense<0xFF800000> : vector<128xf32>
    %47 = vector.multi_reduction <maximumf>, %46, %cst_20 [1] : vector<128x128xf32> to vector<128xf32>
    %48 = vector.shape_cast %47 : vector<128xf32> to vector<128x1xf32>
    %c0_21 = arith.constant 0 : index
    %c0_22 = arith.constant 0 : index
    %49 = vector.load %arg10[%c0_21, %c0_22] : memref<128x1xf32, #tpu.memory_space<vmem>>, vector<128x1xf32>
    %50 = arith.maximumf %49, %48 : vector<128x1xf32>
    %51 = arith.subf %49, %50 : vector<128x1xf32>
    %52 = math.exp %51 : vector<128x1xf32>
    %c0_23 = arith.constant 0 : index
    %c0_24 = arith.constant 0 : index
    %53 = vector.load %arg10[%c0_23, %c0_24] : memref<128x1xf32, #tpu.memory_space<vmem>>, vector<128x1xf32>
    tpu.vector_store %arg10[%c0_23, %c0_24], %50 {strides = array<i32>} : memref<128x1xf32, #tpu.memory_space<vmem>>, vector<128x1xf32>,
    %cst_25 = arith.constant 0.000000e+00 : f32
    %54 = vector.shape_cast %50 : vector<128x1xf32> to vector<128x1xf32>
    %55 = vector.broadcast %54 : vector<128x1xf32> to vector<128x128xf32>
    %56 = vector.broadcast %cst_25 : f32 to vector<128x128xf32>
    %57 = arith.select %26, %55, %56 : vector<128x128xi1>, vector<128x128xf32>
    %cst_26 = arith.constant dense<0.000000e+00> : vector<128xf32>
    %58 = vector.multi_reduction <add>, %57, %cst_26 [0] : vector<128x128xf32> to vector<128xf32>
    %59 = vector.shape_cast %58 : vector<128xf32> to vector<1x128xf32>
    %60 = arith.subf %42, %59 : vector<1x128xf32>
    %61 = math.exp %60 : vector<1x128xf32>
    %62 = arith.mulf %61, %13 : vector<1x128xf32>
    %cst_27 = arith.constant 0.000000e+00 : f32
    %63 = vector.shape_cast %62 : vector<1x128xf32> to vector<1x128xf32>
    %64 = vector.broadcast %63 : vector<1x128xf32> to vector<128x128xf32>
    %65 = vector.broadcast %cst_27 : f32 to vector<128x128xf32>
    %66 = arith.select %26, %64, %65 : vector<128x128xi1>, vector<128x128xf32>
    %c0_28 = arith.constant 0 : index
    %c0_29 = arith.constant 0 : index
    %67 = vector.load %arg11[%c0_28, %c0_29] : memref<128x1xf32, #tpu.memory_space<vmem>>, vector<128x1xf32>
    %68 = arith.mulf %67, %52 : vector<128x1xf32>
    %cst_30 = arith.constant dense<0.000000e+00> : vector<128xf32>
    %69 = vector.multi_reduction <add>, %66, %cst_30 [1] : vector<128x128xf32> to vector<128xf32>
    %70 = vector.shape_cast %69 : vector<128xf32> to vector<128x1xf32>
    %71 = arith.addf %68, %70 : vector<128x1xf32>
    %c0_31 = arith.constant 0 : index
    %c0_32 = arith.constant 0 : index
    %72 = vector.load %arg11[%c0_31, %c0_32] : memref<128x1xf32, #tpu.memory_space<vmem>>, vector<128x1xf32>
    tpu.vector_store %arg11[%c0_31, %c0_32], %71 {strides = array<i32>} : memref<128x1xf32, #tpu.memory_space<vmem>>, vector<128x1xf32>,
    %c0_33 = arith.constant 0 : index
    %c0_34 = arith.constant 0 : index
    %73 = vector.load %arg12[%c0_33, %c0_34] : memref<128x32xf32, #tpu.memory_space<vmem>>, vector<128x32xf32>
    %74 = vector.broadcast %52 : vector<128x1xf32> to vector<128x32xf32>
    %75 = arith.mulf %73, %74 : vector<128x32xf32>
    %cst_35 = arith.constant dense<0.000000e+00> : vector<128x32xf32>
    %76 = tpu.matmul %66, %35, %cst_35 {dimension_numbers = #tpu.dot_dimension_numbers<[1], [0], [0], [1], [0, 0, 1, 1], [], []>} : vector<128x128xf32>, vector<128x32xf32>, vector<128x32xf32> -> vector<128x32xf32>
    %77 = arith.addf %75, %76 : vector<128x32xf32>
    %c0_36 = arith.constant 0 : index
    %c0_37 = arith.constant 0 : index
    %78 = vector.load %arg12[%c0_36, %c0_37] : memref<128x32xf32, #tpu.memory_space<vmem>>, vector<128x32xf32>
    tpu.vector_store %arg12[%c0_36, %c0_37], %77 {strides = array<i32>} : memref<128x32xf32, #tpu.memory_space<vmem>>, vector<128x32xf32>,
    %c0_i32_38 = arith.constant 0 : i32
    %79 = arith.cmpi eq, %arg0, %c0_i32_38 : i32
    %80 = arith.extui %79 : i1 to i32
    %c0_i32_39 = arith.constant 0 : i32
    %81 = arith.cmpi ne, %80, %c0_i32_39 : i32
    scf.if %81 {
      %c0_40 = arith.constant 0 : index
      %c0_41 = arith.constant 0 : index
      %82 = vector.load %arg11[%c0_40, %c0_41] : memref<128x1xf32, #tpu.memory_space<vmem>>, vector<128x1xf32>
      %cst_42 = arith.constant 1.000000e-30 : f32
      %83 = vector.broadcast %cst_42 : f32 to vector<128x1xf32>
      %84 = arith.maximumf %82, %83 : vector<128x1xf32>
      %85 = tpu.reciprocal %84 {approx = true} : vector<128x1xf32> -> vector<128x1xf32>
      %c0_43 = arith.constant 0 : index
      %c0_44 = arith.constant 0 : index
      %86 = vector.load %arg12[%c0_43, %c0_44] : memref<128x32xf32, #tpu.memory_space<vmem>>, vector<128x32xf32>
      %87 = vector.broadcast %85 : vector<128x1xf32> to vector<128x32xf32>
      %88 = arith.mulf %86, %87 : vector<128x32xf32>
      %c0_45 = arith.constant 0 : index
      %c0_46 = arith.constant 0 : index
      %89 = vector.load %arg7[%c0_45, %c0_46] : memref<128x32xf32, #tpu.memory_space<vmem>>, vector<128x32xf32>
      %90 = arith.addf %88, %89 : vector<128x32xf32>
      %91 = arith.mulf %90, %90 : vector<128x32xf32>
      %cst_47 = arith.constant dense<0.000000e+00> : vector<128xf32>
      %92 = vector.multi_reduction <add>, %91, %cst_47 [1] : vector<128x32xf32> to vector<128xf32>
      %93 = vector.shape_cast %92 : vector<128xf32> to vector<128x1xf32>
      %cst_48 = arith.constant 1.000000e-24 : f32
      %94 = vector.broadcast %cst_48 : f32 to vector<128x1xf32>
      %95 = arith.maximumf %93, %94 : vector<128x1xf32>
      %96 = math.rsqrt %95 : vector<128x1xf32>
      %97 = vector.broadcast %96 : vector<128x1xf32> to vector<128x32xf32>
      %98 = arith.mulf %90, %97 : vector<128x32xf32>
      %c0_49 = arith.constant 0 : index
      %c0_50 = arith.constant 0 : index
      %99 = vector.load %arg9[%c0_49, %c0_50] : memref<128x32xf32, #tpu.memory_space<vmem>>, vector<128x32xf32>
      tpu.vector_store %arg9[%c0_49, %c0_50], %98 {strides = array<i32>} : memref<128x32xf32, #tpu.memory_space<vmem>>, vector<128x32xf32>,
    } else {
    }
    return
  }
  func.func @transform_0(%arg0: i32) -> (i32, i32) {
    %c0_i32 = arith.constant 0 : i32
    %c0_i32_0 = arith.constant 0 : i32
    return %arg0, %c0_i32 : i32, i32
  }
  func.func @transform_1(%arg0: i32) -> (i32, i32) {
    %c0_i32 = arith.constant 0 : i32
    %c0_i32_0 = arith.constant 0 : i32
    return %arg0, %c0_i32 : i32, i32
  }
  func.func @transform_2(%arg0: i32) -> (i32, i32) {
    %c0_i32 = arith.constant 0 : i32
    %c0_i32_0 = arith.constant 0 : i32
    return %c0_i32, %arg0 : i32, i32
  }
  func.func @transform_3(%arg0: i32) -> (i32, i32) {
    %c0_i32 = arith.constant 0 : i32
    %c0_i32_0 = arith.constant 0 : i32
    return %arg0, %c0_i32 : i32, i32
  }
  func.func @transform_4(%arg0: i32) -> (i32, i32) {
    %c0_i32 = arith.constant 0 : i32
    %c0_i32_0 = arith.constant 0 : i32
    %c0_i32_1 = arith.constant 0 : i32
    return %c0_i32, %c0_i32_0 : i32, i32
  }
  func.func @transform_5(%arg0: i32) -> (i32, i32) {
    %c0_i32 = arith.constant 0 : i32
    %c0_i32_0 = arith.constant 0 : i32
    %c0_i32_1 = arith.constant 0 : i32
    return %c0_i32, %c0_i32_0 : i32, i32
  }
  func.func @transform_6(%arg0: i32) -> (i32, i32) {
    %c0_i32 = arith.constant 0 : i32
    %c0_i32_0 = arith.constant 0 : i32
    %c0_i32_1 = arith.constant 0 : i32
    return %c0_i32, %c0_i32_0 : i32, i32
  }
  func.func @transform_7(%arg0: i32) -> (i32, i32) {
    %c0_i32 = arith.constant 0 : i32
    %c0_i32_0 = arith.constant 0 : i32
    %c0_i32_1 = arith.constant 0 : i32
    return %c0_i32, %c0_i32_0 : i32, i32
  }
  func.func @transform_8(%arg0: i32) -> (i32, i32) {
    %c0_i32 = arith.constant 0 : i32
    %c0_i32_0 = arith.constant 0 : i32
    %c0_i32_1 = arith.constant 0 : i32
    return %c0_i32, %c0_i32_0 : i32, i32
  }
}

</mosaic_0001>

<bundles_post_ra>
// kernel: order_courier_forward.3
= control target key start
LH: loop header
LB: loop body
LE: loop exit
PB: predicated region body
PF: predicated region fallthrough
CT: control target
= control target key end

     0   :  { %vm80_vm0 = vcmask 130048   ;;  %vm470_vm1 = vcmask 64512   ;;  %vm274_vm2 = vcmask 523264   ;;  %vm445_vm3 = vcmask 261120   ;;  %s1699_s1 = inlined_call_operand.vmem [shape: f32[16,64], index: 1, kind: input, shape index: {}]   ;;  %s1700_s3 = inlined_call_operand.vmem [shape: f32[16,32], index: 3, kind: input, shape index: {}]   ;;  %s1701_s0 = inlined_call_operand.vmem [shape: f32[128,16], index: 0, kind: input, shape index: {}]   ;;  %s1702_s6 = inlined_call_operand.vmem [shape: f32[8,32], index: 6, kind: input, shape index: {}]   ;;  %s1703_s8 = inlined_call_operand.vmem [shape: f32[8,32], index: 8, kind: input, shape index: {}]   ;;  %s1704_s5 = inlined_call_operand.vmem [shape: f32[128,8], index: 5, kind: input, shape index: {}]   ;;  %s1705_s2 = inlined_call_operand.vmem [shape: f32[1,64], index: 2, kind: input, shape index: {}]   ;;  %s1706_s4 = inlined_call_operand.vmem [shape: f32[1,32], index: 4, kind: input, shape index: {}]   ;;  %s1707_s10 = inlined_call_operand.vmem [shape: f32[128,64], index: 10, kind: output, shape index: {0}]   ;;  %s1708_s11 = inlined_call_operand.vmem [shape: f32[128,32], index: 11, kind: output, shape index: {1}]   ;;  %s1709_s7 = inlined_call_operand.vmem [shape: f32[1,32], index: 7, kind: input, shape index: {}]   ;;  %s1710_s9 = inlined_call_operand.vmem [shape: f32[1,32], index: 9, kind: input, shape index: {}]   ;;  %s1711_s12 = inlined_call_operand.vmem [shape: f32[128,32], index: 12, kind: output, shape index: {2}]   ;;  %s1712_s13 = inlined_call_operand.vmem [shape: f32[128,32], index: 13, kind: output, shape index: {3}]  }
   0x1   :  { %v72_v0 = vld [vmem:[%s1699_s1 + $0x8] sm:$0xff]  ;;  %v71_v2 = vld [vmem:[%s1699_s1] sm:$0xff]  ;;  %v41_v8 = vld [vmem:[%s1701_s0 + $0x10] sm:$0xff] }
   0x2   :  { %v292_v1 = vld [vmem:[%s1700_s3 + $0x8] sm:$0xff]  ;;  %1003 = vmatprep.subr.mxu0 %v72_v0  ;;  %v291_v3 = vld [vmem:[%s1700_s3] sm:$0xff]  ;;  %v42_v9 = vld [vmem:[%s1701_s0 + $0x18] sm:$0xff] }
   0x3   :  { %1031 = vmatprep.subr.mxu1 %v292_v1  ;;  %v39_v4 = vld [vmem:[%s1701_s0] sm:$0xff]  ;;  %1004 = vmatpush3.msra.mxu0 %v72_v0  ;;  %v40_v5 = vld [vmem:[%s1701_s0 + $0x8] sm:$0xff]  ;;  %v45_v12 = vld [vmem:[%s1701_s0 + $0x30] sm:$0xff] }
   0x4   :  { %1032 = vmatpush3.msra.mxu1 %v292_v1  ;;  %1005 = vmatprep.subr.mxu0 %v71_v2  ;;  %v462_v6 = vld [vmem:[%s1702_s6] sm:$0xff]  ;;  %v44_v11 = vld [vmem:[%s1701_s0 + $0x28] sm:$0xff]  ;;  %v46_v13 = vld [vmem:[%s1701_s0 + $0x38] sm:$0xff] }
   0x5   :  { %1033 = vmatprep.subr.mxu1 %v291_v3  ;;  %1006 = vmatpush3.msra.mxu0 %v71_v2  ;;  %v680_v7 = vld [vmem:[%s1703_s8] sm:$0xff]  ;;  %v48_v15 = vld [vmem:[%s1701_s0 + $0x48] sm:$0xff]  ;;  %v49_v16 = vld [vmem:[%s1701_s0 + $0x50] sm:$0xff] }
   0x6   :  { %1007 = vmatprep.mubr.msk.f32.mxu0 %vm80_vm0, %v39_v4  ;;  %1034 = vmatpush3.msra.mxu1 %v291_v3  ;;  %v43_v10 = vld [vmem:[%s1701_s0 + $0x20] sm:$0xff]  ;;  %v50_v17 = vld [vmem:[%s1701_s0 + $0x58] sm:$0xff]  ;;  %v52_v19 = vld [vmem:[%s1701_s0 + $0x68] sm:$0xff] }
   0x7   :  { %1035 = vmatprep.mubr.msk.f32.mxu1 %vm80_vm0, %v39_v4  ;;  %1008 = vmatmul.mubr.msk.f32.vlgmr.msra.gmra.mxu0 %vm80_vm0, %v40_v5  ;;  %v47_v14 = vld [vmem:[%s1701_s0 + $0x40] sm:$0xff]  ;;  %v53_v20 = vld [vmem:[%s1701_s0 + $0x70] sm:$0xff]  ;;  %v54_v21 = vld [vmem:[%s1701_s0 + $0x78] sm:$0xff] }
   0x8   :  { %1036 = vmatmul.mubr.msk.f32.vlgmr.msra.gmra.mxu1 %vm80_vm0, %v40_v5  ;;  %1059 = vmatprep.subr.mxu0 %v462_v6  ;;  %v51_v18 = vld [vmem:[%s1701_s0 + $0x60] sm:$0xff]  ;;  %v56_v23 = vld [vmem:[%s1704_s5 + $0x8] sm:$0xff]  ;;  %v57_v24 = vld [vmem:[%s1704_s5 + $0x10] sm:$0xff] }
   0x9   :  { %1085 = vmatprep.subr.mxu1 %v680_v7  ;;  %1060 = vmatpush3.msra.mxu0 %v462_v6  ;;  %v55_v22 = vld [vmem:[%s1704_s5] sm:$0xff]  ;;  %v58_v25 = vld [vmem:[%s1704_s5 + $0x18] sm:$0xff]  ;;  %v60_v27 = vld [vmem:[%s1704_s5 + $0x28] sm:$0xff] }
   0xa   :  { %1086 = vmatpush3.msra.mxu1 %v680_v7  ;;  %1010 = vmatprep.mubr.msk.f32.mxu0 %vm80_vm0, %v41_v8  ;;  %v59_v26 = vld [vmem:[%s1704_s5 + $0x20] sm:$0xff]  ;;  %v61_v28 = vld [vmem:[%s1704_s5 + $0x30] sm:$0xff]  ;;  %v62_v29 = vld [vmem:[%s1704_s5 + $0x38] sm:$0xff] }
   0xb   :  { %1038 = vmatprep.mubr.msk.f32.mxu1 %vm80_vm0, %v41_v8  ;;  %1011 = vmatmul.mubr.msk.f32.gmra.mxu0 %vm80_vm0, %v42_v9  ;;  %v63_v30 = vld [vmem:[%s1704_s5 + $0x40] sm:$0xff]  ;;  %v64_v31 = vld [vmem:[%s1704_s5 + $0x48] sm:$0xff]  ;;  %v65_v32 = vld [vmem:[%s1704_s5 + $0x50] sm:$0xff] }
   0xc   :  { %1039 = vmatmul.mubr.msk.f32.gmra.mxu1 %vm80_vm0, %v42_v9  ;;  %1013 = vmatprep.mubr.msk.f32.mxu0 %vm80_vm0, %v43_v10  ;;  %v66_v33 = vld [vmem:[%s1704_s5 + $0x58] sm:$0xff]  ;;  %v67_v34 = vld [vmem:[%s1704_s5 + $0x60] sm:$0xff]  ;;  %v68_v35 = vld [vmem:[%s1704_s5 + $0x68] sm:$0xff] }
   0xd   :  { %1041 = vmatprep.mubr.msk.f32.mxu1 %vm80_vm0, %v43_v10  ;;  %v69_v36 = vld [vmem:[%s1704_s5 + $0x70] sm:$0xff]  ;;  %v70_v37 = vld [vmem:[%s1704_s5 + $0x78] sm:$0xff]  ;;  %v1362_v38 = vld [vmem:[%s1705_s2] ss:$0 sm:$0xff] }
   0xe   :  { %v1367_v39 = vld [vmem:[%s1706_s4] ss:$0 sm:$0xff] }
   0xf   :  { %1014 = vmatmul.mubr.msk.f32.gmra.mxu0 %vm80_vm0, %v44_v11 }
  0x10   :  { %1042 = vmatmul.mubr.msk.f32.gmra.mxu1 %vm80_vm0, %v44_v11  ;;  %1016 = vmatprep.mubr.msk.f32.mxu0 %vm80_vm0, %v45_v12 }
  0x11   :  { %1044 = vmatprep.mubr.msk.f32.mxu1 %vm80_vm0, %v45_v12 }
  0x13   :  { %1017 = vmatmul.mubr.msk.f32.gmra.mxu0 %vm80_vm0, %v46_v13 }
  0x14   :  { %1045 = vmatmul.mubr.msk.f32.gmra.mxu1 %vm80_vm0, %v46_v13  ;;  %1019 = vmatprep.mubr.msk.f32.mxu0 %vm80_vm0, %v47_v14 }
  0x15   :  { %1047 = vmatprep.mubr.msk.f32.mxu1 %vm80_vm0, %v47_v14 }
  0x17   :  { %1020 = vmatmul.mubr.msk.f32.gmra.mxu0 %vm80_vm0, %v48_v15 }
  0x18   :  { %1048 = vmatmul.mubr.msk.f32.gmra.mxu1 %vm80_vm0, %v48_v15  ;;  %1022 = vmatprep.mubr.msk.f32.mxu0 %vm80_vm0, %v49_v16 }
  0x19   :  { %1050 = vmatprep.mubr.msk.f32.mxu1 %vm80_vm0, %v49_v16 }
  0x1b   :  { %1023 = vmatmul.mubr.msk.f32.gmra.mxu0 %vm80_vm0, %v50_v17 }
  0x1c   :  { %1051 = vmatmul.mubr.msk.f32.gmra.mxu1 %vm80_vm0, %v50_v17  ;;  %1025 = vmatprep.mubr.msk.f32.mxu0 %vm80_vm0, %v51_v18 }
  0x1d   :  { %1053 = vmatprep.mubr.msk.f32.mxu1 %vm80_vm0, %v51_v18 }
  0x1f   :  { %1026 = vmatmul.mubr.msk.f32.gmra.mxu0 %vm80_vm0, %v52_v19 }
  0x20   :  { %1054 = vmatmul.mubr.msk.f32.gmra.mxu1 %vm80_vm0, %v52_v19  ;;  %1028 = vmatprep.mubr.msk.f32.mxu0 %vm80_vm0, %v53_v20 }
  0x21   :  { %1056 = vmatprep.mubr.msk.f32.mxu1 %vm80_vm0, %v53_v20 }
  0x23   :  { %1029 = vmatmul.mubr.msk.f32.gmra.mxu0 %vm80_vm0, %v54_v21 }
  0x24   :  { %1057 = vmatmul.mubr.msk.f32.gmra.mxu1 %vm80_vm0, %v54_v21  ;;  %1061 = vmatprep.mubr.msk.f32.mxu0 %vm470_vm1, %v55_v22 }
  0x25   :  { %1087 = vmatprep.mubr.msk.f32.mxu1 %vm470_vm1, %v55_v22 }
  0x27   :  { %1062 = vmatmul.mubr.msk.f32.vlgmr.msra.gmra.mxu0 %vm470_vm1, %v56_v23 }
  0x28   :  { %1088 = vmatmul.mubr.msk.f32.vlgmr.msra.gmra.mxu1 %vm470_vm1, %v56_v23  ;;  %1064 = vmatprep.mubr.msk.f32.mxu0 %vm470_vm1, %v57_v24 }
  0x29   :  { %1090 = vmatprep.mubr.msk.f32.mxu1 %vm470_vm1, %v57_v24 }
  0x2b   :  { %1065 = vmatmul.mubr.msk.f32.gmra.mxu0 %vm470_vm1, %v58_v25 }
  0x2c   :  { %1091 = vmatmul.mubr.msk.f32.gmra.mxu1 %vm470_vm1, %v58_v25  ;;  %1067 = vmatprep.mubr.msk.f32.mxu0 %vm470_vm1, %v59_v26 }
  0x2d   :  { %1093 = vmatprep.mubr.msk.f32.mxu1 %vm470_vm1, %v59_v26 }
  0x2f   :  { %1068 = vmatmul.mubr.msk.f32.gmra.mxu0 %vm470_vm1, %v60_v27 }
  0x30   :  { %1094 = vmatmul.mubr.msk.f32.gmra.mxu1 %vm470_vm1, %v60_v27  ;;  %1070 = vmatprep.mubr.msk.f32.mxu0 %vm470_vm1, %v61_v28 }
  0x31   :  { %1096 = vmatprep.mubr.msk.f32.mxu1 %vm470_vm1, %v61_v28 }
  0x33   :  { %1071 = vmatmul.mubr.msk.f32.gmra.mxu0 %vm470_vm1, %v62_v29 }
  0x34   :  { %1097 = vmatmul.mubr.msk.f32.gmra.mxu1 %vm470_vm1, %v62_v29  ;;  %1073 = vmatprep.mubr.msk.f32.mxu0 %vm470_vm1, %v63_v30 }
  0x35   :  { %1099 = vmatprep.mubr.msk.f32.mxu1 %vm470_vm1, %v63_v30 }
  0x37   :  { %1074 = vmatmul.mubr.msk.f32.gmra.mxu0 %vm470_vm1, %v64_v31 }
  0x38   :  { %1100 = vmatmul.mubr.msk.f32.gmra.mxu1 %vm470_vm1, %v64_v31  ;;  %1076 = vmatprep.mubr.msk.f32.mxu0 %vm470_vm1, %v65_v32 }
  0x39   :  { %1102 = vmatprep.mubr.msk.f32.mxu1 %vm470_vm1, %v65_v32 }
  0x3b   :  { %1077 = vmatmul.mubr.msk.f32.gmra.mxu0 %vm470_vm1, %v66_v33 }
  0x3c   :  { %1103 = vmatmul.mubr.msk.f32.gmra.mxu1 %vm470_vm1, %v66_v33  ;;  %1079 = vmatprep.mubr.msk.f32.mxu0 %vm470_vm1, %v67_v34 }
  0x3d   :  { %1105 = vmatprep.mubr.msk.f32.mxu1 %vm470_vm1, %v67_v34 }
  0x3f   :  { %1080 = vmatmul.mubr.msk.f32.gmra.mxu0 %vm470_vm1, %v68_v35 }
  0x40   :  { %1106 = vmatmul.mubr.msk.f32.gmra.mxu1 %vm470_vm1, %v68_v35  ;;  %1082 = vmatprep.mubr.msk.f32.mxu0 %vm470_vm1, %v69_v36 }
  0x41   :  { %1108 = vmatprep.mubr.msk.f32.mxu1 %vm470_vm1, %v69_v36 }
  0x43   :  { %1083 = vmatmul.mubr.msk.f32.gmra.mxu0 %vm470_vm1, %v70_v37 }
  0x44   :  { %1109 = vmatmul.mubr.msk.f32.gmra.mxu1 %vm470_vm1, %v70_v37 }
  0xc7   :  { %v1009_v40 = vpop.f32.mrf.mxu0 }
  0xc8   :  { %v1037_v41 = vpop.f32.mrf.mxu1  ;;  %v201_v42 = vadd.f32 %v1009_v40, %v1362_v38  ;;  %v1514_v40 = vld [vmem:[%s1709_s7] ss:$0 sm:$0xff] }
  0xc9   :  { %v372_v43 = vadd.f32 %v1037_v41, %v1367_v39  ;;  %v195_v44 = vpop.f32.mrf.mxu0  ;;  %v1519_v41 = vld [vmem:[%s1710_s9] ss:$0 sm:$0xff] }
  0xca   :  { %v366_v45 = vpop.f32.mrf.mxu1  ;;  %276 = vst.msk [vmem:[%s1707_s10 + $0x8] sm:$0xff] %vm274_vm2, %v201_v42  ;;  %v196_v46 = vadd.f32 %v1362_v38, %v195_v44 }
  0xcb   :  { %447 = vst.msk [vmem:[%s1708_s11 + $0x8] sm:$0xff] %vm445_vm3, %v372_v43  ;;  %v367_v47 = vadd.f32 %v1367_v39, %v366_v45  ;;  %v1012_v48 = vpop.f32.mrf.mxu0 }
  0xcc   :  { %v1040_v49 = vpop.f32.mrf.mxu1  ;;  %275 = vst.msk [vmem:[%s1707_s10] sm:$0xff] %vm274_vm2, %v196_v46  ;;  %v211_v50 = vadd.f32 %v1012_v48, %v1362_v38 }
  0xcd   :  { %446 = vst.msk [vmem:[%s1708_s11] sm:$0xff] %vm445_vm3, %v367_v47  ;;  %v382_v51 = vadd.f32 %v1040_v49, %v1367_v39  ;;  %v205_v52 = vpop.f32.mrf.mxu0 }
  0xce   :  { %v376_v53 = vpop.f32.mrf.mxu1  ;;  %278 = vst.msk [vmem:[%s1707_s10 + $0x18] sm:$0xff] %vm274_vm2, %v211_v50  ;;  %v206_v54 = vadd.f32 %v1362_v38, %v205_v52 }
  0xcf   :  { %449 = vst.msk [vmem:[%s1708_s11 + $0x18] sm:$0xff] %vm445_vm3, %v382_v51  ;;  %v377_v55 = vadd.f32 %v1367_v39, %v376_v53  ;;  %v1015_v56 = vpop.f32.mrf.mxu0 }
  0xd0   :  { %v1043_v57 = vpop.f32.mrf.mxu1  ;;  %277 = vst.msk [vmem:[%s1707_s10 + $0x10] sm:$0xff] %vm274_vm2, %v206_v54  ;;  %v221_v58 = vadd.f32 %v1015_v56, %v1362_v38 }
  0xd1   :  { %448 = vst.msk [vmem:[%s1708_s11 + $0x10] sm:$0xff] %vm445_vm3, %v377_v55  ;;  %v392_v59 = vadd.f32 %v1043_v57, %v1367_v39  ;;  %v215_v60 = vpop.f32.mrf.mxu0 }
  0xd2   :  { %v386_v61 = vpop.f32.mrf.mxu1  ;;  %280 = vst.msk [vmem:[%s1707_s10 + $0x28] sm:$0xff] %vm274_vm2, %v221_v58  ;;  %v216_v62 = vadd.f32 %v1362_v38, %v215_v60 }
  0xd3   :  { %451 = vst.msk [vmem:[%s1708_s11 + $0x28] sm:$0xff] %vm445_vm3, %v392_v59  ;;  %v387_v63 = vadd.f32 %v1367_v39, %v386_v61  ;;  %v1018_v0 = vpop.f32.mrf.mxu0 }
  0xd4   :  { %v1046_v1 = vpop.f32.mrf.mxu1  ;;  %279 = vst.msk [vmem:[%s1707_s10 + $0x20] sm:$0xff] %vm274_vm2, %v216_v62  ;;  %v231_v2 = vadd.f32 %v1018_v0, %v1362_v38 }
  0xd5   :  { %450 = vst.msk [vmem:[%s1708_s11 + $0x20] sm:$0xff] %vm445_vm3, %v387_v63  ;;  %v402_v3 = vadd.f32 %v1046_v1, %v1367_v39  ;;  %v225_v4 = vpop.f32.mrf.mxu0 }
  0xd6   :  { %v396_v5 = vpop.f32.mrf.mxu1  ;;  %282 = vst.msk [vmem:[%s1707_s10 + $0x38] sm:$0xff] %vm274_vm2, %v231_v2  ;;  %v226_v6 = vadd.f32 %v1362_v38, %v225_v4 }
  0xd7   :  { %453 = vst.msk [vmem:[%s1708_s11 + $0x38] sm:$0xff] %vm445_vm3, %v402_v3  ;;  %v397_v7 = vadd.f32 %v1367_v39, %v396_v5  ;;  %v1021_v8 = vpop.f32.mrf.mxu0 }
  0xd8   :  { %v1049_v9 = vpop.f32.mrf.mxu1  ;;  %281 = vst.msk [vmem:[%s1707_s10 + $0x30] sm:$0xff] %vm274_vm2, %v226_v6  ;;  %v241_v10 = vadd.f32 %v1021_v8, %v1362_v38 }
  0xd9   :  { %452 = vst.msk [vmem:[%s1708_s11 + $0x30] sm:$0xff] %vm445_vm3, %v397_v7  ;;  %v412_v11 = vadd.f32 %v1049_v9, %v1367_v39  ;;  %v235_v12 = vpop.f32.mrf.mxu0 }
  0xda   :  { %v406_v13 = vpop.f32.mrf.mxu1  ;;  %284 = vst.msk [vmem:[%s1707_s10 + $0x48] sm:$0xff] %vm274_vm2, %v241_v10  ;;  %v236_v14 = vadd.f32 %v1362_v38, %v235_v12 }
  0xdb   :  { %455 = vst.msk [vmem:[%s1708_s11 + $0x48] sm:$0xff] %vm445_vm3, %v412_v11  ;;  %v407_v15 = vadd.f32 %v1367_v39, %v406_v13  ;;  %v1024_v16 = vpop.f32.mrf.mxu0 }
  0xdc   :  { %v1052_v17 = vpop.f32.mrf.mxu1  ;;  %283 = vst.msk [vmem:[%s1707_s10 + $0x40] sm:$0xff] %vm274_vm2, %v236_v14  ;;  %v251_v18 = vadd.f32 %v1024_v16, %v1362_v38 }
  0xdd   :  { %454 = vst.msk [vmem:[%s1708_s11 + $0x40] sm:$0xff] %vm445_vm3, %v407_v15  ;;  %v422_v19 = vadd.f32 %v1052_v17, %v1367_v39  ;;  %v245_v20 = vpop.f32.mrf.mxu0 }
  0xde   :  { %v416_v21 = vpop.f32.mrf.mxu1  ;;  %286 = vst.msk [vmem:[%s1707_s10 + $0x58] sm:$0xff] %vm274_vm2, %v251_v18  ;;  %v246_v22 = vadd.f32 %v1362_v38, %v245_v20 }
  0xdf   :  { %457 = vst.msk [vmem:[%s1708_s11 + $0x58] sm:$0xff] %vm445_vm3, %v422_v19  ;;  %v417_v23 = vadd.f32 %v1367_v39, %v416_v21  ;;  %v1027_v24 = vpop.f32.mrf.mxu0 }
  0xe0   :  { %v1055_v25 = vpop.f32.mrf.mxu1  ;;  %285 = vst.msk [vmem:[%s1707_s10 + $0x50] sm:$0xff] %vm274_vm2, %v246_v22  ;;  %v261_v26 = vadd.f32 %v1027_v24, %v1362_v38 }
  0xe1   :  { %456 = vst.msk [vmem:[%s1708_s11 + $0x50] sm:$0xff] %vm445_vm3, %v417_v23  ;;  %v432_v27 = vadd.f32 %v1055_v25, %v1367_v39  ;;  %v255_v28 = vpop.f32.mrf.mxu0 }
  0xe2   :  { %v426_v29 = vpop.f32.mrf.mxu1  ;;  %288 = vst.msk [vmem:[%s1707_s10 + $0x68] sm:$0xff] %vm274_vm2, %v261_v26  ;;  %v256_v30 = vadd.f32 %v1362_v38, %v255_v28 }
  0xe3   :  { %459 = vst.msk [vmem:[%s1708_s11 + $0x68] sm:$0xff] %vm445_vm3, %v432_v27  ;;  %v427_v31 = vadd.f32 %v1367_v39, %v426_v29  ;;  %v1030_v32 = vpop.f32.mrf.mxu0 }
  0xe4   :  { %v1058_v33 = vpop.f32.mrf.mxu1  ;;  %287 = vst.msk [vmem:[%s1707_s10 + $0x60] sm:$0xff] %vm274_vm2, %v256_v30  ;;  %v271_v34 = vadd.f32 %v1030_v32, %v1362_v38 }
  0xe5   :  { %458 = vst.msk [vmem:[%s1708_s11 + $0x60] sm:$0xff] %vm445_vm3, %v427_v31  ;;  %v442_v35 = vadd.f32 %v1058_v33, %v1367_v39  ;;  %v265_v36 = vpop.f32.mrf.mxu0 }
  0xe6   :  { %v436_v37 = vpop.f32.mrf.mxu1  ;;  %290 = vst.msk [vmem:[%s1707_s10 + $0x78] sm:$0xff] %vm274_vm2, %v271_v34  ;;  %v266_v42 = vadd.f32 %v1362_v38, %v265_v36 }
  0xe7   :  { %461 = vst.msk [vmem:[%s1708_s11 + $0x78] sm:$0xff] %vm445_vm3, %v442_v35  ;;  %v437_v43 = vadd.f32 %v1367_v39, %v436_v37  ;;  %v1063_v44 = vpop.f32.mrf.mxu0 }
  0xe8   :  { %v1089_v45 = vpop.f32.mrf.mxu1  ;;  %289 = vst.msk [vmem:[%s1707_s10 + $0x70] sm:$0xff] %vm274_vm2, %v266_v42  ;;  %v591_v46 = vadd.f32 %v1063_v44, %v1514_v40 }
  0xe9   :  { %460 = vst.msk [vmem:[%s1708_s11 + $0x70] sm:$0xff] %vm445_vm3, %v437_v43  ;;  %v760_v47 = vadd.f32 %v1089_v45, %v1519_v41  ;;  %v585_v48 = vpop.f32.mrf.mxu0 }
  0xea   :  { %v754_v38 = vpop.f32.mrf.mxu1  ;;  %665 = vst.msk [vmem:[%s1711_s12 + $0x8] sm:$0xff] %vm445_vm3, %v591_v46  ;;  %v586_v39 = vadd.f32 %v1514_v40, %v585_v48 }
  0xeb   :  { %834 = vst.msk [vmem:[%s1712_s13 + $0x8] sm:$0xff] %vm445_vm3, %v760_v47  ;;  %v755_v49 = vadd.f32 %v1519_v41, %v754_v38  ;;  %v1066_v50 = vpop.f32.mrf.mxu0 }
  0xec   :  { %v1092_v51 = vpop.f32.mrf.mxu1  ;;  %664 = vst.msk [vmem:[%s1711_s12] sm:$0xff] %vm445_vm3, %v586_v39  ;;  %v601_v52 = vadd.f32 %v1066_v50, %v1514_v40 }
  0xed   :  { %833 = vst.msk [vmem:[%s1712_s13] sm:$0xff] %vm445_vm3, %v755_v49  ;;  %v770_v53 = vadd.f32 %v1092_v51, %v1519_v41  ;;  %v595_v54 = vpop.f32.mrf.mxu0 }
  0xee   :  { %v764_v55 = vpop.f32.mrf.mxu1  ;;  %667 = vst.msk [vmem:[%s1711_s12 + $0x18] sm:$0xff] %vm445_vm3, %v601_v52  ;;  %v596_v56 = vadd.f32 %v1514_v40, %v595_v54 }
  0xef   :  { %836 = vst.msk [vmem:[%s1712_s13 + $0x18] sm:$0xff] %vm445_vm3, %v770_v53  ;;  %v765_v57 = vadd.f32 %v1519_v41, %v764_v55  ;;  %v1069_v58 = vpop.f32.mrf.mxu0 }
  0xf0   :  { %v1095_v59 = vpop.f32.mrf.mxu1  ;;  %666 = vst.msk [vmem:[%s1711_s12 + $0x10] sm:$0xff] %vm445_vm3, %v596_v56  ;;  %v611_v60 = vadd.f32 %v1069_v58, %v1514_v40 }
  0xf1   :  { %835 = vst.msk [vmem:[%s1712_s13 + $0x10] sm:$0xff] %vm445_vm3, %v765_v57  ;;  %v780_v61 = vadd.f32 %v1095_v59, %v1519_v41  ;;  %v605_v62 = vpop.f32.mrf.mxu0 }
  0xf2   :  { %v774_v63 = vpop.f32.mrf.mxu1  ;;  %669 = vst.msk [vmem:[%s1711_s12 + $0x28] sm:$0xff] %vm445_vm3, %v611_v60  ;;  %v606_v0 = vadd.f32 %v1514_v40, %v605_v62 }
  0xf3   :  { %838 = vst.msk [vmem:[%s1712_s13 + $0x28] sm:$0xff] %vm445_vm3, %v780_v61  ;;  %v775_v1 = vadd.f32 %v1519_v41, %v774_v63  ;;  %v1072_v2 = vpop.f32.mrf.mxu0 }
  0xf4   :  { %v1098_v3 = vpop.f32.mrf.mxu1  ;;  %668 = vst.msk [vmem:[%s1711_s12 + $0x20] sm:$0xff] %vm445_vm3, %v606_v0  ;;  %v621_v4 = vadd.f32 %v1072_v2, %v1514_v40 }
  0xf5   :  { %837 = vst.msk [vmem:[%s1712_s13 + $0x20] sm:$0xff] %vm445_vm3, %v775_v1  ;;  %v790_v5 = vadd.f32 %v1098_v3, %v1519_v41  ;;  %v615_v6 = vpop.f32.mrf.mxu0 }
  0xf6   :  { %v784_v7 = vpop.f32.mrf.mxu1  ;;  %671 = vst.msk [vmem:[%s1711_s12 + $0x38] sm:$0xff] %vm445_vm3, %v621_v4  ;;  %v616_v8 = vadd.f32 %v1514_v40, %v615_v6 }
  0xf7   :  { %840 = vst.msk [vmem:[%s1712_s13 + $0x38] sm:$0xff] %vm445_vm3, %v790_v5  ;;  %v785_v9 = vadd.f32 %v1519_v41, %v784_v7  ;;  %v1075_v10 = vpop.f32.mrf.mxu0 }
  0xf8   :  { %v1101_v11 = vpop.f32.mrf.mxu1  ;;  %670 = vst.msk [vmem:[%s1711_s12 + $0x30] sm:$0xff] %vm445_vm3, %v616_v8  ;;  %v631_v12 = vadd.f32 %v1075_v10, %v1514_v40 }
  0xf9   :  { %839 = vst.msk [vmem:[%s1712_s13 + $0x30] sm:$0xff] %vm445_vm3, %v785_v9  ;;  %v800_v13 = vadd.f32 %v1101_v11, %v1519_v41  ;;  %v625_v14 = vpop.f32.mrf.mxu0 }
  0xfa   :  { %v794_v15 = vpop.f32.mrf.mxu1  ;;  %673 = vst.msk [vmem:[%s1711_s12 + $0x48] sm:$0xff] %vm445_vm3, %v631_v12  ;;  %v626_v16 = vadd.f32 %v1514_v40, %v625_v14 }
  0xfb   :  { %842 = vst.msk [vmem:[%s1712_s13 + $0x48] sm:$0xff] %vm445_vm3, %v800_v13  ;;  %v795_v17 = vadd.f32 %v1519_v41, %v794_v15  ;;  %v1078_v18 = vpop.f32.mrf.mxu0 }
  0xfc   :  { %v1104_v19 = vpop.f32.mrf.mxu1  ;;  %672 = vst.msk [vmem:[%s1711_s12 + $0x40] sm:$0xff] %vm445_vm3, %v626_v16  ;;  %v641_v20 = vadd.f32 %v1078_v18, %v1514_v40 }
  0xfd   :  { %841 = vst.msk [vmem:[%s1712_s13 + $0x40] sm:$0xff] %vm445_vm3, %v795_v17  ;;  %v810_v21 = vadd.f32 %v1104_v19, %v1519_v41  ;;  %v635_v22 = vpop.f32.mrf.mxu0 }
  0xfe   :  { %v804_v23 = vpop.f32.mrf.mxu1  ;;  %675 = vst.msk [vmem:[%s1711_s12 + $0x58] sm:$0xff] %vm445_vm3, %v641_v20  ;;  %v636_v24 = vadd.f32 %v1514_v40, %v635_v22 }
  0xff   :  { %844 = vst.msk [vmem:[%s1712_s13 + $0x58] sm:$0xff] %vm445_vm3, %v810_v21  ;;  %v805_v25 = vadd.f32 %v1519_v41, %v804_v23  ;;  %v1081_v26 = vpop.f32.mrf.mxu0 }
 0x100   :  { %v1107_v27 = vpop.f32.mrf.mxu1  ;;  %674 = vst.msk [vmem:[%s1711_s12 + $0x50] sm:$0xff] %vm445_vm3, %v636_v24  ;;  %v651_v28 = vadd.f32 %v1081_v26, %v1514_v40 }
 0x101   :  { %843 = vst.msk [vmem:[%s1712_s13 + $0x50] sm:$0xff] %vm445_vm3, %v805_v25  ;;  %v820_v29 = vadd.f32 %v1107_v27, %v1519_v41  ;;  %v645_v30 = vpop.f32.mrf.mxu0 }
 0x102   :  { %v814_v31 = vpop.f32.mrf.mxu1  ;;  %677 = vst.msk [vmem:[%s1711_s12 + $0x68] sm:$0xff] %vm445_vm3, %v651_v28  ;;  %v646_v32 = vadd.f32 %v1514_v40, %v645_v30 }
 0x103   :  { %846 = vst.msk [vmem:[%s1712_s13 + $0x68] sm:$0xff] %vm445_vm3, %v820_v29  ;;  %v815_v33 = vadd.f32 %v1519_v41, %v814_v31  ;;  %v1084_v34 = vpop.f32.mrf.mxu0 }
 0x104   :  { %v1110_v35 = vpop.f32.mrf.mxu1  ;;  %676 = vst.msk [vmem:[%s1711_s12 + $0x60] sm:$0xff] %vm445_vm3, %v646_v32  ;;  %v661_v36 = vadd.f32 %v1084_v34, %v1514_v40 }
 0x105   :  { %845 = vst.msk [vmem:[%s1712_s13 + $0x60] sm:$0xff] %vm445_vm3, %v815_v33  ;;  %v830_v37 = vadd.f32 %v1110_v35, %v1519_v41  ;;  %v655_v42 = vpop.f32.mrf.mxu0 }
 0x106   :  { %v824_v43 = vpop.f32.mrf.mxu1  ;;  %679 = vst.msk [vmem:[%s1711_s12 + $0x78] sm:$0xff] %vm445_vm3, %v661_v36  ;;  %v656_v44 = vadd.f32 %v1514_v40, %v655_v42 }
 0x107   :  { %848 = vst.msk [vmem:[%s1712_s13 + $0x78] sm:$0xff] %vm445_vm3, %v830_v37  ;;  %v825_v45 = vadd.f32 %v1519_v41, %v824_v43 }
 0x108   :  { %678 = vst.msk [vmem:[%s1711_s12 + $0x70] sm:$0xff] %vm445_vm3, %v656_v44 }
 0x109   :  { %847 = vst.msk [vmem:[%s1712_s13 + $0x70] sm:$0xff] %vm445_vm3, %v825_v45 }

// kernel: order_courier_forward.5
= control target key start
LH: loop header
LB: loop body
LE: loop exit
PB: predicated region body
PF: predicated region fallthrough
CT: control target
= control target key end

     0   :  { %v1748_v0 = vmov 0   ;;  %s2248_s0 = inlined_call_operand.vmem [shape: s32[128,1], index: 0, kind: input, shape index: {}]   ;;  %s2249_s1 = inlined_call_operand.vmem [shape: s32[128,1], index: 1, kind: input, shape index: {}]   ;;  %s2250_s8 = inlined_call_operand.<no memory space> [shape: f32[1,1], index: 8, kind: input, shape index: {}]   ;;  %s2251_s2 = inlined_call_operand.vmem [shape: f32[128,32], index: 2, kind: input, shape index: {}]   ;;  %s2252_s3 = inlined_call_operand.vmem [shape: f32[128,32], index: 3, kind: input, shape index: {}]   ;;  %s2253_s4 = inlined_call_operand.vmem [shape: f32[32,128], index: 4, kind: input, shape index: {}]   ;;  %s2254_s5 = inlined_call_operand.vmem [shape: f32[32,128], index: 5, kind: input, shape index: {}]   ;;  %s2255_s6 = inlined_call_operand.vmem [shape: f32[1,128], index: 6, kind: input, shape index: {}]   ;;  %s2256_s7 = inlined_call_operand.vmem [shape: f32[1,128], index: 7, kind: input, shape index: {}]   ;;  %s2257_s9 = inlined_call_operand.vmem [shape: f32[1,128], index: 9, kind: output, shape index: {}]  }
   0x1   :  { %1747 = vset.pattern.permute.xlu1 %v1748_v0  ;;  %1746 = vset.pattern.permute.xlu0 %v1748_v0  ;;  %v37_v1 = vld [vmem:[%s2248_s0 + $0x8] sm:$0xff]  ;;  %v36_v2 = vld [vmem:[%s2248_s0] sm:$0xff]  ;;  %v14_v3 = vstv %s2250_s8  ;;  %v150_v6 = vld [vmem:[%s2249_s1 + $0x10] sm:$0xff] }
   0x2   :  { %56 = vperm.xlu1 %1747, %v37_v1   ;;  %53 = vperm.xlu0 %1746, %v36_v2   ;;  %15 = vst [vmem:[#allocation2] sm:$0x1] %v14_v3  ;;  %v149_v4 = vld [vmem:[%s2249_s1 + $0x8] sm:$0xff]  ;;  %v148_v5 = vld [vmem:[%s2249_s1] sm:$0xff]  ;;  %v38_v7 = vld [vmem:[%s2248_s0 + $0x10] sm:$0xff] }
   0x3   :  { %v151_v8 = vld [vmem:[%s2249_s1 + $0x18] sm:$0xff]  ;;  %v274_v11 = vld [vmem:[%s2251_s2 + $0x70] sm:$0xff]  ;;  %v152_v14 = vld [vmem:[%s2249_s1 + $0x20] sm:$0xff] }
   0x4   :  { %v39_v9 = vld [vmem:[%s2248_s0 + $0x18] sm:$0xff]  ;;  %v435_v13 = vld [vmem:[%s2252_s3 + $0x70] sm:$0xff]  ;;  %v40_v15 = vld [vmem:[%s2248_s0 + $0x20] sm:$0xff] }
   0x5   :  { %v275_v10 = vld [vmem:[%s2251_s2 + $0x78] sm:$0xff]  ;;  %v273_v16 = vld [vmem:[%s2251_s2 + $0x68] sm:$0xff]  ;;  %v272_v18 = vld [vmem:[%s2251_s2 + $0x60] sm:$0xff] }
   0x6   :  { %168 = vperm.xlu1 %1747, %v149_v4   ;;  %165 = vperm.xlu0 %1746, %v148_v5   ;;  %v436_v12 = vld [vmem:[%s2252_s3 + $0x78] sm:$0xff]  ;;  %v434_v17 = vld [vmem:[%s2252_s3 + $0x68] sm:$0xff]  ;;  %v433_v21 = vld [vmem:[%s2252_s3 + $0x60] sm:$0xff]  ;;  %v34_v4 = vlaneseq }
   0x7   :  { %1495 = vmatprep.subr.mxu0 %v275_v10  ;;  %1551 = vmatprep.subr.mxu1 %v436_v12  ;;  %v153_v19 = vld [vmem:[%s2249_s1 + $0x28] sm:$0xff]  ;;  %v271_v22 = vld [vmem:[%s2251_s2 + $0x58] sm:$0xff]  ;;  %v154_v24 = vld [vmem:[%s2249_s1 + $0x30] sm:$0xff] }
   0x8   :  { %1496 = vmatpush3.msra.mxu0 %v275_v10  ;;  %1552 = vmatpush3.msra.mxu1 %v436_v12  ;;  %v41_v20 = vld [vmem:[%s2248_s0 + $0x28] sm:$0xff]  ;;  %v432_v23 = vld [vmem:[%s2252_s3 + $0x58] sm:$0xff]  ;;  %v42_v25 = vld [vmem:[%s2248_s0 + $0x30] sm:$0xff]  ;;  %v2002_v5 = vand.u32 127, %v34_v4 }
   0x9   :  { %1497 = vmatprep.subr.mxu0 %v274_v11  ;;  %1553 = vmatprep.subr.mxu1 %v435_v13  ;;  %v270_v26 = vld [vmem:[%s2251_s2 + $0x50] sm:$0xff]  ;;  %v269_v28 = vld [vmem:[%s2251_s2 + $0x48] sm:$0xff]  ;;  %v155_v29 = vld [vmem:[%s2249_s1 + $0x38] sm:$0xff] }
   0xa   :  { %171 = vperm.xlu1 %1747, %v150_v6   ;;  %59 = vperm.xlu0 %1746, %v38_v7   ;;  %v431_v27 = vld [vmem:[%s2252_s3 + $0x50] sm:$0xff]  ;;  %v43_v30 = vld [vmem:[%s2248_s0 + $0x38] sm:$0xff]  ;;  %v430_v31 = vld [vmem:[%s2252_s3 + $0x48] sm:$0xff] }
   0xb   :  { %1498 = vmatpush3.msra.mxu0 %v274_v11  ;;  %1554 = vmatpush3.msra.mxu1 %v435_v13  ;;  %v268_v32 = vld [vmem:[%s2251_s2 + $0x40] sm:$0xff]  ;;  %v267_v36 = vld [vmem:[%s2251_s2 + $0x38] sm:$0xff]  ;;  %v266_v38 = vld [vmem:[%s2251_s2 + $0x30] sm:$0xff] }
   0xc   :  { %1499 = vmatprep.subr.mxu0 %v273_v16  ;;  %1555 = vmatprep.subr.mxu1 %v434_v17  ;;  %v429_v33 = vld [vmem:[%s2252_s3 + $0x40] sm:$0xff]  ;;  %v428_v37 = vld [vmem:[%s2252_s3 + $0x38] sm:$0xff]  ;;  %v157_v39 = vld [vmem:[%s2249_s1 + $0x48] sm:$0xff] }
   0xd   :  { %1500 = vmatpush3.msra.mxu0 %v273_v16  ;;  %1556 = vmatpush3.msra.mxu1 %v434_v17  ;;  %v156_v34 = vld [vmem:[%s2249_s1 + $0x40] sm:$0xff]  ;;  %v45_v40 = vld [vmem:[%s2248_s0 + $0x48] sm:$0xff]  ;;  %v427_v41 = vld [vmem:[%s2252_s3 + $0x30] sm:$0xff] }
   0xe   :  { %174 = vperm.xlu1 %1747, %v151_v8   ;;  %62 = vperm.xlu0 %1746, %v39_v9   ;;  %v44_v35 = vld [vmem:[%s2248_s0 + $0x40] sm:$0xff]  ;;  %v265_v42 = vld [vmem:[%s2251_s2 + $0x28] sm:$0xff]  ;;  %v158_v44 = vld [vmem:[%s2249_s1 + $0x50] sm:$0xff]  ;;  %v1749_v8 = vmov 1.0  }
   0xf   :  { %1501 = vmatprep.subr.mxu0 %v272_v18  ;;  %1557 = vmatprep.subr.mxu1 %v433_v21  ;;  %v426_v43 = vld [vmem:[%s2252_s3 + $0x28] sm:$0xff]  ;;  %v46_v45 = vld [vmem:[%s2248_s0 + $0x50] sm:$0xff]  ;;  %v264_v46 = vld [vmem:[%s2251_s2 + $0x20] sm:$0xff] }
  0x10   :  { %1502 = vmatpush3.msra.mxu0 %v272_v18  ;;  %1558 = vmatpush3.msra.mxu1 %v433_v21  ;;  %v425_v47 = vld [vmem:[%s2252_s3 + $0x20] sm:$0xff]  ;;  %v263_v48 = vld [vmem:[%s2251_s2 + $0x18] sm:$0xff]  ;;  %v262_v52 = vld [vmem:[%s2251_s2 + $0x10] sm:$0xff] }
  0x11   :  { %1503 = vmatprep.subr.mxu0 %v271_v22  ;;  %1559 = vmatprep.subr.mxu1 %v432_v23  ;;  %v159_v49 = vld [vmem:[%s2249_s1 + $0x58] sm:$0xff]  ;;  %v423_v53 = vld [vmem:[%s2252_s3 + $0x10] sm:$0xff]  ;;  %v160_v54 = vld [vmem:[%s2249_s1 + $0x60] sm:$0xff] }
  0x12   :  { %177 = vperm.xlu1 %1747, %v152_v14   ;;  %65 = vperm.xlu0 %1746, %v40_v15   ;;  %v47_v50 = vld [vmem:[%s2248_s0 + $0x58] sm:$0xff]  ;;  %v48_v55 = vld [vmem:[%s2248_s0 + $0x60] sm:$0xff]  ;;  %v261_v56 = vld [vmem:[%s2251_s2 + $0x8] sm:$0xff] }
  0x13   :  { %1504 = vmatpush3.msra.mxu0 %v271_v22  ;;  %1560 = vmatpush3.msra.mxu1 %v432_v23  ;;  %v424_v51 = vld [vmem:[%s2252_s3 + $0x18] sm:$0xff]  ;;  %v422_v57 = vld [vmem:[%s2252_s3 + $0x8] sm:$0xff]  ;;  %v260_v58 = vld [vmem:[%s2251_s2] sm:$0xff] }
  0x14   :  { %1505 = vmatprep.subr.mxu0 %v270_v26  ;;  %1561 = vmatprep.subr.mxu1 %v431_v27  ;;  %v161_v59 = vld [vmem:[%s2249_s1 + $0x68] sm:$0xff]  ;;  %v421_v61 = vld [vmem:[%s2252_s3] sm:$0xff]  ;;  %v162_v62 = vld [vmem:[%s2249_s1 + $0x70] sm:$0xff] }
  0x15   :  { %1506 = vmatpush3.msra.mxu0 %v270_v26  ;;  %1562 = vmatpush3.msra.mxu1 %v431_v27  ;;  %v49_v60 = vld [vmem:[%s2248_s0 + $0x68] sm:$0xff]  ;;  %v50_v63 = vld [vmem:[%s2248_s0 + $0x70] sm:$0xff]  ;;  %v163_v0 = vld [vmem:[%s2249_s1 + $0x78] sm:$0xff] }
  0x16   :  { %180 = vperm.xlu1 %1747, %v153_v19   ;;  %68 = vperm.xlu0 %1746, %v41_v20   ;;  %v51_v1 = vld [vmem:[%s2248_s0 + $0x78] sm:$0xff]  ;;  %v1224_v2 = vld [vmem:[#allocation2] sm:$0x1]  ;;  %v600_v11 = vld [vmem:[%s2253_s4 + $0x10] sm:$0xff] }
  0x17   :  { %1507 = vmatprep.subr.mxu0 %v269_v28  ;;  %1563 = vmatprep.subr.mxu1 %v430_v31  ;;  %v601_v3 = vld [vmem:[%s2253_s4 + $0x18] sm:$0xff] }
  0x18   :  { %1508 = vmatpush3.msra.mxu0 %v269_v28  ;;  %1564 = vmatpush3.msra.mxu1 %v430_v31 }
  0x19   :  { %1509 = vmatprep.subr.mxu0 %v268_v32  ;;  %1565 = vmatprep.subr.mxu1 %v429_v33 }
  0x1a   :  { %183 = vperm.xlu1 %1747, %v154_v24   ;;  %71 = vperm.xlu0 %1746, %v42_v25  }
  0x1b   :  { %1510 = vmatpush3.msra.mxu0 %v268_v32  ;;  %1566 = vmatpush3.msra.mxu1 %v429_v33 }
  0x1c   :  { %1511 = vmatprep.subr.mxu0 %v267_v36  ;;  %1567 = vmatprep.subr.mxu1 %v428_v37 }
  0x1d   :  { %1512 = vmatpush3.msra.mxu0 %v267_v36  ;;  %1568 = vmatpush3.msra.mxu1 %v428_v37 }
  0x1e   :  { %186 = vperm.xlu1 %1747, %v155_v29   ;;  %74 = vperm.xlu0 %1746, %v43_v30  }
  0x1f   :  { %1513 = vmatprep.subr.mxu0 %v266_v38  ;;  %1569 = vmatprep.subr.mxu1 %v427_v41 }
  0x20   :  { %1514 = vmatpush3.msra.mxu0 %v266_v38  ;;  %1570 = vmatpush3.msra.mxu1 %v427_v41  ;;  %v599_v41 = vld [vmem:[%s2253_s4 + $0x8] sm:$0xff] }
  0x21   :  { %1515 = vmatprep.subr.mxu0 %v265_v42  ;;  %1571 = vmatprep.subr.mxu1 %v426_v43 }
  0x22   :  { %189 = vperm.xlu1 %1747, %v156_v34   ;;  %77 = vperm.xlu0 %1746, %v44_v35  }
  0x23   :  { %1516 = vmatpush3.msra.mxu0 %v265_v42  ;;  %1572 = vmatpush3.msra.mxu1 %v426_v43  ;;  %v604_v42 = vld [vmem:[%s2254_s5 + $0x10] sm:$0xff]  ;;  %v598_v43 = vld [vmem:[%s2253_s4] sm:$0xff] }
  0x24   :  { %1517 = vmatprep.subr.mxu0 %v264_v46  ;;  %1573 = vmatprep.subr.mxu1 %v425_v47 }
  0x25   :  { %1518 = vmatpush3.msra.mxu0 %v264_v46  ;;  %1574 = vmatpush3.msra.mxu1 %v425_v47  ;;  %v1750_v46 = vmov 0.0  }
  0x26   :  { %192 = vperm.xlu1 %1747, %v157_v39   ;;  %80 = vperm.xlu0 %1746, %v45_v40   ;;  %v605_v40 = vld [vmem:[%s2254_s5 + $0x18] sm:$0xff] }
  0x27   :  { %1519 = vmatprep.subr.mxu0 %v263_v48  ;;  %1575 = vmatprep.subr.mxu1 %v424_v51 }
  0x28   :  { %1520 = vmatpush3.msra.mxu0 %v263_v48  ;;  %1576 = vmatpush3.msra.mxu1 %v424_v51 }
  0x29   :  { %1521 = vmatprep.subr.mxu0 %v262_v52  ;;  %1577 = vmatprep.subr.mxu1 %v423_v53 }
  0x2a   :  { %195 = vperm.xlu1 %1747, %v158_v44   ;;  %83 = vperm.xlu0 %1746, %v46_v45   ;;  %v603_v44 = vld [vmem:[%s2254_s5 + $0x8] sm:$0xff]  ;;  %v602_v45 = vld [vmem:[%s2254_s5] sm:$0xff] }
  0x2b   :  { %1522 = vmatpush3.msra.mxu0 %v262_v52  ;;  %1578 = vmatpush3.msra.mxu1 %v423_v53 }
  0x2c   :  { %1523 = vmatprep.subr.mxu0 %v261_v56  ;;  %1579 = vmatprep.subr.mxu1 %v422_v57 }
  0x2d   :  { %1524 = vmatpush3.msra.mxu0 %v261_v56  ;;  %1580 = vmatpush3.msra.mxu1 %v422_v57 }
  0x2e   :  { %198 = vperm.xlu1 %1747, %v159_v49   ;;  %86 = vperm.xlu0 %1746, %v47_v50  }
  0x2f   :  { %1525 = vmatprep.subr.mxu0 %v260_v58  ;;  %1581 = vmatprep.subr.mxu1 %v421_v61 }
  0x30   :  { %1526 = vmatpush3.msra.mxu0 %v260_v58  ;;  %1582 = vmatpush3.msra.mxu1 %v421_v61 }
  0x31   :  { %1639 = vmatprep.subr.mxu1 %v601_v3  ;;  %1607 = vmatprep.subr.mxu0 %v605_v40 }
  0x32   :  { %201 = vperm.xlu1 %1747, %v160_v54   ;;  %89 = vperm.xlu0 %1746, %v48_v55  }
  0x36   :  { %204 = vperm.xlu1 %1747, %v161_v59   ;;  %92 = vperm.xlu0 %1746, %v49_v60  }
  0x3a   :  { %207 = vperm.xlu1 %1747, %v162_v62   ;;  %95 = vperm.xlu0 %1746, %v50_v63  }
  0x3e   :  { %210 = vperm.xlu1 %1747, %v163_v0   ;;  %98 = vperm.xlu0 %1746, %v51_v1  }
  0x42   :  { %1227 = vperm.xlu0 %1746, %v1224_v2  }
  0x7d   :  { %v57_v6 = vpop.permute.xlu1 %56  ;;  %v54_v7 = vpop.permute.xlu0 %53 }
  0x7e   :  { %vm101_vm0 = vcmp.eq.s32.totalorder %v2002_v5, %v57_v6  ;;  %vm100_vm1 = vcmp.eq.s32.totalorder %v2002_v5, %v54_v7 }
  0x7f   :  { %1527 = vmatprep.mubr.msk.f32.mxu0 %vm100_vm1, %v1749_v8 }
  0x80   :  { %1528 = vmatmul.mubr.msk.f32.vlgmr.msra.gmra.mxu0 %vm101_vm0, %v1749_v8 }
  0x81   :  { %v169_v9 = vpop.permute.xlu1 %168  ;;  %v166_v10 = vpop.permute.xlu0 %165  ;;  %1608 = vmatpush3.msra.mxu0 %v605_v40 }
  0x82   :  { %vm213_vm2 = vcmp.eq.s32.totalorder %v2002_v5, %v169_v9  ;;  %vm212_vm3 = vcmp.eq.s32.totalorder %v2002_v5, %v166_v10  ;;  %1609 = vmatprep.subr.mxu0 %v604_v42 }
  0x83   :  { %1583 = vmatprep.mubr.msk.f32.mxu1 %vm212_vm3, %v1749_v8  ;;  %1610 = vmatpush3.msra.mxu0 %v604_v42 }
  0x84   :  { %1584 = vmatmul.mubr.msk.f32.vlgmr.msra.gmra.mxu1 %vm213_vm2, %v1749_v8  ;;  %1611 = vmatprep.subr.mxu0 %v603_v44 }
  0x85   :  { %v172_v12 = vpop.permute.xlu1 %171  ;;  %v60_v13 = vpop.permute.xlu0 %59  ;;  %1640 = vmatpush3.msra.mxu1 %v601_v3  ;;  %1612 = vmatpush3.msra.mxu0 %v603_v44 }
  0x86   :  { %vm214_vm4 = vcmp.eq.s32.totalorder %v2002_v5, %v172_v12  ;;  %vm102_vm5 = vcmp.eq.s32.totalorder %v2002_v5, %v60_v13  ;;  %1641 = vmatprep.subr.mxu1 %v600_v11  ;;  %1613 = vmatprep.subr.mxu0 %v602_v45 }
  0x87   :  { %1530 = vmatprep.mubr.msk.f32.mxu0 %vm102_vm5, %v1749_v8  ;;  %1586 = vmatprep.mubr.msk.f32.mxu1 %vm214_vm4, %v1749_v8 }
  0x88   :  { %1642 = vmatpush3.msra.mxu1 %v600_v11  ;;  %1614 = vmatpush3.msra.mxu0 %v602_v45 }
  0x89   :  { %v175_v14 = vpop.permute.xlu1 %174  ;;  %v63_v15 = vpop.permute.xlu0 %62  ;;  %1643 = vmatprep.subr.mxu1 %v599_v41  ;;  %1671 = vmatprep.subr.mxu0 %v1750_v46 }
  0x8a   :  { %vm215_vm6 = vcmp.eq.s32.totalorder %v2002_v5, %v175_v14  ;;  %vm103_vm7 = vcmp.eq.s32.totalorder %v2002_v5, %v63_v15  ;;  %1644 = vmatpush3.msra.mxu1 %v599_v41 }
  0x8b   :  { %1531 = vmatmul.mubr.msk.f32.gmra.mxu0 %vm103_vm7, %v1749_v8  ;;  %1587 = vmatmul.mubr.msk.f32.gmra.mxu1 %vm215_vm6, %v1749_v8 }
  0x8c   :  { %1645 = vmatprep.subr.mxu1 %v598_v43 }
  0x8d   :  { %v178_v16 = vpop.permute.xlu1 %177  ;;  %v66_v17 = vpop.permute.xlu0 %65  ;;  %1646 = vmatpush3.msra.mxu1 %v598_v43 }
  0x8e   :  { %vm216_vm8 = vcmp.eq.s32.totalorder %v2002_v5, %v178_v16  ;;  %vm104_vm9 = vcmp.eq.s32.totalorder %v2002_v5, %v66_v17  ;;  %1706 = vmatprep.subr.mxu1 %v1750_v46 }
  0x8f   :  { %1533 = vmatprep.mubr.msk.f32.mxu0 %vm104_vm9, %v1749_v8  ;;  %1589 = vmatprep.mubr.msk.f32.mxu1 %vm216_vm8, %v1749_v8 }
  0x91   :  { %v181_v18 = vpop.permute.xlu1 %180  ;;  %v69_v19 = vpop.permute.xlu0 %68 }
  0x92   :  { %vm217_vm10 = vcmp.eq.s32.totalorder %v2002_v5, %v181_v18  ;;  %vm105_vm11 = vcmp.eq.s32.totalorder %v2002_v5, %v69_v19 }
  0x93   :  { %1534 = vmatmul.mubr.msk.f32.gmra.mxu0 %vm105_vm11, %v1749_v8  ;;  %1590 = vmatmul.mubr.msk.f32.gmra.mxu1 %vm217_vm10, %v1749_v8 }
  0x95   :  { %v184_v20 = vpop.permute.xlu1 %183  ;;  %v72_v21 = vpop.permute.xlu0 %71 }
  0x96   :  { %vm218_vm12 = vcmp.eq.s32.totalorder %v2002_v5, %v184_v20  ;;  %vm106_vm13 = vcmp.eq.s32.totalorder %v2002_v5, %v72_v21 }
  0x97   :  { %1536 = vmatprep.mubr.msk.f32.mxu0 %vm106_vm13, %v1749_v8  ;;  %1592 = vmatprep.mubr.msk.f32.mxu1 %vm218_vm12, %v1749_v8 }
  0x99   :  { %v187_v22 = vpop.permute.xlu1 %186  ;;  %v75_v23 = vpop.permute.xlu0 %74 }
  0x9a   :  { %vm219_vm14 = vcmp.eq.s32.totalorder %v2002_v5, %v187_v22  ;;  %vm107_vm15 = vcmp.eq.s32.totalorder %v2002_v5, %v75_v23 }
  0x9b   :  { %1537 = vmatmul.mubr.msk.f32.gmra.mxu0 %vm107_vm15, %v1749_v8  ;;  %1593 = vmatmul.mubr.msk.f32.gmra.mxu1 %vm219_vm14, %v1749_v8 }
  0x9d   :  { %v190_v24 = vpop.permute.xlu1 %189  ;;  %v78_v25 = vpop.permute.xlu0 %77 }
  0x9e   :  { %vm220_vm0 = vcmp.eq.s32.totalorder %v2002_v5, %v190_v24  ;;  %vm108_vm1 = vcmp.eq.s32.totalorder %v2002_v5, %v78_v25 }
  0x9f   :  { %1539 = vmatprep.mubr.msk.f32.mxu0 %vm108_vm1, %v1749_v8  ;;  %1595 = vmatprep.mubr.msk.f32.mxu1 %vm220_vm0, %v1749_v8  ;;  %vm606_vm0 = vcmask 261120   ;;  %vm1751_vm1 = vmmov 0  }
  0xa1   :  { %v193_v26 = vpop.permute.xlu1 %192  ;;  %v81_v27 = vpop.permute.xlu0 %80 }
  0xa2   :  { %vm221_vm2 = vcmp.eq.s32.totalorder %v2002_v5, %v193_v26  ;;  %vm109_vm3 = vcmp.eq.s32.totalorder %v2002_v5, %v81_v27 }
  0xa3   :  { %1540 = vmatmul.mubr.msk.f32.gmra.mxu0 %vm109_vm3, %v1749_v8  ;;  %1596 = vmatmul.mubr.msk.f32.gmra.mxu1 %vm221_vm2, %v1749_v8 }
  0xa5   :  { %v196_v28 = vpop.permute.xlu1 %195  ;;  %v84_v29 = vpop.permute.xlu0 %83 }
  0xa6   :  { %vm222_vm4 = vcmp.eq.s32.totalorder %v2002_v5, %v196_v28  ;;  %vm110_vm5 = vcmp.eq.s32.totalorder %v2002_v5, %v84_v29 }
  0xa7   :  { %1542 = vmatprep.mubr.msk.f32.mxu0 %vm110_vm5, %v1749_v8  ;;  %1598 = vmatprep.mubr.msk.f32.mxu1 %vm222_vm4, %v1749_v8 }
  0xa9   :  { %v199_v30 = vpop.permute.xlu1 %198  ;;  %v87_v31 = vpop.permute.xlu0 %86 }
  0xaa   :  { %vm223_vm6 = vcmp.eq.s32.totalorder %v2002_v5, %v199_v30  ;;  %vm111_vm7 = vcmp.eq.s32.totalorder %v2002_v5, %v87_v31 }
  0xab   :  { %1543 = vmatmul.mubr.msk.f32.gmra.mxu0 %vm111_vm7, %v1749_v8  ;;  %1599 = vmatmul.mubr.msk.f32.gmra.mxu1 %vm223_vm6, %v1749_v8 }
  0xad   :  { %v202_v32 = vpop.permute.xlu1 %201  ;;  %v90_v33 = vpop.permute.xlu0 %89 }
  0xae   :  { %vm224_vm8 = vcmp.eq.s32.totalorder %v2002_v5, %v202_v32  ;;  %vm112_vm9 = vcmp.eq.s32.totalorder %v2002_v5, %v90_v33  ;;  %v1752_v32 = vmov 0.17677669  }
  0xaf   :  { %1545 = vmatprep.mubr.msk.f32.mxu0 %vm112_vm9, %v1749_v8  ;;  %1601 = vmatprep.mubr.msk.f32.mxu1 %vm224_vm8, %v1749_v8 }
  0xb1   :  { %v205_v34 = vpop.permute.xlu1 %204  ;;  %v93_v35 = vpop.permute.xlu0 %92 }
  0xb2   :  { %vm225_vm10 = vcmp.eq.s32.totalorder %v2002_v5, %v205_v34  ;;  %vm113_vm11 = vcmp.eq.s32.totalorder %v2002_v5, %v93_v35 }
  0xb3   :  { %1546 = vmatmul.mubr.msk.f32.gmra.mxu0 %vm113_vm11, %v1749_v8  ;;  %1602 = vmatmul.mubr.msk.f32.gmra.mxu1 %vm225_vm10, %v1749_v8 }
  0xb5   :  { %v208_v36 = vpop.permute.xlu1 %207  ;;  %v96_v37 = vpop.permute.xlu0 %95 }
  0xb6   :  { %vm226_vm12 = vcmp.eq.s32.totalorder %v2002_v5, %v208_v36  ;;  %vm114_vm13 = vcmp.eq.s32.totalorder %v2002_v5, %v96_v37 }
  0xb7   :  { %1548 = vmatprep.mubr.msk.f32.mxu0 %vm114_vm13, %v1749_v8  ;;  %1604 = vmatprep.mubr.msk.f32.mxu1 %vm226_vm12, %v1749_v8 }
  0xb9   :  { %v211_v38 = vpop.permute.xlu1 %210  ;;  %v99_v39 = vpop.permute.xlu0 %98 }
  0xba   :  { %vm227_vm14 = vcmp.eq.s32.totalorder %v2002_v5, %v211_v38  ;;  %vm115_vm15 = vcmp.eq.s32.totalorder %v2002_v5, %v99_v39 }
  0xbb   :  { %1549 = vmatmul.mubr.msk.f32.gmra.mxu0 %vm115_vm15, %v1749_v8  ;;  %1605 = vmatmul.mubr.msk.f32.gmra.mxu1 %vm227_vm14, %v1749_v8 }
 0x140   :  { %v1529_v47 = vpop.f32.mrf.mxu0 }
 0x142   :  { %v342_v48 = vpop.f32.mrf.mxu0 }
 0x143   :  { %1647 = vmatprep.mubr.msk.f32.mxu1 %vm606_vm0, %v342_v48 }
 0x144   :  { %v1585_v49 = vpop.f32.mrf.mxu1  ;;  %1648 = vmatmul.mubr.msk.f32.vlgmr.msra.gmra.mxu1 %vm606_vm0, %v1529_v47 }
 0x145   :  { %v2093_v50 = vmul.f32 %v1585_v49, %v1529_v47 }
 0x146   :  { %v503_v51 = vpop.f32.mrf.mxu1 }
 0x147   :  { %v2095_v52 = vmul.f32 %v503_v51, %v342_v48  ;;  %1615 = vmatprep.mubr.msk.f32.mxu0 %vm606_vm0, %v503_v51 }
 0x148   :  { %1616 = vmatmul.mubr.msk.f32.vlgmr.msra.gmra.mxu0 %vm606_vm0, %v1585_v49 }
 0x14b   :  { %v1532_v53 = vpop.f32.mrf.mxu0  ;;  %v1588_v54 = vpop.f32.mrf.mxu1 }
 0x14c   :  { %v2099_v55 = vmul.f32 %v1588_v54, %v1532_v53 }
 0x14d   :  { %v352_v56 = vpop.f32.mrf.mxu0  ;;  %v513_v57 = vpop.f32.mrf.mxu1 }
 0x14e   :  { %v2101_v58 = vmul.f32 %v513_v57, %v352_v56  ;;  %1618 = vmatprep.mubr.msk.f32.mxu0 %vm606_vm0, %v513_v57  ;;  %1650 = vmatprep.mubr.msk.f32.mxu1 %vm606_vm0, %v352_v56 }
 0x14f   :  { %1619 = vmatmul.mubr.msk.f32.gmra.mxu0 %vm606_vm0, %v1588_v54  ;;  %1651 = vmatmul.mubr.msk.f32.gmra.mxu1 %vm606_vm0, %v1532_v53 }
 0x153   :  { %v1535_v59 = vpop.f32.mrf.mxu0  ;;  %v1591_v60 = vpop.f32.mrf.mxu1 }
 0x154   :  { %v2107_v61 = vmul.f32 %v1591_v60, %v1535_v59 }
 0x155   :  { %v362_v62 = vpop.f32.mrf.mxu0  ;;  %v523_v63 = vpop.f32.mrf.mxu1 }
 0x156   :  { %v2109_v0 = vmul.f32 %v523_v63, %v362_v62  ;;  %1621 = vmatprep.mubr.msk.f32.mxu0 %vm606_vm0, %v523_v63  ;;  %1653 = vmatprep.mubr.msk.f32.mxu1 %vm606_vm0, %v362_v62 }
 0x157   :  { %1622 = vmatmul.mubr.msk.f32.gmra.mxu0 %vm606_vm0, %v1591_v60  ;;  %1654 = vmatmul.mubr.msk.f32.gmra.mxu1 %vm606_vm0, %v1535_v59 }
 0x15b   :  { %v1538_v1 = vpop.f32.mrf.mxu0  ;;  %v1594_v2 = vpop.f32.mrf.mxu1 }
 0x15c   :  { %v2115_v3 = vmul.f32 %v1594_v2, %v1538_v1 }
 0x15d   :  { %v372_v5 = vpop.f32.mrf.mxu0  ;;  %v533_v6 = vpop.f32.mrf.mxu1 }
 0x15e   :  { %v2117_v7 = vmul.f32 %v533_v6, %v372_v5  ;;  %1624 = vmatprep.mubr.msk.f32.mxu0 %vm606_vm0, %v533_v6  ;;  %1656 = vmatprep.mubr.msk.f32.mxu1 %vm606_vm0, %v372_v5 }
 0x15f   :  { %1625 = vmatmul.mubr.msk.f32.gmra.mxu0 %vm606_vm0, %v1594_v2  ;;  %1657 = vmatmul.mubr.msk.f32.gmra.mxu1 %vm606_vm0, %v1538_v1 }
 0x163   :  { %v1541_v8 = vpop.f32.mrf.mxu0  ;;  %v1597_v9 = vpop.f32.mrf.mxu1 }
 0x164   :  { %v591_v30 = vmul.f32 %v1597_v9, %v1541_v8 }
 0x165   :  { %v382_v10 = vpop.f32.mrf.mxu0  ;;  %v543_v11 = vpop.f32.mrf.mxu1 }
 0x166   :  { %1627 = vmatprep.mubr.msk.f32.mxu0 %vm606_vm0, %v543_v11  ;;  %1659 = vmatprep.mubr.msk.f32.mxu1 %vm606_vm0, %v382_v10  ;;  %v590_v31 = vmul.f32 %v543_v11, %v382_v10 }
 0x167   :  { %1628 = vmatmul.mubr.msk.f32.gmra.mxu0 %vm606_vm0, %v1597_v9  ;;  %1660 = vmatmul.mubr.msk.f32.gmra.mxu1 %vm606_vm0, %v1541_v8 }
 0x16b   :  { %v1544_v12 = vpop.f32.mrf.mxu0  ;;  %v1600_v13 = vpop.f32.mrf.mxu1 }
 0x16c   :  { %v593_v28 = vmul.f32 %v1600_v13, %v1544_v12 }
 0x16d   :  { %v392_v14 = vpop.f32.mrf.mxu0  ;;  %v553_v15 = vpop.f32.mrf.mxu1 }
 0x16e   :  { %1630 = vmatprep.mubr.msk.f32.mxu0 %vm606_vm0, %v553_v15  ;;  %1662 = vmatprep.mubr.msk.f32.mxu1 %vm606_vm0, %v392_v14  ;;  %v592_v29 = vmul.f32 %v553_v15, %v392_v14 }
 0x16f   :  { %1631 = vmatmul.mubr.msk.f32.gmra.mxu0 %vm606_vm0, %v1600_v13  ;;  %1663 = vmatmul.mubr.msk.f32.gmra.mxu1 %vm606_vm0, %v1544_v12 }
 0x173   :  { %v1547_v16 = vpop.f32.mrf.mxu0  ;;  %v1603_v17 = vpop.f32.mrf.mxu1 }
 0x174   :  { %v595_v26 = vmul.f32 %v1603_v17, %v1547_v16 }
 0x175   :  { %v402_v18 = vpop.f32.mrf.mxu0  ;;  %v563_v19 = vpop.f32.mrf.mxu1 }
 0x176   :  { %1633 = vmatprep.mubr.msk.f32.mxu0 %vm606_vm0, %v563_v19  ;;  %1665 = vmatprep.mubr.msk.f32.mxu1 %vm606_vm0, %v402_v18  ;;  %v594_v27 = vmul.f32 %v563_v19, %v402_v18 }
 0x177   :  { %1634 = vmatmul.mubr.msk.f32.gmra.mxu0 %vm606_vm0, %v1603_v17  ;;  %1666 = vmatmul.mubr.msk.f32.gmra.mxu1 %vm606_vm0, %v1547_v16 }
 0x17b   :  { %v1550_v20 = vpop.f32.mrf.mxu0  ;;  %v1606_v21 = vpop.f32.mrf.mxu1 }
 0x17c   :  { %v597_v22 = vmul.f32 %v1606_v21, %v1550_v20 }
 0x17d   :  { %v412_v23 = vpop.f32.mrf.mxu0  ;;  %v573_v24 = vpop.f32.mrf.mxu1 }
 0x17e   :  { %1636 = vmatprep.mubr.msk.f32.mxu0 %vm606_vm0, %v573_v24  ;;  %1668 = vmatprep.mubr.msk.f32.mxu1 %vm606_vm0, %v412_v23  ;;  %v596_v25 = vmul.f32 %v573_v24, %v412_v23 }
 0x17f   :  { %1707 = vmatpush3.xpose.msk.msra.mxu1 %vm606_vm0, %v597_v22  ;;  %1637 = vmatmul.mubr.msk.f32.gmra.mxu0 %vm606_vm0, %v1606_v21 }
 0x180   :  { %1669 = vmatmul.mubr.msk.f32.gmra.mxu1 %vm606_vm0, %v1550_v20  ;;  %1708 = vmatprep.subr.mxu1 %v1750_v46 }
 0x181   :  { %1738 = vmatprep.mubr.msk.f32.mxu1 %vm1751_vm1, %v1750_v46  ;;  %1703 = vmatprep.mubr.msk.f32.mxu0 %vm1751_vm1, %v1750_v46 }
 0x183   :  { %1709 = vmatpush3.xpose.msk.msra.mxu1 %vm606_vm0, %v596_v25 }
 0x184   :  { %1710 = vmatprep.subr.mxu1 %v1750_v46 }
 0x187   :  { %1711 = vmatpush3.xpose.msk.msra.mxu1 %vm606_vm0, %v595_v26 }
 0x188   :  { %1712 = vmatprep.subr.mxu1 %v1750_v46 }
 0x18b   :  { %1713 = vmatpush3.xpose.msk.msra.mxu1 %vm606_vm0, %v594_v27 }
 0x18c   :  { %1714 = vmatprep.subr.mxu1 %v1750_v46 }
 0x18f   :  { %1715 = vmatpush3.xpose.msk.msra.mxu1 %vm606_vm0, %v593_v28 }
 0x190   :  { %1716 = vmatprep.subr.mxu1 %v1750_v46 }
 0x193   :  { %1717 = vmatpush3.xpose.msk.msra.mxu1 %vm606_vm0, %v592_v29 }
 0x194   :  { %1718 = vmatprep.subr.mxu1 %v1750_v46 }
 0x197   :  { %1719 = vmatpush3.xpose.msk.msra.mxu1 %vm606_vm0, %v591_v30 }
 0x198   :  { %1720 = vmatprep.subr.mxu1 %v1750_v46 }
 0x19b   :  { %1721 = vmatpush3.xpose.msk.msra.mxu1 %vm606_vm0, %v590_v31 }
 0x19c   :  { %1722 = vmatprep.subr.mxu1 %v1750_v46 }
 0x19f   :  { %1723 = vmatpush3.xpose.msk.msra.mxu1 %vm606_vm0, %v2115_v3 }
 0x1a0   :  { %1724 = vmatprep.subr.mxu1 %v1750_v46 }
 0x1a3   :  { %1725 = vmatpush3.xpose.msk.msra.mxu1 %vm606_vm0, %v2117_v7  ;;  %v2200_v7 = vld [vmem:[%s2255_s6] ss:$0 sm:$0xff] }
 0x1a4   :  { %1726 = vmatprep.subr.mxu1 %v1750_v46 }
 0x1a7   :  { %1727 = vmatpush3.xpose.msk.msra.mxu1 %vm606_vm0, %v2107_v61 }
 0x1a8   :  { %1728 = vmatprep.subr.mxu1 %v1750_v46 }
 0x1ab   :  { %1729 = vmatpush3.xpose.msk.msra.mxu1 %vm606_vm0, %v2109_v0 }
 0x1ac   :  { %1730 = vmatprep.subr.mxu1 %v1750_v46 }
 0x1af   :  { %1731 = vmatpush3.xpose.msk.msra.mxu1 %vm606_vm0, %v2099_v55 }
 0x1b0   :  { %1732 = vmatprep.subr.mxu1 %v1750_v46 }
 0x1b3   :  { %1733 = vmatpush3.xpose.msk.msra.mxu1 %vm606_vm0, %v2101_v58 }
 0x1b4   :  { %1734 = vmatprep.subr.mxu1 %v1750_v46 }
 0x1b7   :  { %1735 = vmatpush3.xpose.msk.msra.mxu1 %vm606_vm0, %v2093_v50 }
 0x1b8   :  { %1736 = vmatprep.subr.mxu1 %v1750_v46 }
 0x1bb   :  { %1737 = vmatpush3.xpose.msk.msra.mxu1 %vm606_vm0, %v2095_v52 }
 0x1be   :  { %1739 = vmatmul.mubr.msk.f32.vlgmr.msra.gmra.mxu1 %vm606_vm0, %v1752_v32 }
 0x204   :  { %v1649_v33 = vpop.f32.mrf.mxu1 }
 0x206   :  { %v914_v36 = vpop.f32.mrf.mxu1 }
 0x208   :  { %v1617_v34 = vpop.f32.mrf.mxu0 }
 0x209   :  { %v2181_v35 = vadd.f32 %v1649_v33, %v1617_v34 }
 0x20a   :  { %v721_v37 = vpop.f32.mrf.mxu0 }
 0x20b   :  { %v2183_v38 = vadd.f32 %v914_v36, %v721_v37 }
 0x20f   :  { %v1620_v39 = vpop.f32.mrf.mxu0  ;;  %v1652_v40 = vpop.f32.mrf.mxu1 }
 0x210   :  { %v2185_v41 = vadd.f32 %v1652_v40, %v1620_v39 }
 0x211   :  { %v731_v42 = vpop.f32.mrf.mxu0  ;;  %v924_v43 = vpop.f32.mrf.mxu1 }
 0x212   :  { %v2187_v44 = vadd.f32 %v924_v43, %v731_v42 }
 0x217   :  { %v2189_v45 = vpop.f32.mrf.mxu0  ;;  %v2191_v47 = vpop.f32.mrf.mxu1 }
 0x218   :  { %v940_v36 = vadd.f32 %v2191_v47, %v2189_v45  ;;  %v1003_v45 = vadd.f32 %v2200_v7, %v2185_v41  ;;  %v1000_v41 = vadd.f32 %v2200_v7, %v2183_v38 }
 0x219   :  { %v2193_v48 = vpop.f32.mrf.mxu0  ;;  %v2195_v49 = vpop.f32.mrf.mxu1 }
 0x21a   :  { %v1005_v40 = vadd.f32 %v2200_v7, %v940_v36  ;;  %v935_v42 = vadd.f32 %v2195_v49, %v2193_v48  ;;  %v1002_v48 = vadd.f32 %v2200_v7, %v2187_v44  ;;  %v1001_v49 = vadd.f32 %v2200_v7, %v2181_v35  ;;  %v1032_v44 = vld [vmem:[%s2256_s7] sm:$0x1] }
 0x21f   :  { %v1626_v50 = vpop.f32.mrf.mxu0  ;;  %v1658_v51 = vpop.f32.mrf.mxu1 }
 0x220   :  { %v950_v29 = vadd.f32 %v1658_v51, %v1626_v50  ;;  %v1021_v50 = vmax.f32 %v1005_v40, 0.0  ;;  %v1004_v51 = vadd.f32 %v2200_v7, %v935_v42 }
 0x221   :  { %v751_v52 = vpop.f32.mrf.mxu0  ;;  %v944_v53 = vpop.f32.mrf.mxu1 }
 0x222   :  { %v1007_v32 = vadd.f32 %v2200_v7, %v950_v29  ;;  %v945_v33 = vadd.f32 %v944_v53, %v751_v52  ;;  %v1020_v47 = vmax.f32 %v1004_v51, 0.0  ;;  %v1019_v52 = vmax.f32 %v1003_v45, 0.0 }
 0x223   :  { %v1018_v53 = vmax.f32 %v1002_v48, 0.0 }
 0x224   :  { %v1023_v37 = vmax.f32 %v1007_v32, 0.0  ;;  %v1006_v39 = vadd.f32 %v2200_v7, %v945_v33 }
 0x226   :  { %v1022_v43 = vmax.f32 %v1006_v39, 0.0 }
 0x227   :  { %v1629_v54 = vpop.f32.mrf.mxu0  ;;  %v1661_v55 = vpop.f32.mrf.mxu1 }
 0x228   :  { %v960_v23 = vadd.f32 %v1661_v55, %v1629_v54  ;;  %v1017_v54 = vmax.f32 %v1001_v49, 0.0  ;;  %v1016_v55 = vmax.f32 %v1000_v41, 0.0 }
 0x229   :  { %v761_v56 = vpop.f32.mrf.mxu0  ;;  %v954_v57 = vpop.f32.mrf.mxu1 }
 0x22a   :  { %v1009_v26 = vadd.f32 %v2200_v7, %v960_v23  ;;  %v955_v27 = vadd.f32 %v954_v57, %v761_v56  ;;  %v1231_v57 = vshrl.u32 %v34_v4, 7 }
 0x22c   :  { %v1025_v30 = vmax.f32 %v1009_v26, 0.0  ;;  %v1008_v31 = vadd.f32 %v2200_v7, %v955_v27 }
 0x22e   :  { %v1024_v34 = vmax.f32 %v1008_v31, 0.0 }
 0x22f   :  { %v1632_v58 = vpop.f32.mrf.mxu0  ;;  %v1664_v59 = vpop.f32.mrf.mxu1 }
 0x230   :  { %v970_v17 = vadd.f32 %v1664_v59, %v1632_v58  ;;  %v1232_v58 = vsub.s32 0, %v1231_v57  ;;  %v1228_v59 = vpop.permute.xlu0 %1227 }
 0x231   :  { %v771_v60 = vpop.f32.mrf.mxu0  ;;  %v964_v61 = vpop.f32.mrf.mxu1 }
 0x232   :  { %v1011_v20 = vadd.f32 %v2200_v7, %v970_v17  ;;  %v965_v21 = vadd.f32 %v964_v61, %v771_v60  ;;  %v1233_v61 = vrot.slane %v1228_v59, %v1232_v58 }
 0x234   :  { %v1027_v24 = vmax.f32 %v1011_v20, 0.0  ;;  %v1010_v25 = vadd.f32 %v2200_v7, %v965_v21 }
 0x236   :  { %v1026_v28 = vmax.f32 %v1010_v25, 0.0 }
 0x237   :  { %v1635_v62 = vpop.f32.mrf.mxu0  ;;  %v1667_v63 = vpop.f32.mrf.mxu1 }
 0x238   :  { %v980_v11 = vadd.f32 %v1667_v63, %v1635_v62 }
 0x239   :  { %v781_v0 = vpop.f32.mrf.mxu0  ;;  %v974_v1 = vpop.f32.mrf.mxu1 }
 0x23a   :  { %v1013_v14 = vadd.f32 %v2200_v7, %v980_v11  ;;  %v975_v15 = vadd.f32 %v974_v1, %v781_v0 }
 0x23c   :  { %v1029_v18 = vmax.f32 %v1013_v14, 0.0  ;;  %v1012_v19 = vadd.f32 %v2200_v7, %v975_v15 }
 0x23e   :  { %v1028_v22 = vmax.f32 %v1012_v19, 0.0 }
 0x23f   :  { %v1638_v2 = vpop.f32.mrf.mxu0 }
 0x240   :  { %v1670_v3 = vpop.f32.mrf.mxu1 }
 0x241   :  { %v990_v5 = vadd.f32 %v1670_v3, %v1638_v2  ;;  %v791_v6 = vpop.f32.mrf.mxu0 }
 0x242   :  { %v984_v8 = vpop.f32.mrf.mxu1 }
 0x243   :  { %v1015_v9 = vadd.f32 %v2200_v7, %v990_v5  ;;  %v985_v10 = vadd.f32 %v984_v8, %v791_v6 }
 0x245   :  { %v1031_v12 = vmax.f32 %v1015_v9, 0.0  ;;  %v1014_v13 = vadd.f32 %v2200_v7, %v985_v10 }
 0x247   :  { %1672 = vmatpush3.xpose.msra.mxu0 %v1031_v12  ;;  %v1030_v16 = vmax.f32 %v1014_v13, 0.0 }
 0x248   :  { %1673 = vmatprep.subr.mxu0 %v1750_v46 }
 0x24b   :  { %1674 = vmatpush3.xpose.msra.mxu0 %v1030_v16 }
 0x24c   :  { %1675 = vmatprep.subr.mxu0 %v1750_v46 }
 0x24f   :  { %1676 = vmatpush3.xpose.msra.mxu0 %v1029_v18 }
 0x250   :  { %1677 = vmatprep.subr.mxu0 %v1750_v46 }
 0x253   :  { %1678 = vmatpush3.xpose.msra.mxu0 %v1028_v22 }
 0x254   :  { %1679 = vmatprep.subr.mxu0 %v1750_v46 }
 0x257   :  { %1680 = vmatpush3.xpose.msra.mxu0 %v1027_v24 }
 0x258   :  { %1681 = vmatprep.subr.mxu0 %v1750_v46 }
 0x25b   :  { %1682 = vmatpush3.xpose.msra.mxu0 %v1026_v28 }
 0x25c   :  { %1683 = vmatprep.subr.mxu0 %v1750_v46 }
 0x25f   :  { %1684 = vmatpush3.xpose.msra.mxu0 %v1025_v30 }
 0x260   :  { %1685 = vmatprep.subr.mxu0 %v1750_v46 }
 0x263   :  { %1686 = vmatpush3.xpose.msra.mxu0 %v1024_v34 }
 0x264   :  { %1687 = vmatprep.subr.mxu0 %v1750_v46 }
 0x267   :  { %1688 = vmatpush3.xpose.msra.mxu0 %v1023_v37 }
 0x268   :  { %1689 = vmatprep.subr.mxu0 %v1750_v46 }
 0x26b   :  { %1690 = vmatpush3.xpose.msra.mxu0 %v1022_v43 }
 0x26c   :  { %1691 = vmatprep.subr.mxu0 %v1750_v46 }
 0x26f   :  { %1692 = vmatpush3.xpose.msra.mxu0 %v1021_v50 }
 0x270   :  { %1693 = vmatprep.subr.mxu0 %v1750_v46 }
 0x273   :  { %1694 = vmatpush3.xpose.msra.mxu0 %v1020_v47 }
 0x274   :  { %1695 = vmatprep.subr.mxu0 %v1750_v46 }
 0x277   :  { %1696 = vmatpush3.xpose.msra.mxu0 %v1019_v52 }
 0x278   :  { %1697 = vmatprep.subr.mxu0 %v1750_v46 }
 0x27b   :  { %1698 = vmatpush3.xpose.msra.mxu0 %v1018_v53 }
 0x27c   :  { %1699 = vmatprep.subr.mxu0 %v1750_v46 }
 0x27e   :  { %v1220_v56 = vpop.f32.mrf.mxu1 }
 0x27f   :  { %1700 = vmatpush3.xpose.msra.mxu0 %v1017_v54 }
 0x280   :  { %1701 = vmatprep.subr.mxu0 %v1750_v46  ;;  %v1740_v35 = vpop.f32.mrf.mxu1 }
 0x283   :  { %1702 = vmatpush3.xpose.msra.mxu0 %v1016_v55 }
 0x286   :  { %1704 = vmatmul.mubr.f32.vlgmr.msra.gmra.mxu0 %v1032_v44 }
 0x346   :  { %v1099_v60 = vpop.f32.mrf.mxu0 }
 0x347   :  { %v1221_v62 = vadd.f32 %v1220_v56, %v1099_v60 }
 0x348   :  { %v1705_v38 = vpop.f32.mrf.mxu0 }
 0x349   :  { %v1234_v63 = vadd.f32 %v1233_v61, %v1221_v62 }
 0x34b   :  { %v1356_v0 = vclamps-f32 %v1234_v63, 10.0 }
 0x34d   :  { %1237 = vst [vmem:[%s2257_s9] sm:$0x1] %v1356_v0 }

// kernel: order_courier_forward.4
= control target key start
LH: loop header
LB: loop body
LE: loop exit
PB: predicated region body
PF: predicated region fallthrough
CT: control target
= control target key end

     0   :  { %v2768_v0 = vmov 0   ;;  %vm370_vm0 = vcmask 64512   ;;  %s4283_s1 = inlined_call_operand.vmem [shape: s32[128,1], index: 1, kind: input, shape index: {}]   ;;  %s4284_s0 = inlined_call_operand.vmem [shape: s32[128,1], index: 0, kind: input, shape index: {}]   ;;  %s4285_s7 = inlined_call_operand.vmem [shape: f32[8,32], index: 7, kind: input, shape index: {}]   ;;  %s4286_s3 = inlined_call_operand.vmem [shape: f32[128,8], index: 3, kind: input, shape index: {}]   ;;  %s4287_s4 = inlined_call_operand.vmem [shape: f32[128,64], index: 4, kind: input, shape index: {}]   ;;  %s4288_s5 = inlined_call_operand.vmem [shape: f32[128,32], index: 5, kind: input, shape index: {}]   ;;  %s4289_s2 = inlined_call_operand.vmem [shape: s32[1,128], index: 2, kind: input, shape index: {}]   ;;  %s4290_s6 = inlined_call_operand.vmem [shape: f32[128,32], index: 6, kind: input, shape index: {}]   ;;  %s4291_s8 = inlined_call_operand.vmem [shape: f32[128,32], index: 8, kind: output, shape index: {}]  }
   0x1   :  { %2669 = vset.pattern.permute.xlu1 %v2768_v0  ;;  %2668 = vset.pattern.permute.xlu0 %v2768_v0  ;;  %v99_v1 = vld [vmem:[%s4283_s1] sm:$0xff]  ;;  %v100_v3 = vld [vmem:[%s4283_s1 + $0x8] sm:$0xff]  ;;  %v86_v8 = vld [vmem:[%s4284_s0 + $0x18] sm:$0xff] }
   0x2   :  { %v83_v2 = vld [vmem:[%s4284_s0] sm:$0xff]  ;;  %221 = vperm.xlu1 %2669, %v99_v1   ;;  %v84_v4 = vld [vmem:[%s4284_s0 + $0x8] sm:$0xff]  ;;  %v85_v9 = vld [vmem:[%s4284_s0 + $0x10] sm:$0xff] }
   0x3   :  { %125 = vperm.xlu0 %2668, %v83_v2   ;;  %v369_v5 = vld [vmem:[%s4285_s7] sm:$0xff]  ;;  %v354_v7 = vld [vmem:[%s4286_s3 + $0x8] sm:$0xff]  ;;  %v355_v10 = vld [vmem:[%s4286_s3 + $0x10] sm:$0xff] }
   0x4   :  { %v353_v6 = vld [vmem:[%s4286_s3] sm:$0xff]  ;;  %2432 = vmatprep.subr.mxu0 %v369_v5  ;;  %v356_v11 = vld [vmem:[%s4286_s3 + $0x18] sm:$0xff]  ;;  %v101_v13 = vld [vmem:[%s4283_s1 + $0x10] sm:$0xff] }
   0x5   :  { %2434 = vmatprep.mubr.msk.f32.mxu0 %vm370_vm0, %v353_v6  ;;  %2433 = vmatpush3.msra.mxu0 %v369_v5  ;;  %v102_v12 = vld [vmem:[%s4283_s1 + $0x18] sm:$0xff]  ;;  %v357_v14 = vld [vmem:[%s4286_s3 + $0x20] sm:$0xff]  ;;  %v358_v15 = vld [vmem:[%s4286_s3 + $0x28] sm:$0xff] }
   0x6   :  { %224 = vperm.xlu1 %2669, %v100_v3   ;;  %2435 = vmatmul.mubr.msk.f32.vlgmr.msra.gmra.mxu0 %vm370_vm0, %v354_v7  ;;  %v88_v16 = vld [vmem:[%s4284_s0 + $0x28] sm:$0xff]  ;;  %v87_v17 = vld [vmem:[%s4284_s0 + $0x20] sm:$0xff]  ;;  %v359_v18 = vld [vmem:[%s4286_s3 + $0x30] sm:$0xff] }
   0x7   :  { %128 = vperm.xlu0 %2668, %v84_v4   ;;  %2437 = vmatprep.mubr.msk.f32.mxu0 %vm370_vm0, %v355_v10  ;;  %v579_v19 = vld [vmem:[%s4287_s4 + $0x78] sm:$0xff]  ;;  %v578_v22 = vld [vmem:[%s4287_s4 + $0x70] sm:$0xff]  ;;  %v104_v23 = vld [vmem:[%s4283_s1 + $0x28] sm:$0xff] }
   0x8   :  { %v836_v20 = vld [vmem:[%s4288_s5 + $0x78] sm:$0xff]  ;;  %v103_v24 = vld [vmem:[%s4283_s1 + $0x20] sm:$0xff]  ;;  %2458 = vmatprep.subr.mxu1 %v579_v19  ;;  %v835_v26 = vld [vmem:[%s4288_s5 + $0x70] sm:$0xff] }
   0x9   :  { %v360_v21 = vld [vmem:[%s4286_s3 + $0x38] sm:$0xff]  ;;  %v361_v25 = vld [vmem:[%s4286_s3 + $0x40] sm:$0xff]  ;;  %2514 = vmatprep.subr.mxu0 %v836_v20  ;;  %2459 = vmatpush3.msra.mxu1 %v579_v19  ;;  %v362_v27 = vld [vmem:[%s4286_s3 + $0x48] sm:$0xff] }
   0xa   :  { %134 = vperm.xlu1 %2669, %v86_v8   ;;  %2438 = vmatmul.mubr.msk.f32.gmra.mxu0 %vm370_vm0, %v356_v11  ;;  %v577_v28 = vld [vmem:[%s4287_s4 + $0x68] sm:$0xff]  ;;  %v90_v29 = vld [vmem:[%s4284_s0 + $0x38] sm:$0xff]  ;;  %v89_v30 = vld [vmem:[%s4284_s0 + $0x30] sm:$0xff] }
   0xb   :  { %131 = vperm.xlu0 %2668, %v85_v9   ;;  %2440 = vmatprep.mubr.msk.f32.mxu0 %vm370_vm0, %v357_v14  ;;  %v363_v31 = vld [vmem:[%s4286_s3 + $0x50] sm:$0xff]  ;;  %v834_v32 = vld [vmem:[%s4288_s5 + $0x68] sm:$0xff]  ;;  %v364_v33 = vld [vmem:[%s4286_s3 + $0x58] sm:$0xff] }
   0xc   :  { %2460 = vmatprep.subr.mxu1 %v578_v22  ;;  %2515 = vmatpush3.msra.mxu0 %v836_v20  ;;  %v576_v34 = vld [vmem:[%s4287_s4 + $0x60] sm:$0xff]  ;;  %v106_v35 = vld [vmem:[%s4283_s1 + $0x38] sm:$0xff]  ;;  %v105_v36 = vld [vmem:[%s4283_s1 + $0x30] sm:$0xff] }
   0xd   :  { %2516 = vmatprep.subr.mxu0 %v835_v26  ;;  %2461 = vmatpush3.msra.mxu1 %v578_v22  ;;  %v365_v37 = vld [vmem:[%s4286_s3 + $0x60] sm:$0xff]  ;;  %v366_v39 = vld [vmem:[%s4286_s3 + $0x68] sm:$0xff]  ;;  %v575_v40 = vld [vmem:[%s4287_s4 + $0x58] sm:$0xff]  ;;  %v2769_v22 = vmov 1.0  }
   0xe   :  { %230 = vperm.xlu1 %2669, %v102_v12   ;;  %2441 = vmatmul.mubr.msk.f32.gmra.mxu0 %vm370_vm0, %v358_v15  ;;  %v833_v38 = vld [vmem:[%s4288_s5 + $0x60] sm:$0xff]  ;;  %v92_v41 = vld [vmem:[%s4284_s0 + $0x48] sm:$0xff]  ;;  %v367_v43 = vld [vmem:[%s4286_s3 + $0x70] sm:$0xff] }
   0xf   :  { %227 = vperm.xlu0 %2668, %v101_v13   ;;  %2443 = vmatprep.mubr.msk.f32.mxu0 %vm370_vm0, %v359_v18  ;;  %v91_v42 = vld [vmem:[%s4284_s0 + $0x40] sm:$0xff]  ;;  %v832_v44 = vld [vmem:[%s4288_s5 + $0x58] sm:$0xff]  ;;  %v574_v46 = vld [vmem:[%s4287_s4 + $0x50] sm:$0xff]  ;;  %v116_v18 = vlaneseq }
  0x10   :  { %2462 = vmatprep.subr.mxu1 %v577_v28  ;;  %2517 = vmatpush3.msra.mxu0 %v835_v26  ;;  %v368_v45 = vld [vmem:[%s4286_s3 + $0x78] sm:$0xff]  ;;  %v108_v47 = vld [vmem:[%s4283_s1 + $0x48] sm:$0xff]  ;;  %v107_v48 = vld [vmem:[%s4283_s1 + $0x40] sm:$0xff] }
  0x11   :  { %2518 = vmatprep.subr.mxu0 %v834_v32  ;;  %2463 = vmatpush3.msra.mxu1 %v577_v28  ;;  %v831_v49 = vld [vmem:[%s4288_s5 + $0x50] sm:$0xff]  ;;  %v573_v50 = vld [vmem:[%s4287_s4 + $0x48] sm:$0xff]  ;;  %v94_v51 = vld [vmem:[%s4284_s0 + $0x58] sm:$0xff]  ;;  %v3080_v19 = vand.u32 127, %v116_v18 }
  0x12   :  { %140 = vperm.xlu1 %2669, %v88_v16   ;;  %2444 = vmatmul.mubr.msk.f32.gmra.mxu0 %vm370_vm0, %v360_v21  ;;  %v93_v52 = vld [vmem:[%s4284_s0 + $0x50] sm:$0xff]  ;;  %v830_v53 = vld [vmem:[%s4288_s5 + $0x48] sm:$0xff]  ;;  %v572_v54 = vld [vmem:[%s4287_s4 + $0x40] sm:$0xff] }
  0x13   :  { %137 = vperm.xlu0 %2668, %v87_v17   ;;  %2446 = vmatprep.mubr.msk.f32.mxu0 %vm370_vm0, %v361_v25  ;;  %v829_v55 = vld [vmem:[%s4288_s5 + $0x40] sm:$0xff]  ;;  %v571_v56 = vld [vmem:[%s4287_s4 + $0x38] sm:$0xff]  ;;  %v109_v58 = vld [vmem:[%s4283_s1 + $0x50] sm:$0xff] }
  0x14   :  { %2464 = vmatprep.subr.mxu1 %v576_v34  ;;  %2519 = vmatpush3.msra.mxu0 %v834_v32  ;;  %v110_v57 = vld [vmem:[%s4283_s1 + $0x58] sm:$0xff]  ;;  %v570_v60 = vld [vmem:[%s4287_s4 + $0x30] sm:$0xff]  ;;  %v96_v61 = vld [vmem:[%s4284_s0 + $0x68] sm:$0xff] }
  0x15   :  { %2520 = vmatprep.subr.mxu0 %v833_v38  ;;  %2465 = vmatpush3.msra.mxu1 %v576_v34  ;;  %v828_v59 = vld [vmem:[%s4288_s5 + $0x38] sm:$0xff]  ;;  %v95_v62 = vld [vmem:[%s4284_s0 + $0x60] sm:$0xff]  ;;  %v827_v63 = vld [vmem:[%s4288_s5 + $0x30] sm:$0xff] }
  0x16   :  { %236 = vperm.xlu1 %2669, %v104_v23   ;;  %2447 = vmatmul.mubr.msk.f32.gmra.mxu0 %vm370_vm0, %v362_v27  ;;  %v569_v0 = vld [vmem:[%s4287_s4 + $0x28] sm:$0xff]  ;;  %v568_v2 = vld [vmem:[%s4287_s4 + $0x20] sm:$0xff]  ;;  %v567_v6 = vld [vmem:[%s4287_s4 + $0x18] sm:$0xff] }
  0x17   :  { %233 = vperm.xlu0 %2668, %v103_v24   ;;  %2449 = vmatprep.mubr.msk.f32.mxu0 %vm370_vm0, %v363_v31  ;;  %v826_v1 = vld [vmem:[%s4288_s5 + $0x28] sm:$0xff]  ;;  %v111_v4 = vld [vmem:[%s4283_s1 + $0x60] sm:$0xff]  ;;  %v98_v7 = vld [vmem:[%s4284_s0 + $0x78] sm:$0xff] }
  0x18   :  { %2466 = vmatprep.subr.mxu1 %v575_v40  ;;  %2521 = vmatpush3.msra.mxu0 %v833_v38  ;;  %v112_v3 = vld [vmem:[%s4283_s1 + $0x68] sm:$0xff]  ;;  %v825_v5 = vld [vmem:[%s4288_s5 + $0x20] sm:$0xff]  ;;  %v97_v8 = vld [vmem:[%s4284_s0 + $0x70] sm:$0xff] }
  0x19   :  { %2522 = vmatprep.subr.mxu0 %v832_v44  ;;  %2467 = vmatpush3.msra.mxu1 %v575_v40  ;;  %v824_v9 = vld [vmem:[%s4288_s5 + $0x18] sm:$0xff]  ;;  %v566_v10 = vld [vmem:[%s4287_s4 + $0x10] sm:$0xff]  ;;  %v565_v12 = vld [vmem:[%s4287_s4 + $0x8] sm:$0xff] }
  0x1a   :  { %146 = vperm.xlu1 %2669, %v90_v29   ;;  %2450 = vmatmul.mubr.msk.f32.gmra.mxu0 %vm370_vm0, %v364_v33  ;;  %v823_v11 = vld [vmem:[%s4288_s5 + $0x10] sm:$0xff]  ;;  %v114_v13 = vld [vmem:[%s4283_s1 + $0x78] sm:$0xff]  ;;  %v822_v15 = vld [vmem:[%s4288_s5 + $0x8] sm:$0xff] }
  0x1b   :  { %143 = vperm.xlu0 %2668, %v89_v30   ;;  %2452 = vmatprep.mubr.msk.f32.mxu0 %vm370_vm0, %v365_v37  ;;  %v113_v14 = vld [vmem:[%s4283_s1 + $0x70] sm:$0xff]  ;;  %v564_v16 = vld [vmem:[%s4287_s4] sm:$0xff]  ;;  %s2770_s4 = smov 32  }
  0x1c   :  { %2468 = vmatprep.subr.mxu1 %v574_v46  ;;  %2523 = vmatpush3.msra.mxu0 %v832_v44  ;;  %v821_v17 = vld [vmem:[%s4288_s5] sm:$0xff] }
  0x1d   :  { %2469 = vmatpush3.msra.mxu1 %v574_v46  ;;  %2524 = vmatprep.subr.mxu0 %v831_v49 }
  0x1e   :  { %242 = vperm.xlu1 %2669, %v106_v35   ;;  %2453 = vmatmul.mubr.msk.f32.gmra.mxu0 %vm370_vm0, %v366_v39 }
  0x1f   :  { %239 = vperm.xlu0 %2668, %v105_v36   ;;  %2455 = vmatprep.mubr.msk.f32.mxu0 %vm370_vm0, %v367_v43 }
  0x20   :  { %2470 = vmatprep.subr.mxu1 %v573_v50  ;;  %2525 = vmatpush3.msra.mxu0 %v831_v49 }
  0x21   :  { %2471 = vmatpush3.msra.mxu1 %v573_v50  ;;  %2526 = vmatprep.subr.mxu0 %v830_v53 }
  0x22   :  { %152 = vperm.xlu1 %2669, %v92_v41   ;;  %2456 = vmatmul.mubr.msk.f32.gmra.mxu0 %vm370_vm0, %v368_v45 }
  0x23   :  { %149 = vperm.xlu0 %2668, %v91_v42   ;;  %2472 = vmatprep.subr.mxu1 %v572_v54 }
  0x24   :  { %2527 = vmatpush3.msra.mxu0 %v830_v53  ;;  %2473 = vmatpush3.msra.mxu1 %v572_v54 }
  0x25   :  { %2528 = vmatprep.subr.mxu0 %v829_v55  ;;  %2474 = vmatprep.subr.mxu1 %v571_v56 }
  0x26   :  { %248 = vperm.xlu1 %2669, %v108_v47   ;;  %2529 = vmatpush3.msra.mxu0 %v829_v55 }
  0x27   :  { %245 = vperm.xlu0 %2668, %v107_v48   ;;  %2475 = vmatpush3.msra.mxu1 %v571_v56 }
  0x28   :  { %2530 = vmatprep.subr.mxu0 %v828_v59  ;;  %2476 = vmatprep.subr.mxu1 %v570_v60 }
  0x29   :  { %2531 = vmatpush3.msra.mxu0 %v828_v59  ;;  %2477 = vmatpush3.msra.mxu1 %v570_v60 }
  0x2a   :  { %158 = vperm.xlu1 %2669, %v94_v51   ;;  %2532 = vmatprep.subr.mxu0 %v827_v63 }
  0x2b   :  { %155 = vperm.xlu0 %2668, %v93_v52   ;;  %2478 = vmatprep.subr.mxu1 %v569_v0 }
  0x2c   :  { %2533 = vmatpush3.msra.mxu0 %v827_v63  ;;  %2479 = vmatpush3.msra.mxu1 %v569_v0 }
  0x2d   :  { %2534 = vmatprep.subr.mxu0 %v826_v1  ;;  %2480 = vmatprep.subr.mxu1 %v568_v2 }
  0x2e   :  { %254 = vperm.xlu1 %2669, %v110_v57   ;;  %2535 = vmatpush3.msra.mxu0 %v826_v1 }
  0x2f   :  { %251 = vperm.xlu0 %2668, %v109_v58   ;;  %2481 = vmatpush3.msra.mxu1 %v568_v2 }
  0x30   :  { %2536 = vmatprep.subr.mxu0 %v825_v5  ;;  %2482 = vmatprep.subr.mxu1 %v567_v6 }
  0x31   :  { %2537 = vmatpush3.msra.mxu0 %v825_v5  ;;  %2483 = vmatpush3.msra.mxu1 %v567_v6  ;;  %v4296_v5 = vmov 0.0  }
  0x32   :  { %164 = vperm.xlu1 %2669, %v96_v61   ;;  %2538 = vmatprep.subr.mxu0 %v824_v9 }
  0x33   :  { %161 = vperm.xlu0 %2668, %v95_v62   ;;  %2484 = vmatprep.subr.mxu1 %v566_v10 }
  0x34   :  { %2539 = vmatpush3.msra.mxu0 %v824_v9  ;;  %2485 = vmatpush3.msra.mxu1 %v566_v10 }
  0x35   :  { %2540 = vmatprep.subr.mxu0 %v823_v11  ;;  %2486 = vmatprep.subr.mxu1 %v565_v12 }
  0x36   :  { %260 = vperm.xlu1 %2669, %v112_v3   ;;  %2541 = vmatpush3.msra.mxu0 %v823_v11 }
  0x37   :  { %257 = vperm.xlu0 %2668, %v111_v4   ;;  %2487 = vmatpush3.msra.mxu1 %v565_v12 }
  0x38   :  { %2542 = vmatprep.subr.mxu0 %v822_v15  ;;  %2488 = vmatprep.subr.mxu1 %v564_v16 }
  0x39   :  { %2543 = vmatpush3.msra.mxu0 %v822_v15  ;;  %2489 = vmatpush3.msra.mxu1 %v564_v16 }
  0x3a   :  { %170 = vperm.xlu1 %2669, %v98_v7   ;;  %2544 = vmatprep.subr.mxu0 %v821_v17 }
  0x3b   :  { %167 = vperm.xlu0 %2668, %v97_v8   ;;  %2545 = vmatpush3.msra.mxu0 %v821_v17 }
  0x3c   :  { %2570 = vmatprep.subr.mxu1 %v4296_v5 }
  0x3e   :  { %266 = vperm.xlu1 %2669, %v114_v13  }
  0x3f   :  { %263 = vperm.xlu0 %2668, %v113_v14  }
  0x7d   :  { %v222_v20 = vpop.permute.xlu1 %221 }
  0x7e   :  { %v126_v21 = vpop.permute.xlu0 %125  ;;  %vm268_vm1 = vcmp.eq.s32.totalorder %v3080_v19, %v222_v20 }
  0x7f   :  { %vm172_vm2 = vcmp.eq.s32.totalorder %v3080_v19, %v126_v21  ;;  %2546 = vmatprep.mubr.msk.f32.mxu0 %vm268_vm1, %v2769_v22 }
  0x80   :  { %2490 = vmatprep.mubr.msk.f32.mxu1 %vm172_vm2, %v2769_v22 }
  0x81   :  { %v225_v23 = vpop.permute.xlu1 %224 }
  0x82   :  { %v129_v24 = vpop.permute.xlu0 %128  ;;  %vm269_vm3 = vcmp.eq.s32.totalorder %v3080_v19, %v225_v23 }
  0x83   :  { %vm173_vm4 = vcmp.eq.s32.totalorder %v3080_v19, %v129_v24  ;;  %2547 = vmatmul.mubr.msk.f32.vlgmr.msra.gmra.mxu0 %vm269_vm3, %v2769_v22 }
  0x84   :  { %2491 = vmatmul.mubr.msk.f32.vlgmr.msra.gmra.mxu1 %vm173_vm4, %v2769_v22 }
  0x85   :  { %v135_v25 = vpop.permute.xlu1 %134 }
  0x86   :  { %v132_v26 = vpop.permute.xlu0 %131  ;;  %vm175_vm5 = vcmp.eq.s32.totalorder %v3080_v19, %v135_v25 }
  0x87   :  { %vm174_vm6 = vcmp.eq.s32.totalorder %v3080_v19, %v132_v26 }
  0x88   :  { %2493 = vmatprep.mubr.msk.f32.mxu1 %vm174_vm6, %v2769_v22 }
  0x89   :  { %2494 = vmatmul.mubr.msk.f32.gmra.mxu1 %vm175_vm5, %v2769_v22  ;;  %v231_v27 = vpop.permute.xlu1 %230 }
  0x8a   :  { %v228_v28 = vpop.permute.xlu0 %227  ;;  %vm271_vm7 = vcmp.eq.s32.totalorder %v3080_v19, %v231_v27 }
  0x8b   :  { %vm270_vm8 = vcmp.eq.s32.totalorder %v3080_v19, %v228_v28 }
  0x8c   :  { %2549 = vmatprep.mubr.msk.f32.mxu0 %vm270_vm8, %v2769_v22 }
  0x8d   :  { %2550 = vmatmul.mubr.msk.f32.gmra.mxu0 %vm271_vm7, %v2769_v22  ;;  %v141_v29 = vpop.permute.xlu1 %140 }
  0x8e   :  { %v138_v30 = vpop.permute.xlu0 %137  ;;  %vm177_vm9 = vcmp.eq.s32.totalorder %v3080_v19, %v141_v29 }
  0x8f   :  { %vm176_vm10 = vcmp.eq.s32.totalorder %v3080_v19, %v138_v30 }
  0x90   :  { %2496 = vmatprep.mubr.msk.f32.mxu1 %vm176_vm10, %v2769_v22 }
  0x91   :  { %2497 = vmatmul.mubr.msk.f32.gmra.mxu1 %vm177_vm9, %v2769_v22  ;;  %v237_v31 = vpop.permute.xlu1 %236 }
  0x92   :  { %v234_v32 = vpop.permute.xlu0 %233  ;;  %vm273_vm11 = vcmp.eq.s32.totalorder %v3080_v19, %v237_v31 }
  0x93   :  { %vm272_vm12 = vcmp.eq.s32.totalorder %v3080_v19, %v234_v32 }
  0x94   :  { %2552 = vmatprep.mubr.msk.f32.mxu0 %vm272_vm12, %v2769_v22 }
  0x95   :  { %2553 = vmatmul.mubr.msk.f32.gmra.mxu0 %vm273_vm11, %v2769_v22  ;;  %v147_v33 = vpop.permute.xlu1 %146 }
  0x96   :  { %v144_v34 = vpop.permute.xlu0 %143  ;;  %vm179_vm13 = vcmp.eq.s32.totalorder %v3080_v19, %v147_v33 }
  0x97   :  { %vm178_vm14 = vcmp.eq.s32.totalorder %v3080_v19, %v144_v34 }
  0x98   :  { %2499 = vmatprep.mubr.msk.f32.mxu1 %vm178_vm14, %v2769_v22 }
  0x99   :  { %2500 = vmatmul.mubr.msk.f32.gmra.mxu1 %vm179_vm13, %v2769_v22  ;;  %v243_v35 = vpop.permute.xlu1 %242 }
  0x9a   :  { %v240_v36 = vpop.permute.xlu0 %239  ;;  %vm275_vm15 = vcmp.eq.s32.totalorder %v3080_v19, %v243_v35 }
  0x9b   :  { %vm274_vm0 = vcmp.eq.s32.totalorder %v3080_v19, %v240_v36 }
  0x9c   :  { %2555 = vmatprep.mubr.msk.f32.mxu0 %vm274_vm0, %v2769_v22 }
  0x9d   :  { %2556 = vmatmul.mubr.msk.f32.gmra.mxu0 %vm275_vm15, %v2769_v22  ;;  %v153_v37 = vpop.permute.xlu1 %152 }
  0x9e   :  { %v150_v38 = vpop.permute.xlu0 %149  ;;  %vm181_vm1 = vcmp.eq.s32.totalorder %v3080_v19, %v153_v37 }
  0x9f   :  { %vm180_vm2 = vcmp.eq.s32.totalorder %v3080_v19, %v150_v38 }
  0xa0   :  { %2502 = vmatprep.mubr.msk.f32.mxu1 %vm180_vm2, %v2769_v22  ;;  %vm2772_vm2 = vmmov 0  }
  0xa1   :  { %2503 = vmatmul.mubr.msk.f32.gmra.mxu1 %vm181_vm1, %v2769_v22  ;;  %v249_v39 = vpop.permute.xlu1 %248  ;;  %vm4292_vm1 = vcmask 261120  }
  0xa2   :  { %v246_v40 = vpop.permute.xlu0 %245  ;;  %vm277_vm3 = vcmp.eq.s32.totalorder %v3080_v19, %v249_v39  ;;  %67 = vst.msk [vmem:[#allocation4] sm:$0xff] %vm4292_vm1, %v4296_v5  ;;  %68 = vst.msk [vmem:[#allocation4 + $0x8] sm:$0xff] %vm4292_vm1, %v4296_v5 }
  0xa3   :  { %vm276_vm4 = vcmp.eq.s32.totalorder %v3080_v19, %v246_v40  ;;  %69 = vst.msk [vmem:[#allocation4 + $0x10] sm:$0xff] %vm4292_vm1, %v4296_v5  ;;  %70 = vst.msk [vmem:[#allocation4 + $0x18] sm:$0xff] %vm4292_vm1, %v4296_v5 }
  0xa4   :  { %2558 = vmatprep.mubr.msk.f32.mxu0 %vm276_vm4, %v2769_v22  ;;  %71 = vst.msk [vmem:[#allocation4 + $0x20] sm:$0xff] %vm4292_vm1, %v4296_v5  ;;  %72 = vst.msk [vmem:[#allocation4 + $0x28] sm:$0xff] %vm4292_vm1, %v4296_v5  ;;  %vm4293_vm4 = vcmp.lt.s32.totalorder %v3080_v19, 18 }
  0xa5   :  { %2559 = vmatmul.mubr.msk.f32.gmra.mxu0 %vm277_vm3, %v2769_v22  ;;  %v159_v41 = vpop.permute.xlu1 %158  ;;  %73 = vst.msk [vmem:[#allocation4 + $0x30] sm:$0xff] %vm4292_vm1, %v4296_v5  ;;  %74 = vst.msk [vmem:[#allocation4 + $0x38] sm:$0xff] %vm4292_vm1, %v4296_v5  ;;  %vm4314_vm3 = vcmask 7168  }
  0xa6   :  { %v156_v42 = vpop.permute.xlu0 %155  ;;  %vm183_vm5 = vcmp.eq.s32.totalorder %v3080_v19, %v159_v41  ;;  %75 = vst.msk [vmem:[#allocation4 + $0x40] sm:$0xff] %vm4292_vm1, %v4296_v5  ;;  %76 = vst.msk [vmem:[#allocation4 + $0x48] sm:$0xff] %vm4292_vm1, %v4296_v5 }
  0xa7   :  { %vm182_vm6 = vcmp.eq.s32.totalorder %v3080_v19, %v156_v42  ;;  %77 = vst.msk [vmem:[#allocation4 + $0x50] sm:$0xff] %vm4292_vm1, %v4296_v5  ;;  %78 = vst.msk [vmem:[#allocation4 + $0x58] sm:$0xff] %vm4292_vm1, %v4296_v5 }
  0xa8   :  { %2505 = vmatprep.mubr.msk.f32.mxu1 %vm182_vm6, %v2769_v22  ;;  %79 = vst.msk [vmem:[#allocation4 + $0x60] sm:$0xff] %vm4292_vm1, %v4296_v5  ;;  %80 = vst.msk [vmem:[#allocation4 + $0x68] sm:$0xff] %vm4292_vm1, %v4296_v5 }
  0xa9   :  { %2506 = vmatmul.mubr.msk.f32.gmra.mxu1 %vm183_vm5, %v2769_v22  ;;  %v255_v43 = vpop.permute.xlu1 %254  ;;  %81 = vst.msk [vmem:[#allocation4 + $0x70] sm:$0xff] %vm4292_vm1, %v4296_v5  ;;  %82 = vst.msk [vmem:[#allocation4 + $0x78] sm:$0xff] %vm4292_vm1, %v4296_v5 }
  0xaa   :  { %v252_v44 = vpop.permute.xlu0 %251  ;;  %vm279_vm7 = vcmp.eq.s32.totalorder %v3080_v19, %v255_v43  ;;  %50 = vst.msk [vmem:[#allocation3] sm:$0xff] %vm4314_vm3, %v4296_v5  ;;  %51 = vst.msk [vmem:[#allocation3 + $0x8] sm:$0xff] %vm4314_vm3, %v4296_v5 }
  0xab   :  { %vm278_vm8 = vcmp.eq.s32.totalorder %v3080_v19, %v252_v44  ;;  %52 = vst.msk [vmem:[#allocation3 + $0x10] sm:$0xff] %vm4314_vm3, %v4296_v5  ;;  %53 = vst.msk [vmem:[#allocation3 + $0x18] sm:$0xff] %vm4314_vm3, %v4296_v5 }
  0xac   :  { %2561 = vmatprep.mubr.msk.f32.mxu0 %vm278_vm8, %v2769_v22  ;;  %54 = vst.msk [vmem:[#allocation3 + $0x20] sm:$0xff] %vm4314_vm3, %v4296_v5  ;;  %55 = vst.msk [vmem:[#allocation3 + $0x28] sm:$0xff] %vm4314_vm3, %v4296_v5 }
  0xad   :  { %2562 = vmatmul.mubr.msk.f32.gmra.mxu0 %vm279_vm7, %v2769_v22  ;;  %v165_v45 = vpop.permute.xlu1 %164  ;;  %56 = vst.msk [vmem:[#allocation3 + $0x30] sm:$0xff] %vm4314_vm3, %v4296_v5  ;;  %57 = vst.msk [vmem:[#allocation3 + $0x38] sm:$0xff] %vm4314_vm3, %v4296_v5 }
  0xae   :  { %v162_v46 = vpop.permute.xlu0 %161  ;;  %vm185_vm9 = vcmp.eq.s32.totalorder %v3080_v19, %v165_v45  ;;  %58 = vst.msk [vmem:[#allocation3 + $0x40] sm:$0xff] %vm4314_vm3, %v4296_v5  ;;  %59 = vst.msk [vmem:[#allocation3 + $0x48] sm:$0xff] %vm4314_vm3, %v4296_v5 }
  0xaf   :  { %vm184_vm10 = vcmp.eq.s32.totalorder %v3080_v19, %v162_v46  ;;  %60 = vst.msk [vmem:[#allocation3 + $0x50] sm:$0xff] %vm4314_vm3, %v4296_v5  ;;  %61 = vst.msk [vmem:[#allocation3 + $0x58] sm:$0xff] %vm4314_vm3, %v4296_v5 }
  0xb0   :  { %2508 = vmatprep.mubr.msk.f32.mxu1 %vm184_vm10, %v2769_v22  ;;  %62 = vst.msk [vmem:[#allocation3 + $0x60] sm:$0xff] %vm4314_vm3, %v4296_v5  ;;  %63 = vst.msk [vmem:[#allocation3 + $0x68] sm:$0xff] %vm4314_vm3, %v4296_v5 }
  0xb1   :  { %2509 = vmatmul.mubr.msk.f32.gmra.mxu1 %vm185_vm9, %v2769_v22  ;;  %v261_v47 = vpop.permute.xlu1 %260  ;;  %64 = vst.msk [vmem:[#allocation3 + $0x70] sm:$0xff] %vm4314_vm3, %v4296_v5  ;;  %65 = vst.msk [vmem:[#allocation3 + $0x78] sm:$0xff] %vm4314_vm3, %v4296_v5 }
  0xb2   :  { %v258_v48 = vpop.permute.xlu0 %257  ;;  %vm281_vm11 = vcmp.eq.s32.totalorder %v3080_v19, %v261_v47 }
  0xb3   :  { %vm280_vm12 = vcmp.eq.s32.totalorder %v3080_v19, %v258_v48 }
  0xb4   :  { %2564 = vmatprep.mubr.msk.f32.mxu0 %vm280_vm12, %v2769_v22 }
  0xb5   :  { %2565 = vmatmul.mubr.msk.f32.gmra.mxu0 %vm281_vm11, %v2769_v22  ;;  %v171_v49 = vpop.permute.xlu1 %170 }
  0xb6   :  { %v168_v50 = vpop.permute.xlu0 %167  ;;  %vm187_vm13 = vcmp.eq.s32.totalorder %v3080_v19, %v171_v49 }
  0xb7   :  { %vm186_vm14 = vcmp.eq.s32.totalorder %v3080_v19, %v168_v50 }
  0xb8   :  { %2511 = vmatprep.mubr.msk.f32.mxu1 %vm186_vm14, %v2769_v22 }
  0xb9   :  { %2512 = vmatmul.mubr.msk.f32.gmra.mxu1 %vm187_vm13, %v2769_v22  ;;  %v267_v51 = vpop.permute.xlu1 %266 }
  0xba   :  { %v264_v52 = vpop.permute.xlu0 %263  ;;  %vm283_vm15 = vcmp.eq.s32.totalorder %v3080_v19, %v267_v51  ;;  %2602 = vmatprep.mubr.msk.f32.mxu1 %vm2772_vm2, %v4296_v5 }
  0xbb   :  { %vm282_vm0 = vcmp.eq.s32.totalorder %v3080_v19, %v264_v52 }
  0xbc   :  { %2567 = vmatprep.mubr.msk.f32.mxu0 %vm282_vm0, %v2769_v22 }
  0xbd   :  { %2568 = vmatmul.mubr.msk.f32.gmra.mxu0 %vm283_vm15, %v2769_v22 }
  0xc6   :  { %v3146_v53 = vpop.f32.mrf.mxu0 }
  0xc8   :  { %v3148_v54 = vpop.f32.mrf.mxu0 }
  0xca   :  { %v3150_v55 = vpop.f32.mrf.mxu0 }
  0xcc   :  { %v3152_v56 = vpop.f32.mrf.mxu0 }
  0xce   :  { %v3154_v57 = vpop.f32.mrf.mxu0 }
  0xd0   :  { %v3156_v58 = vpop.f32.mrf.mxu0 }
  0xd2   :  { %v3158_v59 = vpop.f32.mrf.mxu0 }
  0xd3   :  { %771 = vrot.lane.b32.xlu0 %v3158_v59, %s2770_s4 }
  0xd4   :  { %v3162_v60 = vpop.f32.mrf.mxu0 }
  0xd5   :  { %769 = vrot.lane.b32.xlu1 %v3162_v60, %s2770_s4 }
  0xd6   :  { %v3166_v61 = vpop.f32.mrf.mxu0 }
  0xd7   :  { %775 = vrot.lane.b32.xlu0 %v3166_v61, %s2770_s4 }
  0xd8   :  { %v3170_v62 = vpop.f32.mrf.mxu0 }
  0xd9   :  { %773 = vrot.lane.b32.xlu1 %v3170_v62, %s2770_s4 }
  0xda   :  { %v3174_v63 = vpop.f32.mrf.mxu0 }
  0xdb   :  { %779 = vrot.lane.b32.xlu0 %v3174_v63, %s2770_s4 }
  0xdc   :  { %v3178_v0 = vpop.f32.mrf.mxu0 }
  0xdd   :  { %777 = vrot.lane.b32.xlu1 %v3178_v0, %s2770_s4 }
  0xde   :  { %v3182_v1 = vpop.f32.mrf.mxu0 }
  0xe0   :  { %v3184_v2 = vpop.f32.mrf.mxu0 }
  0xe1   :  { %783 = vrot.lane.b32.xlu1 %v3182_v1, %s2770_s4 }
  0xe2   :  { %v2457_v3 = vpop.f32.mrf.mxu0 }
  0xe4   :  { %v555_v4 = vpop.f32.mrf.mxu0 }
  0xe5   :  { %781 = vrot.lane.b32.xlu1 %v3184_v2, %s2770_s4  ;;  %785 = vrot.lane.b32.xlu0 %v555_v4, %s2770_s4 }
  0xe9   :  { %787 = vrot.lane.b32.xlu1 %v2457_v3, %s2770_s4 }
 0x143   :  { %v3230_v8 = vpop.f32.mrf.mxu0 }
 0x144   :  { %v3226_v6 = vpop.f32.mrf.mxu1 }
 0x145   :  { %v3234_v10 = vpop.f32.mrf.mxu0 }
 0x146   :  { %v3228_v7 = vpop.f32.mrf.mxu1 }
 0x149   :  { %v3232_v9 = vpop.f32.mrf.mxu1 }
 0x14b   :  { %v3236_v11 = vpop.f32.mrf.mxu1 }
 0x14d   :  { %v3238_v12 = vpop.f32.mrf.mxu0 }
 0x14f   :  { %v3242_v14 = vpop.f32.mrf.mxu0 }
 0x151   :  { %v3240_v13 = vpop.f32.mrf.mxu1 }
 0x153   :  { %v3244_v15 = vpop.f32.mrf.mxu1 }
 0x155   :  { %v3246_v16 = vpop.f32.mrf.mxu0 }
 0x157   :  { %v3250_v20 = vpop.f32.mrf.mxu0 }
 0x159   :  { %v3248_v17 = vpop.f32.mrf.mxu1 }
 0x15b   :  { %v3252_v21 = vpop.f32.mrf.mxu1 }
 0x15d   :  { %v2557_v23 = vpop.f32.mrf.mxu0 }
 0x15f   :  { %v933_v25 = vpop.f32.mrf.mxu0 }
 0x161   :  { %v3254_v24 = vpop.f32.mrf.mxu1 }
 0x163   :  { %v3256_v26 = vpop.f32.mrf.mxu1 }
 0x165   :  { %v2560_v27 = vpop.f32.mrf.mxu0 }
 0x167   :  { %v943_v29 = vpop.f32.mrf.mxu0 }
 0x169   :  { %v3258_v28 = vpop.f32.mrf.mxu1 }
 0x16a   :  { %v736_v49 = vadd.f32 %v3258_v28, %v3174_v63 }
 0x16b   :  { %v3260_v30 = vpop.f32.mrf.mxu1 }
 0x16c   :  { %v735_v51 = vadd.f32 %v3260_v30, %v3178_v0 }
 0x16d   :  { %v2563_v31 = vpop.f32.mrf.mxu0 }
 0x16e   :  { %v993_v50 = vmul.f32 %v2563_v31, %v736_v49  ;;  %v726_v31 = vadd.f32 %v3226_v6, %v3146_v53 }
 0x16f   :  { %v953_v33 = vpop.f32.mrf.mxu0 }
 0x170   :  { %v992_v52 = vmul.f32 %v953_v33, %v735_v51  ;;  %v983_v33 = vmul.f32 %v3230_v8, %v726_v31 }
 0x171   :  { %v3262_v32 = vpop.f32.mrf.mxu1 }
 0x172   :  { %v738_v45 = vadd.f32 %v3262_v32, %v3182_v1  ;;  %v734_v1 = vadd.f32 %v3254_v24, %v3166_v61 }
 0x173   :  { %v3264_v34 = vpop.f32.mrf.mxu1 }
 0x174   :  { %v737_v47 = vadd.f32 %v3264_v34, %v3184_v2  ;;  %v991_v63 = vmul.f32 %v2560_v27, %v734_v1  ;;  %v733_v2 = vadd.f32 %v3256_v26, %v3170_v62  ;;  %v730_v27 = vadd.f32 %v3240_v13, %v3154_v57 }
 0x175   :  { %v2566_v35 = vpop.f32.mrf.mxu0 }
 0x176   :  { %v995_v46 = vmul.f32 %v2566_v35, %v738_v45  ;;  %v990_v0 = vmul.f32 %v943_v29, %v733_v2 }
 0x177   :  { %v963_v37 = vpop.f32.mrf.mxu0 }
 0x178   :  { %v994_v48 = vmul.f32 %v963_v37, %v737_v47  ;;  %v3398_v37 = vld [vmem:[%s4289_s2] ss:$0 sm:$0xff]  ;;  %s2774_s2 = smov 96  }
 0x179   :  { %v3266_v36 = vpop.f32.mrf.mxu1 }
 0x17a   :  { %v740_v38 = vadd.f32 %v3266_v36, %v2457_v3  ;;  %v732_v3 = vadd.f32 %v3248_v17, %v3158_v59  ;;  %v987_v59 = vmul.f32 %v3246_v16, %v730_v27  ;;  %v727_v16 = vadd.f32 %v3236_v11, %v3152_v56 }
 0x17b   :  { %v3269_v39 = vpop.f32.mrf.mxu1 }
 0x17c   :  { %v739_v43 = vadd.f32 %v3269_v39, %v555_v4  ;;  %v989_v61 = vmul.f32 %v2557_v23, %v732_v3  ;;  %v731_v4 = vadd.f32 %v3252_v21, %v3162_v60  ;;  %v729_v23 = vadd.f32 %v3244_v15, %v3156_v58 }
 0x17d   :  { %v2569_v40 = vpop.f32.mrf.mxu0 }
 0x17e   :  { %v997_v41 = vmul.f32 %v2569_v40, %v740_v38  ;;  %v988_v62 = vmul.f32 %v933_v25, %v731_v4  ;;  %v986_v60 = vmul.f32 %v3250_v20, %v729_v23  ;;  %v728_v25 = vadd.f32 %v3232_v9, %v3150_v55 }
 0x17f   :  { %v973_v42 = vpop.f32.mrf.mxu0  ;;  %v984_v20 = vmul.f32 %v3242_v14, %v727_v16  ;;  %v2773_v14 = vmov -1e+30  }
 0x180   :  { %2571 = vmatpush3.xpose.msk.msra.mxu1 %vm4292_vm1, %v997_v41  ;;  %v996_v44 = vmul.f32 %v973_v42, %v739_v43  ;;  %v985_v29 = vmul.f32 %v3238_v12, %v728_v25  ;;  %v725_v12 = vadd.f32 %v3228_v7, %v3148_v54  ;;  %35 = vst.msk [vmem:[#allocation2 + $0x8] sm:$0xff] %vm4314_vm3, %v2773_v14  ;;  %34 = vst.msk [vmem:[#allocation2] sm:$0xff] %vm4314_vm3, %v2773_v14 }
 0x181   :  { %2572 = vmatprep.subr.mxu1 %v4296_v5  ;;  %36 = vst.msk [vmem:[#allocation2 + $0x10] sm:$0xff] %vm4314_vm3, %v2773_v14  ;;  %37 = vst.msk [vmem:[#allocation2 + $0x18] sm:$0xff] %vm4314_vm3, %v2773_v14 }
 0x182   :  { %v982_v35 = vmul.f32 %v3234_v10, %v725_v12  ;;  %38 = vst.msk [vmem:[#allocation2 + $0x20] sm:$0xff] %vm4314_vm3, %v2773_v14  ;;  %39 = vst.msk [vmem:[#allocation2 + $0x28] sm:$0xff] %vm4314_vm3, %v2773_v14 }
 0x183   :  { %40 = vst.msk [vmem:[#allocation2 + $0x30] sm:$0xff] %vm4314_vm3, %v2773_v14  ;;  %41 = vst.msk [vmem:[#allocation2 + $0x38] sm:$0xff] %vm4314_vm3, %v2773_v14 }
 0x184   :  { %2573 = vmatpush3.xpose.msk.msra.mxu1 %vm4292_vm1, %v996_v44  ;;  %42 = vst.msk [vmem:[#allocation2 + $0x40] sm:$0xff] %vm4314_vm3, %v2773_v14  ;;  %43 = vst.msk [vmem:[#allocation2 + $0x48] sm:$0xff] %vm4314_vm3, %v2773_v14 }
 0x185   :  { %2574 = vmatprep.subr.mxu1 %v4296_v5  ;;  %44 = vst.msk [vmem:[#allocation2 + $0x50] sm:$0xff] %vm4314_vm3, %v2773_v14  ;;  %45 = vst.msk [vmem:[#allocation2 + $0x58] sm:$0xff] %vm4314_vm3, %v2773_v14 }
 0x186   :  { %46 = vst.msk [vmem:[#allocation2 + $0x60] sm:$0xff] %vm4314_vm3, %v2773_v14  ;;  %47 = vst.msk [vmem:[#allocation2 + $0x68] sm:$0xff] %vm4314_vm3, %v2773_v14 }
 0x187   :  { %48 = vst.msk [vmem:[#allocation2 + $0x70] sm:$0xff] %vm4314_vm3, %v2773_v14  ;;  %49 = vst.msk [vmem:[#allocation2 + $0x78] sm:$0xff] %vm4314_vm3, %v2773_v14 }
 0x188   :  { %2575 = vmatpush3.xpose.msk.msra.mxu1 %vm4292_vm1, %v995_v46 }
 0x189   :  { %2576 = vmatprep.subr.mxu1 %v4296_v5 }
 0x18c   :  { %2577 = vmatpush3.xpose.msk.msra.mxu1 %vm4292_vm1, %v994_v48 }
 0x18d   :  { %2578 = vmatprep.subr.mxu1 %v4296_v5 }
 0x190   :  { %2579 = vmatpush3.xpose.msk.msra.mxu1 %vm4292_vm1, %v993_v50 }
 0x191   :  { %2580 = vmatprep.subr.mxu1 %v4296_v5 }
 0x194   :  { %2581 = vmatpush3.xpose.msk.msra.mxu1 %vm4292_vm1, %v992_v52 }
 0x195   :  { %2582 = vmatprep.subr.mxu1 %v4296_v5 }
 0x198   :  { %2583 = vmatpush3.xpose.msk.msra.mxu1 %vm4292_vm1, %v991_v63 }
 0x199   :  { %2584 = vmatprep.subr.mxu1 %v4296_v5 }
 0x19c   :  { %2585 = vmatpush3.xpose.msk.msra.mxu1 %vm4292_vm1, %v990_v0 }
 0x19d   :  { %2586 = vmatprep.subr.mxu1 %v4296_v5 }
 0x1a0   :  { %2587 = vmatpush3.xpose.msk.msra.mxu1 %vm4292_vm1, %v989_v61 }
 0x1a1   :  { %2588 = vmatprep.subr.mxu1 %v4296_v5 }
 0x1a4   :  { %2589 = vmatpush3.xpose.msk.msra.mxu1 %vm4292_vm1, %v988_v62 }
 0x1a5   :  { %2590 = vmatprep.subr.mxu1 %v4296_v5 }
 0x1a8   :  { %2591 = vmatpush3.xpose.msk.msra.mxu1 %vm4292_vm1, %v987_v59 }
 0x1a9   :  { %2592 = vmatprep.subr.mxu1 %v4296_v5 }
 0x1ac   :  { %2593 = vmatpush3.xpose.msk.msra.mxu1 %vm4292_vm1, %v986_v60 }
 0x1ad   :  { %2594 = vmatprep.subr.mxu1 %v4296_v5 }
 0x1b0   :  { %2595 = vmatpush3.xpose.msk.msra.mxu1 %vm4292_vm1, %v985_v29 }
 0x1b1   :  { %2596 = vmatprep.subr.mxu1 %v4296_v5 }
 0x1b4   :  { %2597 = vmatpush3.xpose.msk.msra.mxu1 %vm4292_vm1, %v984_v20 }
 0x1b5   :  { %2598 = vmatprep.subr.mxu1 %v4296_v5 }
 0x1b8   :  { %2599 = vmatpush3.xpose.msk.msra.mxu1 %vm4292_vm1, %v983_v33 }
 0x1b9   :  { %2600 = vmatprep.subr.mxu1 %v4296_v5  ;;  %v3610_v5 = vld [vmem:[#allocation2 + $0x28] sm:$0xff] }
 0x1ba   :  { %4324 = vst [vmem:[#allocation14_spill] sm:$0xff] %v3610_v5 }
 0x1bc   :  { %2601 = vmatpush3.xpose.msk.msra.mxu1 %vm4292_vm1, %v982_v35  ;;  %v3537_v35 = vpop.permute.xlu1 %769 }
 0x1bf   :  { %2603 = vmatmul.mubr.msk.f32.vlgmr.msra.gmra.mxu1 %vm4292_vm1, %v2769_v22  ;;  %v3388_v22 = vshrl.u32 %v116_v18, 7 }
 0x1c0   :  { %v3539_v14 = vpop.permute.xlu1 %773 }
 0x1c1   :  { %v3391_v8 = vadd.s32 8, %v3388_v22  ;;  %v4295_v10 = vsub.s32 0, %v3388_v22  ;;  %v3401_v40 = vadd.s32 32, %v3388_v22  ;;  %vm337_vm6 = vcmp.eq.s32.totalorder %v3388_v22, %v3398_v37 }
 0x1c2   :  { %v3412_v41 = vadd.s32 16, %v3388_v22  ;;  %v3428_v46 = vadd.s32 48, %v3388_v22  ;;  %v3431_v47 = vadd.s32 24, %v3388_v22  ;;  %v3444_v50 = vadd.s32 64, %v3388_v22 }
 0x1c3   :  { %vm338_vm5 = vcmp.eq.s32.totalorder %v3391_v8, %v3398_v37  ;;  %vm341_vm7 = vcmp.eq.s32.totalorder %v3401_v40, %v3398_v37  ;;  %v3447_v51 = vadd.s32 40, %v3388_v22  ;;  %v3460_v63 = vadd.s32 80, %v3388_v22 }
 0x1c4   :  { %vm339_vm8 = vcmp.eq.s32.totalorder %v3412_v41, %v3398_v37  ;;  %vm343_vm9 = vcmp.eq.s32.totalorder %v3428_v46, %v3398_v37  ;;  %vm340_vm10 = vcmp.eq.s32.totalorder %v3431_v47, %v3398_v37  ;;  %vm345_vm11 = vcmp.eq.s32.totalorder %v3444_v50, %v3398_v37 }
 0x1c5   :  { %vm342_vm12 = vcmp.eq.s32.totalorder %v3447_v51, %v3398_v37  ;;  %v3463_v2 = vadd.s32 56, %v3388_v22  ;;  %vm347_vm13 = vcmp.eq.s32.totalorder %v3460_v63, %v3398_v37  ;;  %v3476_v61 = vadd.s32 96, %v3388_v22 }
 0x1c6   :  { %v3479_v4 = vadd.s32 72, %v3388_v22  ;;  %v3492_v59 = vadd.s32 112, %v3388_v22  ;;  %v3495_v23 = vadd.s32 88, %v3388_v22  ;;  %v3508_v29 = vadd.s32 104, %v3388_v22 }
 0x1c7   :  { %vm344_vm14 = vcmp.eq.s32.totalorder %v3463_v2, %v3398_v37  ;;  %vm349_vm15 = vcmp.eq.s32.totalorder %v3476_v61, %v3398_v37  ;;  %v3519_v20 = vadd.s32 120, %v3388_v22  ;;  %v1412_v61 = vld [vmem:[#allocation3 + $0x8] sm:$0xff] }
 0x1c8   :  { %vm346_vm0 = vcmp.eq.s32.totalorder %v3479_v4, %v3398_v37  ;;  %vm4294_vm2 = vcmp.eq.s32.totalorder %v3492_v59, %v3398_v37  ;;  %vm348_vm1 = vcmp.eq.s32.totalorder %v3495_v23, %v3398_v37  ;;  %v1411_v23 = vld [vmem:[#allocation3] sm:$0xff] }
 0x27f   :  { %v1116_v38 = vpop.f32.mrf.mxu1 }
 0x280   :  { %v3405_v18 = vsel %vm4293_vm4, %v1116_v38, -1e+30  ;;  %vm350_vm4 = vcmp.eq.s32.totalorder %v3508_v29, %v3398_v37  ;;  %v3541_v38 = vpop.permute.xlu1 %777 }
 0x281   :  { %v1124_v42 = vrot.slane %v3405_v18, %v4295_v10  ;;  %v2604_v43 = vpop.f32.mrf.mxu1  ;;  %v3608_v10 = vld [vmem:[#allocation2 + $0x40] sm:$0xff] }
 0x282   :  { %4323 = vst [vmem:[#allocation13_spill] sm:$0xff] %v3608_v10 }
 0x283   :  { %v1126_v44 = vsel %vm338_vm5, %v1124_v42, -1e+30  ;;  %v1125_v45 = vsel %vm337_vm6, %v1124_v42, -1e+30  ;;  %v1129_v48 = vsel %vm341_vm7, %v1124_v42, -1e+30 }
 0x284   :  { %1143 = vmax.xlane.f32.xlu1 %v1126_v44  ;;  %1141 = vmax.xlane.f32.xlu0 %v1125_v45  ;;  %v1127_v49 = vsel %vm339_vm8, %v1124_v42, -1e+30  ;;  %v1131_v52 = vsel %vm343_vm9, %v1124_v42, -1e+30  ;;  %v1128_v1 = vsel %vm340_vm10, %v1124_v42, -1e+30  ;;  %v3545_v43 = vpop.permute.xlu1 %783 }
 0x285   :  { %v1133_v0 = vsel %vm345_vm11, %v1124_v42, -1e+30  ;;  %v1130_v3 = vsel %vm342_vm12, %v1124_v42, -1e+30  ;;  %v1135_v62 = vsel %vm347_vm13, %v1124_v42, -1e+30 }
 0x286   :  { %v1132_v27 = vsel %vm344_vm14, %v1124_v42, -1e+30  ;;  %v1137_v60 = vsel %vm349_vm15, %v1124_v42, -1e+30  ;;  %v1134_v25 = vsel %vm346_vm0, %v1124_v42, -1e+30 }
 0x287   :  { %v1139_v16 = vsel %vm4294_vm2, %v1124_v42, -1e+30  ;;  %v1136_v31 = vsel %vm348_vm1, %v1124_v42, -1e+30  ;;  %v1138_v33 = vsel %vm350_vm4, %v1124_v42, -1e+30  ;;  %vm352_vm2 = vcmp.eq.s32.totalorder %v3519_v20, %v3398_v37 }
 0x288   :  { %1149 = vmax.xlane.f32.xlu1 %v1129_v48  ;;  %1145 = vmax.xlane.f32.xlu0 %v1127_v49  ;;  %v1140_v12 = vsel %vm352_vm2, %v1124_v42, -1e+30  ;;  %v3543_v42 = vpop.permute.xlu0 %771  ;;  %v3559_v48 = vld [vmem:[#allocation2] sm:$0xff] }
 0x28c   :  { %1153 = vmax.xlane.f32.xlu1 %v1131_v52  ;;  %1147 = vmax.xlane.f32.xlu0 %v1128_v1 }
 0x290   :  { %1157 = vmax.xlane.f32.xlu1 %v1133_v0  ;;  %1151 = vmax.xlane.f32.xlu0 %v1130_v3  ;;  %v3567_v3 = vld [vmem:[#allocation2 + $0x20] sm:$0xff] }
 0x291   :  { %4317 = vst [vmem:[#allocation7_spill] sm:$0xff] %v3567_v3 }
 0x294   :  { %1161 = vmax.xlane.f32.xlu1 %v1135_v62  ;;  %1155 = vmax.xlane.f32.xlu0 %v1132_v27  ;;  %v3569_v62 = vld [vmem:[#allocation2 + $0x10] sm:$0xff] }
 0x298   :  { %1165 = vmax.xlane.f32.xlu1 %v1137_v60  ;;  %1159 = vmax.xlane.f32.xlu0 %v1134_v25 }
 0x29c   :  { %1169 = vmax.xlane.f32.xlu1 %v1139_v16  ;;  %1163 = vmax.xlane.f32.xlu0 %v1136_v31 }
 0x2a0   :  { %1167 = vmax.xlane.f32.xlu0 %v1138_v33 }
 0x2a4   :  { %1171 = vmax.xlane.f32.xlu0 %v1140_v12  ;;  %v3587_v12 = vld [vmem:[#allocation2 + $0x30] sm:$0xff] }
 0x2a5   :  { %4319 = vst [vmem:[#allocation9_spill] sm:$0xff] %v3587_v12 }
 0x2ad   :  { %765 = vrot.lane.b32.xlu1 %v3156_v58, %s2770_s4  ;;  %v3547_v58 = vpop.permute.xlu0 %775 }
 0x2b1   :  { %763 = vrot.lane.b32.xlu1 %v3150_v55, %s2770_s4  ;;  %v3549_v44 = vpop.permute.xlu0 %779  ;;  %v3551_v55 = vpop.permute.xlu1 %781 }
 0x2b5   :  { %761 = vrot.lane.b32.xlu1 %v3152_v56, %s2770_s4  ;;  %v3553_v56 = vpop.permute.xlu1 %787  ;;  %v3555_v45 = vpop.permute.xlu0 %785 }
 0x2ba   :  { %767 = vrot.lane.b32.xlu0 %v3154_v57, %s2770_s4  ;;  %v3557_v57 = vld [vmem:[#allocation2 + $0x8] sm:$0xff] }
 0x2bb   :  { %4315 = vst [vmem:[#allocation5_spill] sm:$0xff] %v3557_v57 }
 0x30d   :  { %v1144_v49 = vpop.xlane.xlu1 %1143  ;;  %v1142_v52 = vpop.xlane.xlu0 %1141 }
 0x30e   :  { %v3562_v1 = vmax.f32 %v3557_v57, %v1144_v49  ;;  %v3565_v0 = vmax.f32 %v3559_v48, %v1142_v52  ;;  %v3589_v49 = vld [vmem:[#allocation2 + $0x18] sm:$0xff] }
 0x30f   :  { %4320 = vst [vmem:[#allocation10_spill] sm:$0xff] %v3589_v49 }
 0x310   :  { %4316 = vst [vmem:[#allocation6_spill] sm:$0xff] %v3562_v1  ;;  %1255 = vst.msk [vmem:[#allocation2 + $0x8] sm:$0xff] %vm4314_vm3, %v3562_v1  ;;  %1277 = vperm.xlu0 %2668, %v3562_v1   ;;  %1272 = vperm.xlu1 %2669, %v3565_v0   ;;  %v3631_v1 = vld [vmem:[#allocation2 + $0x38] sm:$0xff] }
 0x311   :  { %1254 = vst.msk [vmem:[#allocation2] sm:$0xff] %vm4314_vm3, %v3565_v0  ;;  %v1150_v25 = vpop.xlane.xlu1 %1149  ;;  %v1146_v16 = vpop.xlane.xlu0 %1145  ;;  %4326 = vst [vmem:[#allocation16_spill] sm:$0xff] %v3631_v1 }
 0x312   :  { %v3582_v31 = vmax.f32 %v3567_v3, %v1150_v25  ;;  %v3585_v33 = vmax.f32 %v3569_v62, %v1146_v16 }
 0x314   :  { %4318 = vst [vmem:[#allocation8_spill] sm:$0xff] %v3582_v31  ;;  %1258 = vst.msk [vmem:[#allocation2 + $0x20] sm:$0xff] %vm4314_vm3, %v3582_v31  ;;  %759 = vrot.lane.b32.xlu1 %v3146_v53, %s2770_s4  ;;  %1282 = vperm.xlu0 %2668, %v3585_v33   ;;  %v3648_v53 = vld [vmem:[#allocation2 + $0x60] sm:$0xff] }
 0x315   :  { %1256 = vst.msk [vmem:[#allocation2 + $0x10] sm:$0xff] %vm4314_vm3, %v3585_v33  ;;  %v1154_v25 = vpop.xlane.xlu1 %1153  ;;  %v1148_v16 = vpop.xlane.xlu0 %1147  ;;  %4328 = vst [vmem:[#allocation18_spill] sm:$0xff] %v3648_v53 }
 0x316   :  { %v3603_v60 = vmax.f32 %v3587_v12, %v1154_v25  ;;  %v3606_v52 = vmax.f32 %v3589_v49, %v1148_v16  ;;  %v3629_v12 = vld [vmem:[#allocation2 + $0x50] sm:$0xff]  ;;  %v3670_v49 = vld [vmem:[#allocation2 + $0x58] sm:$0xff] }
 0x317   :  { %4325 = vst [vmem:[#allocation15_spill] sm:$0xff] %v3629_v12 }
 0x318   :  { %4321 = vst [vmem:[#allocation11_spill] sm:$0xff] %v3603_v60  ;;  %4322 = vst [vmem:[#allocation12_spill] sm:$0xff] %v3606_v52  ;;  %757 = vrot.lane.b32.xlu1 %v3148_v54, %s2770_s4  ;;  %1287 = vperm.xlu0 %2668, %v3606_v52  }
 0x319   :  { %1260 = vst.msk [vmem:[#allocation2 + $0x30] sm:$0xff] %vm4314_vm3, %v3603_v60  ;;  %1257 = vst.msk [vmem:[#allocation2 + $0x18] sm:$0xff] %vm4314_vm3, %v3606_v52  ;;  %v1158_v25 = vpop.xlane.xlu1 %1157  ;;  %v1152_v16 = vpop.xlane.xlu0 %1151 }
 0x31a   :  { %v3624_v3 = vmax.f32 %v3608_v10, %v1158_v25  ;;  %v3627_v27 = vmax.f32 %v3610_v5, %v1152_v16  ;;  %v3650_v10 = vld [vmem:[#allocation2 + $0x48] sm:$0xff] }
 0x31c   :  { %1262 = vst.msk [vmem:[#allocation2 + $0x40] sm:$0xff] %vm4314_vm3, %v3624_v3  ;;  %1259 = vst.msk [vmem:[#allocation2 + $0x28] sm:$0xff] %vm4314_vm3, %v3627_v27  ;;  %1292 = vperm.xlu0 %2668, %v3582_v31  }
 0x31d   :  { %v1162_v25 = vpop.xlane.xlu1 %1161  ;;  %v1156_v16 = vpop.xlane.xlu0 %1155 }
 0x31e   :  { %v3643_v57 = vmax.f32 %v3629_v12, %v1162_v25  ;;  %v3646_v52 = vmax.f32 %v3631_v1, %v1156_v16  ;;  %v3668_v12 = vld [vmem:[#allocation2 + $0x70] sm:$0xff] }
 0x31f   :  { %4331 = vst [vmem:[#allocation21_spill] sm:$0xff] %v3668_v12 }
 0x320   :  { %4327 = vst [vmem:[#allocation17_spill] sm:$0xff] %v3646_v52  ;;  %1264 = vst.msk [vmem:[#allocation2 + $0x50] sm:$0xff] %vm4314_vm3, %v3643_v57  ;;  %1297 = vperm.xlu0 %2668, %v3627_v27   ;;  %1307 = vperm.xlu1 %2669, %v3646_v52  }
 0x321   :  { %1261 = vst.msk [vmem:[#allocation2 + $0x38] sm:$0xff] %vm4314_vm3, %v3646_v52  ;;  %v1166_v25 = vpop.xlane.xlu1 %1165  ;;  %v1160_v16 = vpop.xlane.xlu0 %1159  ;;  %v819_v52 = vadd.f32 %v3555_v45, %v3269_v39  ;;  %v818_v39 = vadd.f32 %v3262_v32, %v3545_v43  ;;  %v814_v32 = vadd.f32 %v3254_v24, %v3547_v58 }
 0x322   :  { %v3663_v5 = vmax.f32 %v3648_v53, %v1166_v25  ;;  %v3666_v54 = vmax.f32 %v3650_v10, %v1160_v16  ;;  %v3688_v53 = vld [vmem:[#allocation2 + $0x68] sm:$0xff] }
 0x324   :  { %4329 = vst [vmem:[#allocation19_spill] sm:$0xff] %v3663_v5  ;;  %4330 = vst [vmem:[#allocation20_spill] sm:$0xff] %v3666_v54  ;;  %1302 = vperm.xlu0 %2668, %v3603_v60   ;;  %1317 = vperm.xlu1 %2669, %v3666_v54  }
 0x325   :  { %1266 = vst.msk [vmem:[#allocation2 + $0x60] sm:$0xff] %vm4314_vm3, %v3663_v5  ;;  %1263 = vst.msk [vmem:[#allocation2 + $0x48] sm:$0xff] %vm4314_vm3, %v3666_v54  ;;  %v1170_v25 = vpop.xlane.xlu1 %1169  ;;  %v1164_v16 = vpop.xlane.xlu0 %1163  ;;  %v3703_v54 = vld [vmem:[#allocation2 + $0x78] sm:$0xff] }
 0x326   :  { %v3683_v1 = vmax.f32 %v3668_v12, %v1170_v25  ;;  %v3686_v31 = vmax.f32 %v3670_v49, %v1164_v16 }
 0x328   :  { %1268 = vst.msk [vmem:[#allocation2 + $0x70] sm:$0xff] %vm4314_vm3, %v3683_v1  ;;  %1265 = vst.msk [vmem:[#allocation2 + $0x58] sm:$0xff] %vm4314_vm3, %v3686_v31  ;;  %1312 = vperm.xlu0 %2668, %v3624_v3   ;;  %1327 = vperm.xlu1 %2669, %v3686_v31  }
 0x329   :  { %v1168_v25 = vpop.xlane.xlu0 %1167  ;;  %v766_v45 = vpop.permute.xlu1 %765 }
 0x32a   :  { %v3701_v16 = vmax.f32 %v3688_v53, %v1168_v25  ;;  %v820_v25 = vadd.f32 %v3266_v36, %v3553_v56  ;;  %v816_v36 = vadd.f32 %v3258_v28, %v3549_v44 }
 0x32b   :  { %v4366_v41 = vld [vmem:[#allocation19_spill] sm:$0xff] }
 0x32c   :  { %1267 = vst.msk [vmem:[#allocation2 + $0x68] sm:$0xff] %vm4314_vm3, %v3701_v16  ;;  %1322 = vperm.xlu0 %2668, %v3643_v57   ;;  %1337 = vperm.xlu1 %2669, %v3701_v16  }
 0x32d   :  { %v1172_v60 = vpop.xlane.xlu0 %1171 }
 0x32e   :  { %v3712_v12 = vmax.f32 %v3703_v54, %v1172_v60  ;;  %v817_v60 = vadd.f32 %v3551_v55, %v3264_v34  ;;  %v813_v34 = vadd.f32 %v3539_v14, %v3256_v26  ;;  %v764_v55 = vpop.permute.xlu1 %763  ;;  %v809_v26 = vadd.f32 %v766_v45, %v3244_v15 }
 0x32f   :  { %v808_v24 = vadd.f32 %v3232_v9, %v764_v55 }
 0x330   :  { %1269 = vst.msk [vmem:[#allocation2 + $0x78] sm:$0xff] %vm4314_vm3, %v3712_v12  ;;  %1332 = vperm.xlu0 %2668, %v3663_v5   ;;  %1347 = vperm.xlu1 %2669, %v3712_v12   ;;  %v815_v5 = vadd.f32 %v3541_v38, %v3260_v30  ;;  %v811_v30 = vadd.f32 %v3537_v35, %v3252_v21 }
 0x331   :  { %v768_v14 = vpop.permute.xlu0 %767  ;;  %vm4332_vm3 = vcmp.eq.s32.totalorder %v3492_v59, %v3398_v37  ;;  %v4364_v8 = vsub.f32 %v3703_v54, %v3712_v12  ;;  %v4368_v12 = vld [vmem:[#allocation21_spill] sm:$0xff] }
 0x332   :  { %v762_v28 = vpop.permute.xlu1 %761  ;;  %v810_v35 = vadd.f32 %v3240_v13, %v768_v14  ;;  %v4369_v54 = vsub.f32 %v4368_v12, %v3683_v1 }
 0x333   :  { %v807_v21 = vadd.f32 %v762_v28, %v3236_v11 }
 0x334   :  { %1342 = vperm.xlu0 %2668, %v3683_v1   ;;  %1663 = vrot.lane.b32.xlu1 %v819_v52, %s2774_s2 }
 0x338   :  { %1665 = vrot.lane.b32.xlu0 %v820_v25, %s2774_s2  ;;  %1659 = vrot.lane.b32.xlu1 %v817_v60, %s2774_s2 }
 0x33c   :  { %1661 = vrot.lane.b32.xlu0 %v818_v39, %s2774_s2  ;;  %1655 = vrot.lane.b32.xlu1 %v815_v5, %s2774_s2  ;;  %v812_v5 = vadd.f32 %v3248_v17, %v3543_v42 }
 0x340   :  { %1657 = vrot.lane.b32.xlu0 %v816_v36, %s2774_s2  ;;  %1651 = vrot.lane.b32.xlu1 %v813_v34, %s2774_s2 }
 0x344   :  { %1653 = vrot.lane.b32.xlu0 %v814_v32, %s2774_s2  ;;  %1647 = vrot.lane.b32.xlu1 %v811_v30, %s2774_s2 }
 0x348   :  { %1649 = vrot.lane.b32.xlu0 %v812_v5, %s2774_s2  ;;  %1643 = vrot.lane.b32.xlu1 %v809_v26, %s2774_s2 }
 0x34c   :  { %1639 = vrot.lane.b32.xlu1 %v807_v21, %s2774_s2  ;;  %1645 = vrot.lane.b32.xlu0 %v810_v35, %s2774_s2 }
 0x350   :  { %1641 = vrot.lane.b32.xlu0 %v808_v24, %s2774_s2 }
 0x38b   :  { %v1273_v17 = vpop.permute.xlu1 %1272  ;;  %v1278_v15 = vpop.permute.xlu0 %1277 }
 0x38c   :  { %v1350_v13 = vsel %vm337_vm6, %v1273_v17, 0.0  ;;  %v1351_v9 = vsel %vm338_vm5, %v1278_v15, 0.0 }
 0x38f   :  { %v760_v38 = vpop.permute.xlu1 %759  ;;  %v1283_v42 = vpop.permute.xlu0 %1282 }
 0x390   :  { %v806_v43 = vadd.f32 %v3226_v6, %v760_v38  ;;  %v1352_v56 = vsel %vm339_vm8, %v1283_v42, 0.0  ;;  %v1366_v6 = vadd.f32 %v1351_v9, %v1350_v13 }
 0x392   :  { %1637 = vrot.lane.b32.xlu0 %v806_v43, %s2774_s2  ;;  %v1367_v60 = vadd.f32 %v1366_v6, %v1352_v56 }
 0x393   :  { %v758_v58 = vpop.permute.xlu1 %757  ;;  %v1288_v11 = vpop.permute.xlu0 %1287 }
 0x394   :  { %v805_v44 = vadd.f32 %v758_v58, %v3228_v7  ;;  %v1353_v25 = vsel %vm340_vm10, %v1288_v11, 0.0 }
 0x395   :  { %v1368_v45 = vadd.f32 %v1367_v60, %v1353_v25 }
 0x396   :  { %1635 = vrot.lane.b32.xlu1 %v805_v44, %s2774_s2 }
 0x397   :  { %v1293_v52 = vpop.permute.xlu0 %1292 }
 0x398   :  { %v1354_v39 = vsel %vm341_vm7, %v1293_v52, 0.0 }
 0x399   :  { %v1369_v55 = vadd.f32 %v1368_v45, %v1354_v39 }
 0x39b   :  { %v1308_v34 = vpop.permute.xlu1 %1307  ;;  %v1298_v7 = vpop.permute.xlu0 %1297 }
 0x39c   :  { %v1355_v36 = vsel %vm342_vm12, %v1298_v7, 0.0  ;;  %v1357_v14 = vsel %vm344_vm14, %v1308_v34, 0.0 }
 0x39d   :  { %v1370_v30 = vadd.f32 %v1369_v55, %v1355_v36 }
 0x39f   :  { %v1318_v32 = vpop.permute.xlu1 %1317  ;;  %v1303_v5 = vpop.permute.xlu0 %1302 }
 0x3a0   :  { %v1356_v26 = vsel %vm343_vm9, %v1303_v5, 0.0  ;;  %v1359_v38 = vsel %vm346_vm0, %v1318_v32, 0.0 }
 0x3a1   :  { %v1371_v28 = vadd.f32 %v1370_v30, %v1356_v26 }
 0x3a3   :  { %v1328_v21 = vpop.permute.xlu1 %1327  ;;  %v1372_v35 = vadd.f32 %v1371_v28, %v1357_v14  ;;  %v1313_v24 = vpop.permute.xlu0 %1312 }
 0x3a4   :  { %v1358_v17 = vsel %vm345_vm11, %v1313_v24, 0.0  ;;  %v1361_v9 = vsel %vm348_vm1, %v1328_v21, 0.0 }
 0x3a5   :  { %v1373_v15 = vadd.f32 %v1372_v35, %v1358_v17 }
 0x3a7   :  { %v1338_v42 = vpop.permute.xlu1 %1337  ;;  %v1374_v43 = vadd.f32 %v1373_v15, %v1359_v38  ;;  %v1323_v58 = vpop.permute.xlu0 %1322 }
 0x3a8   :  { %v1360_v11 = vsel %vm347_vm13, %v1323_v58, 0.0  ;;  %v1363_v60 = vsel %vm350_vm4, %v1338_v42, 0.0 }
 0x3a9   :  { %v1375_v13 = vadd.f32 %v1374_v43, %v1360_v11 }
 0x3ab   :  { %v1348_v44 = vpop.permute.xlu1 %1347  ;;  %v1376_v56 = vadd.f32 %v1375_v13, %v1361_v9  ;;  %v1333_v6 = vpop.permute.xlu0 %1332 }
 0x3ac   :  { %v1362_v52 = vsel %vm349_vm15, %v1333_v6, 0.0  ;;  %v1365_v55 = vsel %vm352_vm2, %v1348_v44, 0.0 }
 0x3ad   :  { %v1377_v25 = vadd.f32 %v1376_v56, %v1362_v52  ;;  %v4333_v52 = vmov 0.0  }
 0x3af   :  { %v1664_v39 = vpop.permute.xlu1 %1663  ;;  %v1378_v45 = vadd.f32 %v1377_v25, %v1363_v60  ;;  %v1343_v34 = vpop.permute.xlu0 %1342 }
 0x3b0   :  { %v1364_v7 = vsel %vm4332_vm3, %v1343_v34, 0.0  ;;  %vm4334_vm3 = vcmp.lt.s32.totalorder %v3080_v19, 18 }
 0x3b1   :  { %v1379_v36 = vadd.f32 %v1378_v45, %v1364_v7  ;;  %v2187_v25 = vsel %vm4334_vm3, 1.0, %v4333_v52  ;;  %v4335_v45 = vsub.s32 0, %v3388_v22  ;;  %v4347_v52 = vld [vmem:[#allocation16_spill] sm:$0xff] }
 0x3b3   :  { %v1380_v30 = vadd.f32 %v1379_v36, %v1365_v55  ;;  %v1660_v32 = vpop.permute.xlu1 %1659  ;;  %v1666_v5 = vpop.permute.xlu0 %1665 }
 0x3b4   :  { %2605 = vmatprep.subr.mxu0 %v1666_v5 }
 0x3b5   :  { %v1381_v26 = vrot.slane %v1380_v30, 4  ;;  %2606 = vmatpush3.msra.mxu0 %v1666_v5 }
 0x3b6   :  { %2607 = vmatprep.subr.mxu0 %v1664_v39 }
 0x3b7   :  { %v1382_v28 = vadd.f32 %v1381_v26, %v1380_v30  ;;  %v1656_v14 = vpop.permute.xlu1 %1655  ;;  %2608 = vmatpush3.msra.mxu0 %v1664_v39  ;;  %v1662_v21 = vpop.permute.xlu0 %1661 }
 0x3b8   :  { %2609 = vmatprep.subr.mxu0 %v1662_v21 }
 0x3b9   :  { %v1383_v35 = vrot.slane %v1382_v28, 2  ;;  %2610 = vmatpush3.msra.mxu0 %v1662_v21 }
 0x3ba   :  { %2611 = vmatprep.subr.mxu0 %v1660_v32 }
 0x3bb   :  { %v1384_v24 = vadd.f32 %v1383_v35, %v1382_v28  ;;  %v1652_v17 = vpop.permute.xlu1 %1651  ;;  %2612 = vmatpush3.msra.mxu0 %v1660_v32  ;;  %v1658_v15 = vpop.permute.xlu0 %1657  ;;  %v4336_v35 = vsub.f32 %v3559_v48, %v3565_v0  ;;  %v4339_v0 = vld [vmem:[#allocation10_spill] sm:$0xff] }
 0x3bc   :  { %2613 = vmatprep.subr.mxu0 %v1658_v15 }
 0x3bd   :  { %v1385_v38 = vrot.slane %v1384_v24, 1  ;;  %2614 = vmatpush3.msra.mxu0 %v1658_v15 }
 0x3be   :  { %2615 = vmatprep.subr.mxu0 %v1656_v14 }
 0x3bf   :  { %v1386_v42 = vadd.f32 %v1385_v38, %v1384_v24  ;;  %2616 = vmatpush3.msra.mxu0 %v1656_v14  ;;  %v1654_v43 = vpop.permute.xlu0 %1653  ;;  %v1648_v11 = vpop.permute.xlu1 %1647  ;;  %v1221_v24 = vmul.f32 1.442695, %v4336_v35  ;;  %v4338_v38 = vsub.f32 %v3569_v62, %v3585_v33  ;;  %v4342_v62 = vld [vmem:[#allocation14_spill] sm:$0xff]  ;;  %v4358_v35 = vsub.f32 %v3670_v49, %v3686_v31 }
 0x3c0   :  { %2617 = vmatprep.subr.mxu0 %v1654_v43  ;;  %v4343_v33 = vsub.f32 %v4342_v62, %v3627_v27  ;;  %v4353_v27 = vld [vmem:[#allocation20_spill] sm:$0xff] }
 0x3c1   :  { %v1387_v58 = vsub.f32 %v3405_v18, %v1386_v42  ;;  %2618 = vmatpush3.msra.mxu0 %v1654_v43  ;;  %v1225_v42 = vmul.f32 1.442695, %v4338_v38  ;;  %v4340_v43 = vld [vmem:[#allocation12_spill] sm:$0xff] }
 0x3c2   :  { %2619 = vmatprep.subr.mxu0 %v1652_v17 }
 0x3c3   :  { %v1388_v13 = vmul.f32 1.442695, %v1387_v58  ;;  %2620 = vmatpush3.msra.mxu0 %v1652_v17  ;;  %v1650_v9 = vpop.permute.xlu0 %1649  ;;  %v1644_v44 = vpop.permute.xlu1 %1643  ;;  %v4341_v58 = vsub.f32 %v4339_v0, %v4340_v43 }
 0x3c4   :  { %2621 = vmatprep.subr.mxu0 %v1650_v9 }
 0x3c5   :  { %2670 = vpow2.f32 %v1388_v13  ;;  %2622 = vmatpush3.msra.mxu0 %v1650_v9  ;;  %v1231_v9 = vmul.f32 1.442695, %v4343_v33  ;;  %v1249_v33 = vmul.f32 1.442695, %v4369_v54 }
 0x3c6   :  { %2623 = vmatprep.subr.mxu0 %v1648_v11  ;;  %2672 = vpow2.f32 %v1221_v24  ;;  %v1243_v24 = vmul.f32 1.442695, %v4358_v35 }
 0x3c7   :  { %2624 = vmatpush3.msra.mxu0 %v1648_v11  ;;  %v1646_v56 = vpop.permute.xlu0 %1645  ;;  %v1640_v18 = vpop.permute.xlu1 %1639  ;;  %2674 = vpow2.f32 %v1225_v42  ;;  %v1227_v11 = vmul.f32 1.442695, %v4341_v58 }
 0x3c8   :  { %2625 = vmatprep.subr.mxu0 %v1646_v56 }
 0x3c9   :  { %2626 = vmatpush3.msra.mxu0 %v1646_v56  ;;  %2676 = vpow2.f32 %v1227_v11  ;;  %v4345_v56 = vld [vmem:[#allocation6_spill] sm:$0xff] }
 0x3ca   :  { %2627 = vmatprep.subr.mxu0 %v1644_v44  ;;  %2678 = vpow2.f32 %v1231_v9 }
 0x3cb   :  { %2628 = vmatpush3.msra.mxu0 %v1644_v44  ;;  %v1642_v6 = vpop.permute.xlu0 %1641  ;;  %v4344_v44 = vld [vmem:[#allocation5_spill] sm:$0xff] }
 0x3cc   :  { %2629 = vmatprep.subr.mxu0 %v1642_v6 }
 0x3cd   :  { %2630 = vmatpush3.msra.mxu0 %v1642_v6  ;;  %v4346_v6 = vsub.f32 %v4344_v44, %v4345_v56 }
 0x3ce   :  { %2631 = vmatprep.subr.mxu0 %v1640_v18 }
 0x3cf   :  { %2632 = vmatpush3.msra.mxu0 %v1640_v18  ;;  %v1223_v18 = vmul.f32 1.442695, %v4346_v6  ;;  %v1415_v6 = vld [vmem:[#allocation3 + $0x20] sm:$0xff] }
 0x3d1   :  { %2680 = vpow2.f32 %v1223_v18  ;;  %v1413_v18 = vld [vmem:[#allocation3 + $0x10] sm:$0xff] }
 0x3d2   :  { %v2671_v60 = vpop.eup %2670 }
 0x3d3   :  { %v1390_v39 = vmul.f32 %v2671_v60, %v2187_v25  ;;  %v4348_v25 = vld [vmem:[#allocation17_spill] sm:$0xff] }
 0x3d4   :  { %v4349_v60 = vsub.f32 %v4347_v52, %v4348_v25 }
 0x3d5   :  { %v3817_v34 = vrot.slane %v1390_v39, %v4335_v45  ;;  %v3905_v45 = vpop.eup %2672 }
 0x3d6   :  { %v1235_v39 = vmul.f32 1.442695, %v4349_v60  ;;  %v1427_v29 = vmul.f32 %v3905_v45, %v1411_v23 }
 0x3d7   :  { %2637 = vmatprep.mubr.msk.f32.mxu0 %vm337_vm6, %v3817_v34  ;;  %v1396_v7 = vsel %vm338_vm5, %v3817_v34, 0.0  ;;  %v1395_v19 = vsel %vm337_vm6, %v3817_v34, 0.0  ;;  %v1399_v36 = vsel %vm341_vm7, %v3817_v34, 0.0  ;;  %v1397_v55 = vsel %vm339_vm8, %v3817_v34, 0.0 }
 0x3d8   :  { %1445 = vadd.xlane.f32.xlu1 %v1396_v7  ;;  %1443 = vadd.xlane.f32.xlu0 %v1395_v19  ;;  %v1401_v22 = vsel %vm343_vm9, %v3817_v34, 0.0  ;;  %v1398_v30 = vsel %vm340_vm10, %v3817_v34, 0.0  ;;  %v1403_v32 = vsel %vm345_vm11, %v3817_v34, 0.0  ;;  %v1400_v5 = vsel %vm342_vm12, %v3817_v34, 0.0  ;;  %v4350_v7 = vld [vmem:[#allocation7_spill] sm:$0xff]  ;;  %v4351_v19 = vld [vmem:[#allocation8_spill] sm:$0xff] }
 0x3d9   :  { %v1405_v26 = vsel %vm347_vm13, %v3817_v34, 0.0  ;;  %v1402_v28 = vsel %vm344_vm14, %v3817_v34, 0.0  ;;  %v1407_v14 = vsel %vm349_vm15, %v3817_v34, 0.0  ;;  %v1404_v21 = vsel %vm346_vm0, %v3817_v34, 0.0 }
 0x3da   :  { %vm4337_vm6 = vcmp.eq.s32.totalorder %v3492_v59, %v3398_v37  ;;  %v1406_v15 = vsel %vm348_vm1, %v3817_v34, 0.0  ;;  %v1408_v48 = vsel %vm350_vm4, %v3817_v34, 0.0  ;;  %v1410_v13 = vsel %vm352_vm2, %v3817_v34, 0.0 }
 0x3db   :  { %v1409_v17 = vsel %vm4337_vm6, %v3817_v34, 0.0  ;;  %2682 = vpow2.f32 %v1235_v39  ;;  %v1414_v39 = vld [vmem:[#allocation3 + $0x18] sm:$0xff] }
 0x3dc   :  { %1451 = vadd.xlane.f32.xlu1 %v1399_v36  ;;  %1447 = vadd.xlane.f32.xlu0 %v1397_v55  ;;  %v4352_v36 = vsub.f32 %v4350_v7, %v4351_v19 }
 0x3de   :  { %v1229_v55 = vmul.f32 1.442695, %v4352_v36 }
 0x3e0   :  { %1455 = vadd.xlane.f32.xlu1 %v1401_v22  ;;  %1449 = vadd.xlane.f32.xlu0 %v1398_v30  ;;  %v4354_v22 = vsub.f32 %v3650_v10, %v4353_v27  ;;  %2684 = vpow2.f32 %v1229_v55  ;;  %v4359_v10 = vld [vmem:[#allocation13_spill] sm:$0xff] }
 0x3e2   :  { %v1239_v30 = vmul.f32 1.442695, %v4354_v22  ;;  %v1419_v22 = vld [vmem:[#allocation3 + $0x40] sm:$0xff] }
 0x3e4   :  { %1459 = vadd.xlane.f32.xlu1 %v1403_v32  ;;  %1453 = vadd.xlane.f32.xlu0 %v1400_v5  ;;  %v3914_v32 = vpop.eup %2674  ;;  %v4355_v5 = vld [vmem:[#allocation9_spill] sm:$0xff]  ;;  %2686 = vpow2.f32 %v1239_v30  ;;  %v1416_v30 = vld [vmem:[#allocation3 + $0x28] sm:$0xff] }
 0x3e5   :  { %v1429_v60 = vmul.f32 %v3914_v32, %v1413_v18 }
 0x3e8   :  { %1463 = vadd.xlane.f32.xlu1 %v1405_v26  ;;  %1457 = vadd.xlane.f32.xlu0 %v1402_v28  ;;  %v4356_v26 = vld [vmem:[#allocation11_spill] sm:$0xff] }
 0x3e9   :  { %v4357_v28 = vsub.f32 %v4355_v5, %v4356_v26 }
 0x3ec   :  { %1467 = vadd.xlane.f32.xlu1 %v1407_v14  ;;  %1461 = vadd.xlane.f32.xlu0 %v1404_v21  ;;  %v1233_v14 = vmul.f32 1.442695, %v4357_v28 }
 0x3ee   :  { %2688 = vpow2.f32 %v1233_v14 }
 0x3ef   :  { %2690 = vpow2.f32 %v1243_v24 }
 0x3f0   :  { %1471 = vadd.xlane.f32.xlu1 %v1409_v17  ;;  %1465 = vadd.xlane.f32.xlu0 %v1406_v15  ;;  %v3923_v17 = vpop.eup %2676  ;;  %v4360_v15 = vsub.f32 %v4359_v10, %v3624_v3  ;;  %v4362_v3 = vld [vmem:[#allocation15_spill] sm:$0xff] }
 0x3f1   :  { %v3936_v31 = vpop.eup %2678  ;;  %v4363_v49 = vsub.f32 %v4362_v3, %v3643_v57  ;;  %v1430_v36 = vmul.f32 %v3923_v17, %v1414_v39 }
 0x3f2   :  { %v1237_v38 = vmul.f32 1.442695, %v4360_v15  ;;  %v2681_v58 = vpop.eup %2680  ;;  %v1432_v24 = vmul.f32 %v3936_v31, %v1416_v30 }
 0x3f3   :  { %v1241_v43 = vmul.f32 1.442695, %v4363_v49  ;;  %v3953_v57 = vpop.eup %2682  ;;  %v1428_v9 = vmul.f32 %v2681_v58, %v1412_v61  ;;  %v1422_v61 = vld [vmem:[#allocation3 + $0x58] sm:$0xff] }
 0x3f4   :  { %1469 = vadd.xlane.f32.xlu0 %v1408_v48  ;;  %v4361_v48 = vsub.f32 %v3688_v53, %v3701_v16  ;;  %2692 = vpow2.f32 %v1237_v38  ;;  %v1251_v53 = vmul.f32 1.442695, %v4364_v8  ;;  %v4365_v16 = vld [vmem:[#allocation18_spill] sm:$0xff]  ;;  %v2685_v62 = vpop.eup %2684  ;;  %v1418_v38 = vld [vmem:[#allocation3 + $0x38] sm:$0xff] }
 0x3f5   :  { %v4367_v11 = vsub.f32 %v4365_v16, %v4366_v41  ;;  %v3967_v47 = vpop.eup %2686  ;;  %v1431_v25 = vmul.f32 %v2685_v62, %v1415_v6  ;;  %v1420_v16 = vld [vmem:[#allocation3 + $0x48] sm:$0xff] }
 0x3f6   :  { %v1247_v0 = vmul.f32 1.442695, %v4361_v48 }
 0x3f8   :  { %1473 = vadd.xlane.f32.xlu0 %v1410_v13  ;;  %2694 = vpow2.f32 %v1247_v0  ;;  %v1245_v13 = vmul.f32 1.442695, %v4367_v11 }
 0x3f9   :  { %2696 = vpow2.f32 %v1241_v43 }
 0x3fa   :  { %2698 = vpow2.f32 %v1251_v53  ;;  %v1423_v53 = vld [vmem:[#allocation3 + $0x60] sm:$0xff] }
 0x3fb   :  { %2700 = vpow2.f32 %v1245_v13  ;;  %v2689_v40 = vpop.eup %2688 }
 0x3fc   :  { %v3981_v51 = vpop.eup %2690  ;;  %2702 = vpow2.f32 %v1249_v33 }
 0x401   :  { %1525 = vperm.xlu1 %2669, %v3905_v45   ;;  %v2693_v1 = vpop.eup %2692 }
 0x402   :  { %v1435_v35 = vmul.f32 %v2693_v1, %v1419_v22 }
 0x404   :  { %v1638_v21 = vpop.permute.xlu0 %1637 }
 0x405   :  { %1535 = vperm.xlu1 %2669, %v3914_v32   ;;  %2633 = vmatprep.subr.mxu0 %v1638_v21  ;;  %v3992_v46 = vpop.eup %2694 }
 0x406   :  { %2634 = vmatpush3.msra.mxu0 %v1638_v21  ;;  %v3998_v2 = vpop.eup %2696 }
 0x407   :  { %v4006_v50 = vpop.eup %2698 }
 0x408   :  { %v1636_v42 = vpop.permute.xlu1 %1635  ;;  %v4012_v63 = vpop.eup %2700 }
 0x409   :  { %1540 = vperm.xlu1 %2669, %v3923_v17   ;;  %2635 = vmatprep.subr.mxu0 %v1636_v42  ;;  %v4024_v4 = vpop.eup %2702  ;;  %v1421_v17 = vld [vmem:[#allocation3 + $0x50] sm:$0xff]  ;;  %v1439_v33 = vmul.f32 %v4012_v63, %v1423_v53 }
 0x40a   :  { %2636 = vmatpush3.msra.mxu0 %v1636_v42  ;;  %v1437_v43 = vmul.f32 %v3998_v2, %v1421_v17 }
 0x40b   :  { %2638 = vmatmul.mubr.msk.f32.vlgmr.msra.gmra.mxu0 %vm338_vm5, %v3817_v34 }
 0x40c   :  { %2640 = vmatprep.mubr.msk.f32.mxu0 %vm339_vm8, %v3817_v34 }
 0x40d   :  { %1550 = vperm.xlu1 %2669, %v3936_v31  }
 0x40e   :  { %1530 = vperm.xlu0 %2668, %v2681_v58   ;;  %v1434_v58 = vmul.f32 %v3953_v57, %v1418_v38 }
 0x40f   :  { %2641 = vmatmul.mubr.msk.f32.gmra.mxu0 %vm340_vm10, %v3817_v34 }
 0x410   :  { %2643 = vmatprep.mubr.msk.f32.mxu0 %vm341_vm7, %v3817_v34 }
 0x411   :  { %1560 = vperm.xlu1 %2669, %v3953_v57  }
 0x412   :  { %1545 = vperm.xlu0 %2668, %v2685_v62  }
 0x413   :  { %2644 = vmatmul.mubr.msk.f32.gmra.mxu0 %vm342_vm12, %v3817_v34 }
 0x414   :  { %2646 = vmatprep.mubr.msk.f32.mxu0 %vm343_vm9, %v3817_v34 }
 0x415   :  { %1570 = vperm.xlu1 %2669, %v3967_v47  }
 0x416   :  { %1555 = vperm.xlu0 %2668, %v2689_v40  }
 0x417   :  { %2647 = vmatmul.mubr.msk.f32.gmra.mxu0 %vm344_vm14, %v3817_v34 }
 0x418   :  { %2649 = vmatprep.mubr.msk.f32.mxu0 %vm345_vm11, %v3817_v34 }
 0x419   :  { %1580 = vperm.xlu1 %2669, %v3981_v51  }
 0x41a   :  { %1565 = vperm.xlu0 %2668, %v2693_v1  }
 0x41b   :  { %2650 = vmatmul.mubr.msk.f32.gmra.mxu0 %vm346_vm0, %v3817_v34 }
 0x41c   :  { %2652 = vmatprep.mubr.msk.f32.mxu0 %vm347_vm13, %v3817_v34 }
 0x41d   :  { %1590 = vperm.xlu1 %2669, %v3992_v46  }
 0x41e   :  { %1575 = vperm.xlu0 %2668, %v3998_v2   ;;  %v1425_v2 = vld [vmem:[#allocation3 + $0x70] sm:$0xff] }
 0x41f   :  { %2653 = vmatmul.mubr.msk.f32.gmra.mxu0 %vm348_vm1, %v3817_v34  ;;  %vm4370_vm1 = vmmov %vm4337_vm6 }
 0x420   :  { %2655 = vmatprep.mubr.msk.f32.mxu0 %vm349_vm15, %v3817_v34 }
 0x421   :  { %1600 = vperm.xlu1 %2669, %v4006_v50  }
 0x422   :  { %1585 = vperm.xlu0 %2668, %v4012_v63   ;;  %v1441_v63 = vmul.f32 %v4024_v4, %v1425_v2  ;;  %v1510_v2 = vld [vmem:[#allocation4 + $0x18] sm:$0xff] }
 0x423   :  { %2656 = vmatmul.mubr.msk.f32.gmra.mxu0 %vm350_vm4, %v3817_v34  ;;  %vm4371_vm4 = vcmask 7168  }
 0x424   :  { %2658 = vmatprep.mubr.msk.f32.mxu0 %vm4370_vm1, %v3817_v34  ;;  %vm4372_vm5 = vmmov %vm4371_vm4 }
 0x425   :  { %vm4373_vm7 = vmmov %vm4371_vm4 }
 0x426   :  { %1595 = vperm.xlu0 %2668, %v4024_v4   ;;  %vm4374_vm8 = vmmov %vm4371_vm4 }
 0x427   :  { %2659 = vmatmul.mubr.msk.f32.gmra.mxu0 %vm352_vm2, %v3817_v34  ;;  %v1417_v34 = vld [vmem:[#allocation3 + $0x30] sm:$0xff]  ;;  %vm4375_vm9 = vmmov %vm4371_vm4 }
 0x428   :  { %v1433_v45 = vmul.f32 %v2689_v40, %v1417_v34  ;;  %vm4376_vm10 = vmmov %vm4371_vm4  ;;  %v1436_v40 = vmul.f32 %v3967_v47, %v1420_v16  ;;  %v1438_v47 = vmul.f32 %v3981_v51, %v1422_v61 }
 0x429   :  { %vm4377_vm11 = vmmov %vm4371_vm4 }
 0x42a   :  { %vm4378_vm12 = vmmov %vm4371_vm4 }
 0x42b   :  { %vm4379_vm13 = vmmov %vm4371_vm4 }
 0x42c   :  { %vm4380_vm14 = vmmov %vm4371_vm4 }
 0x42d   :  { %vm4381_vm15 = vmmov %vm4371_vm4 }
 0x42e   :  { %vm4382_vm0 = vmmov %vm4371_vm4 }
 0x42f   :  { %vm4383_vm2 = vmmov %vm4382_vm0 }
 0x430   :  { %vm4384_vm3 = vmmov %vm4382_vm0 }
 0x431   :  { %vm4385_vm6 = vmmov %vm4382_vm0 }
 0x432   :  { %vm4386_vm1 = vmmov %vm4382_vm0 }
 0x461   :  { %v1446_v44 = vpop.xlane.xlu1 %1445  ;;  %v1444_v56 = vpop.xlane.xlu0 %1443 }
 0x462   :  { %v1476_v59 = vadd.f32 %v1446_v44, %v1428_v9  ;;  %v1475_v52 = vadd.f32 %v1444_v56, %v1427_v29 }
 0x464   :  { %1492 = vst.msk [vmem:[#allocation3 + $0x8] sm:$0xff] %vm4371_vm4, %v1476_v59  ;;  %vm4387_vm4 = vcmask 261120  }
 0x465   :  { %1491 = vst.msk [vmem:[#allocation3] sm:$0xff] %vm4372_vm5, %v1475_v52  ;;  %v1452_v37 = vpop.xlane.xlu1 %1451  ;;  %v1448_v20 = vpop.xlane.xlu0 %1447  ;;  %v1424_v52 = vld [vmem:[#allocation3 + $0x68] sm:$0xff]  ;;  %vm4388_vm5 = vmmov %vm4387_vm4 }
 0x466   :  { %v1479_v7 = vadd.f32 %v1452_v37, %v1431_v25  ;;  %v1477_v19 = vadd.f32 %v1448_v20, %v1429_v60  ;;  %v1440_v51 = vmul.f32 %v3992_v46, %v1424_v52 }
 0x468   :  { %1495 = vst.msk [vmem:[#allocation3 + $0x20] sm:$0xff] %vm4373_vm7, %v1479_v7  ;;  %vm4389_vm7 = vmmov %vm4387_vm4 }
 0x469   :  { %1493 = vst.msk [vmem:[#allocation3 + $0x10] sm:$0xff] %vm4374_vm8, %v1477_v19  ;;  %v1456_v55 = vpop.xlane.xlu1 %1455  ;;  %v1450_v27 = vpop.xlane.xlu0 %1449  ;;  %vm4390_vm8 = vmmov %vm4387_vm4 }
 0x46a   :  { %v1481_v5 = vadd.f32 %v1456_v55, %v1433_v45  ;;  %v1478_v26 = vadd.f32 %v1450_v27, %v1430_v36  ;;  %v1426_v45 = vld [vmem:[#allocation3 + $0x78] sm:$0xff] }
 0x46b   :  { %v1864_v32 = vld [vmem:[#allocation3 + $0x8] sm:$0xff] }
 0x46c   :  { %v1863_v28 = vld [vmem:[#allocation3] sm:$0xff]  ;;  %v1880_v14 = vmax.f32 %v1864_v32, 1e-30  ;;  %1497 = vst.msk [vmem:[#allocation3 + $0x30] sm:$0xff] %vm4375_vm9, %v1481_v5  ;;  %vm4391_vm9 = vmmov %vm4387_vm4 }
 0x46d   :  { %v1879_v21 = vmax.f32 %v1863_v28, 1e-30  ;;  %1494 = vst.msk [vmem:[#allocation3 + $0x18] sm:$0xff] %vm4376_vm10, %v1478_v26  ;;  %v1460_v10 = vpop.xlane.xlu1 %1459  ;;  %v1454_v15 = vpop.xlane.xlu0 %1453  ;;  %v1442_v26 = vmul.f32 %v4006_v50, %v1426_v45  ;;  %vm4392_vm10 = vmmov %vm4387_vm4 }
 0x46e   :  { %2704 = vrcp.f32 %v1880_v14  ;;  %v1483_v42 = vadd.f32 %v1460_v10, %v1435_v35  ;;  %v1480_v48 = vadd.f32 %v1454_v15, %v1432_v24 }
 0x46f   :  { %2706 = vrcp.f32 %v1879_v21  ;;  %v1867_v0 = vld [vmem:[#allocation3 + $0x20] sm:$0xff] }
 0x470   :  { %v1865_v3 = vld [vmem:[#allocation3 + $0x10] sm:$0xff]  ;;  %1499 = vst.msk [vmem:[#allocation3 + $0x40] sm:$0xff] %vm4377_vm11, %v1483_v42  ;;  %v1883_v41 = vmax.f32 %v1867_v0, 1e-30  ;;  %vm4393_vm11 = vmmov %vm4387_vm4 }
 0x471   :  { %v1881_v49 = vmax.f32 %v1865_v3, 1e-30  ;;  %1496 = vst.msk [vmem:[#allocation3 + $0x28] sm:$0xff] %vm4378_vm12, %v1480_v48  ;;  %v1464_v31 = vpop.xlane.xlu1 %1463  ;;  %v1458_v8 = vpop.xlane.xlu0 %1457  ;;  %vm4394_vm12 = vmmov %vm4387_vm4 }
 0x472   :  { %v1485_v11 = vadd.f32 %v1464_v31, %v1437_v43  ;;  %v1482_v13 = vadd.f32 %v1458_v8, %v1434_v58 }
 0x473   :  { %2708 = vrcp.f32 %v1881_v49  ;;  %v1869_v62 = vld [vmem:[#allocation3 + $0x30] sm:$0xff] }
 0x474   :  { %v1866_v12 = vld [vmem:[#allocation3 + $0x18] sm:$0xff]  ;;  %1501 = vst.msk [vmem:[#allocation3 + $0x50] sm:$0xff] %vm4379_vm13, %v1485_v11  ;;  %2710 = vrcp.f32 %v1883_v41  ;;  %v1885_v23 = vmax.f32 %v1869_v62, 1e-30  ;;  %vm4395_vm13 = vmmov %vm4387_vm4 }
 0x475   :  { %v1882_v54 = vmax.f32 %v1866_v12, 1e-30  ;;  %1498 = vst.msk [vmem:[#allocation3 + $0x38] sm:$0xff] %vm4380_vm14, %v1482_v13  ;;  %v1468_v57 = vpop.xlane.xlu1 %1467  ;;  %v1462_v1 = vpop.xlane.xlu0 %1461  ;;  %vm4396_vm14 = vmmov %vm4387_vm4 }
 0x476   :  { %v1487_v9 = vadd.f32 %v1468_v57, %v1439_v33  ;;  %v1484_v29 = vadd.f32 %v1462_v1, %v1436_v40  ;;  %v1508_v33 = vld [vmem:[#allocation4 + $0x8] sm:$0xff]  ;;  %v1507_v57 = vld [vmem:[#allocation4] sm:$0xff] }
 0x477   :  { %2712 = vrcp.f32 %v1882_v54  ;;  %v1871_v44 = vld [vmem:[#allocation3 + $0x40] sm:$0xff] }
 0x478   :  { %v1868_v56 = vld [vmem:[#allocation3 + $0x28] sm:$0xff]  ;;  %1503 = vst.msk [vmem:[#allocation3 + $0x60] sm:$0xff] %vm4381_vm15, %v1487_v9  ;;  %2714 = vrcp.f32 %v1885_v23  ;;  %v1887_v25 = vmax.f32 %v1871_v44, 1e-30  ;;  %v1509_v44 = vld [vmem:[#allocation4 + $0x10] sm:$0xff]  ;;  %vm4397_vm15 = vmmov %vm4387_vm4 }
 0x479   :  { %v1884_v6 = vmax.f32 %v1868_v56, 1e-30  ;;  %1500 = vst.msk [vmem:[#allocation3 + $0x48] sm:$0xff] %vm4382_vm0, %v1484_v29  ;;  %v1472_v18 = vpop.xlane.xlu1 %1471  ;;  %v1466_v59 = vpop.xlane.xlu0 %1465  ;;  %vm4398_vm0 = vmmov %vm4387_vm4 }
 0x47a   :  { %v1489_v60 = vadd.f32 %v1472_v18, %v1441_v63  ;;  %v1486_v37 = vadd.f32 %v1466_v59, %v1438_v47  ;;  %v1512_v18 = vld [vmem:[#allocation4 + $0x28] sm:$0xff] }
 0x47b   :  { %v2705_v20 = vpop.eup %2704  ;;  %2716 = vrcp.f32 %v1884_v6  ;;  %v1873_v34 = vld [vmem:[#allocation3 + $0x50] sm:$0xff] }
 0x47c   :  { %v1870_v39 = vld [vmem:[#allocation3 + $0x38] sm:$0xff]  ;;  %v2707_v7 = vpop.eup %2706  ;;  %1505 = vst.msk [vmem:[#allocation3 + $0x70] sm:$0xff] %vm4383_vm2, %v1489_v60  ;;  %1934 = vperm.xlu1 %2669, %v2705_v20   ;;  %2718 = vrcp.f32 %v1887_v25  ;;  %v1889_v36 = vmax.f32 %v1873_v34, 1e-30  ;;  %v1511_v60 = vld [vmem:[#allocation4 + $0x20] sm:$0xff]  ;;  %vm4399_vm2 = vmmov %vm4398_vm0 }
 0x47d   :  { %v1886_v19 = vmax.f32 %v1870_v39, 1e-30  ;;  %1502 = vst.msk [vmem:[#allocation3 + $0x58] sm:$0xff] %vm4384_vm3, %v1486_v37  ;;  %1929 = vperm.xlu0 %2668, %v2707_v7   ;;  %v1470_v4 = vpop.xlane.xlu0 %1469  ;;  %v1526_v11 = vpop.permute.xlu1 %1525  ;;  %v1514_v7 = vld [vmem:[#allocation4 + $0x38] sm:$0xff]  ;;  %vm4400_vm3 = vmmov %vm4398_vm0 }
 0x47e   :  { %v1488_v55 = vadd.f32 %v1470_v4, %v1440_v51  ;;  %v1603_v9 = vmul.f32 %v1526_v11, %v1507_v57 }
 0x47f   :  { %2720 = vrcp.f32 %v1886_v19  ;;  %v1875_v27 = vld [vmem:[#allocation3 + $0x60] sm:$0xff] }
 0x480   :  { %v1872_v22 = vld [vmem:[#allocation3 + $0x48] sm:$0xff]  ;;  %v2709_v30 = vpop.eup %2708  ;;  %1504 = vst.msk [vmem:[#allocation3 + $0x68] sm:$0xff] %vm4385_vm6, %v1488_v55  ;;  %2722 = vrcp.f32 %v1889_v36  ;;  %v1891_v28 = vmax.f32 %v1875_v27, 1e-30  ;;  %v1513_v36 = vld [vmem:[#allocation4 + $0x30] sm:$0xff]  ;;  %vm4401_vm6 = vmmov %vm4398_vm0 }
 0x481   :  { %v1888_v5 = vmax.f32 %v1872_v22, 1e-30  ;;  %1939 = vperm.xlu0 %2668, %v2709_v30   ;;  %v1474_v32 = vpop.xlane.xlu0 %1473  ;;  %v2711_v14 = vpop.eup %2710  ;;  %v1516_v30 = vld [vmem:[#allocation4 + $0x48] sm:$0xff] }
 0x482   :  { %v1490_v46 = vadd.f32 %v1474_v32, %v1442_v26  ;;  %v1536_v13 = vpop.permute.xlu1 %1535 }
 0x483   :  { %2724 = vrcp.f32 %v1888_v5  ;;  %v1877_v24 = vld [vmem:[#allocation3 + $0x70] sm:$0xff]  ;;  %v1605_v52 = vmul.f32 %v1536_v13, %v1509_v44  ;;  %v1522_v13 = vld [vmem:[#allocation4 + $0x78] sm:$0xff] }
 0x484   :  { %v1874_v21 = vld [vmem:[#allocation3 + $0x58] sm:$0xff]  ;;  %v2713_v35 = vpop.eup %2712  ;;  %1506 = vst.msk [vmem:[#allocation3 + $0x78] sm:$0xff] %vm4386_vm1, %v1490_v46  ;;  %2726 = vrcp.f32 %v1891_v28  ;;  %v1893_v17 = vmax.f32 %v1877_v24, 1e-30  ;;  %v1515_v46 = vld [vmem:[#allocation4 + $0x40] sm:$0xff]  ;;  %vm4402_vm1 = vmmov %vm4398_vm0 }
 0x485   :  { %v1890_v10 = vmax.f32 %v1874_v21, 1e-30  ;;  %1949 = vperm.xlu0 %2668, %v2711_v14   ;;  %1944 = vperm.xlu1 %2669, %v2713_v35   ;;  %v2715_v15 = vpop.eup %2714 }
 0x486   :  { %v1541_v62 = vpop.permute.xlu1 %1540 }
 0x487   :  { %2728 = vrcp.f32 %v1890_v10  ;;  %v1876_v50 = vld [vmem:[#allocation3 + $0x68] sm:$0xff]  ;;  %v1606_v63 = vmul.f32 %v1541_v62, %v1510_v2  ;;  %v1518_v10 = vld [vmem:[#allocation4 + $0x58] sm:$0xff] }
 0x488   :  { %v2717_v38 = vpop.eup %2716  ;;  %v1892_v42 = vmax.f32 %v1876_v50, 1e-30 }
 0x489   :  { %1959 = vperm.xlu0 %2668, %v2715_v15   ;;  %1954 = vperm.xlu1 %2669, %v2717_v38   ;;  %v2719_v48 = vpop.eup %2718  ;;  %v1531_v12 = vpop.permute.xlu0 %1530 }
 0x48a   :  { %2730 = vrcp.f32 %v1892_v42  ;;  %v1551_v54 = vpop.permute.xlu1 %1550  ;;  %v1604_v1 = vmul.f32 %v1531_v12, %v1508_v33  ;;  %v1517_v42 = vld [vmem:[#allocation4 + $0x50] sm:$0xff] }
 0x48b   :  { %2732 = vrcp.f32 %v1893_v17  ;;  %v1878_v0 = vld [vmem:[#allocation3 + $0x78] sm:$0xff]  ;;  %v1608_v34 = vmul.f32 %v1551_v54, %v1512_v18 }
 0x48c   :  { %v2721_v3 = vpop.eup %2720  ;;  %v1894_v49 = vmax.f32 %v1878_v0, 1e-30 }
 0x48d   :  { %1969 = vperm.xlu0 %2668, %v2719_v48   ;;  %1964 = vperm.xlu1 %2669, %v2721_v3   ;;  %v2723_v43 = vpop.eup %2722  ;;  %v1546_v40 = vpop.permute.xlu0 %1545 }
 0x48e   :  { %2734 = vrcp.f32 %v1894_v49  ;;  %v1561_v61 = vpop.permute.xlu1 %1560  ;;  %v1607_v4 = vmul.f32 %v1546_v40, %v1511_v60  ;;  %v1520_v49 = vld [vmem:[#allocation4 + $0x68] sm:$0xff]  ;;  %v1521_v40 = vld [vmem:[#allocation4 + $0x70] sm:$0xff] }
 0x48f   :  { %v1610_v27 = vmul.f32 %v1561_v61, %v1514_v7 }
 0x490   :  { %v2725_v58 = vpop.eup %2724 }
 0x491   :  { %1979 = vperm.xlu0 %2668, %v2723_v43   ;;  %1974 = vperm.xlu1 %2669, %v2725_v58   ;;  %v2727_v31 = vpop.eup %2726  ;;  %v1556_v56 = vpop.permute.xlu0 %1555 }
 0x492   :  { %v1571_v37 = vpop.permute.xlu1 %1570  ;;  %v1609_v32 = vmul.f32 %v1556_v56, %v1513_v36 }
 0x493   :  { %v1612_v35 = vmul.f32 %v1571_v37, %v1516_v30 }
 0x494   :  { %v2729_v8 = vpop.eup %2728 }
 0x495   :  { %1989 = vperm.xlu0 %2668, %v2727_v31   ;;  %1984 = vperm.xlu1 %2669, %v2729_v8   ;;  %v1566_v19 = vpop.permute.xlu0 %1565 }
 0x496   :  { %v1581_v5 = vpop.permute.xlu1 %1580  ;;  %v1611_v17 = vmul.f32 %v1566_v19, %v1515_v46 }
 0x497   :  { %v2731_v53 = vpop.eup %2730  ;;  %v1614_v0 = vmul.f32 %v1581_v5, %v1518_v10 }
 0x498   :  { %v2733_v16 = vpop.eup %2732 }
 0x499   :  { %1999 = vperm.xlu0 %2668, %v2733_v16   ;;  %1994 = vperm.xlu1 %2669, %v2731_v53   ;;  %v1576_v14 = vpop.permute.xlu0 %1575  ;;  %v1519_v53 = vld [vmem:[#allocation4 + $0x60] sm:$0xff] }
 0x49a   :  { %v1591_v38 = vpop.permute.xlu1 %1590  ;;  %v1613_v31 = vmul.f32 %v1576_v14, %v1517_v42 }
 0x49b   :  { %v2735_v41 = vpop.eup %2734 }
 0x49d   :  { %2004 = vperm.xlu1 %2669, %v2735_v41   ;;  %v1586_v43 = vpop.permute.xlu0 %1585  ;;  %v1616_v41 = vmul.f32 %v1591_v38, %v1520_v49  ;;  %v2029_v38 = vld [vmem:[%s4290_s6 + $0x30] sm:$0xff] }
 0x49e   :  { %v1601_v62 = vpop.permute.xlu1 %1600  ;;  %v1615_v54 = vmul.f32 %v1586_v43, %v1519_v53 }
 0x49f   :  { %v1618_v2 = vmul.f32 %v1601_v62, %v1522_v13  ;;  %v2031_v13 = vld [vmem:[%s4290_s6 + $0x40] sm:$0xff] }
 0x4a1   :  { %v1596_v57 = vpop.permute.xlu0 %1595 }
 0x4cb   :  { %v2639_v23 = vpop.f32.mrf.mxu0 }
 0x4cc   :  { %v1829_v29 = vadd.f32 %v2639_v23, %v1604_v1 }
 0x4cd   :  { %v1749_v6 = vpop.f32.mrf.mxu0 }
 0x4ce   :  { %1845 = vst.msk [vmem:[#allocation4 + $0x8] sm:$0xff] %vm4387_vm4, %v1829_v29  ;;  %v1828_v47 = vadd.f32 %v1749_v6, %v1603_v9  ;;  %v1617_v9 = vmul.f32 %v1596_v57, %v1521_v40  ;;  %v2024_v6 = vld [vmem:[%s4290_s6 + $0x8] sm:$0xff]  ;;  %vm4403_vm4 = vmmov %vm4398_vm0 }
 0x4cf   :  { %v2642_v59 = vpop.f32.mrf.mxu0 }
 0x4d0   :  { %1844 = vst.msk [vmem:[#allocation4] sm:$0xff] %vm4388_vm5, %v1828_v47  ;;  %v1831_v25 = vadd.f32 %v2642_v59, %v1606_v63  ;;  %vm4404_vm5 = vmmov %vm4398_vm0 }
 0x4d1   :  { %v1759_v20 = vpop.f32.mrf.mxu0 }
 0x4d2   :  { %1847 = vst.msk [vmem:[#allocation4 + $0x18] sm:$0xff] %vm4389_vm7, %v1831_v25  ;;  %v1830_v39 = vadd.f32 %v1759_v20, %v1605_v52  ;;  %v2023_v52 = vld [vmem:[%s4290_s6] sm:$0xff]  ;;  %vm4405_vm7 = vmmov %vm4398_vm0 }
 0x4d3   :  { %v2645_v51 = vpop.f32.mrf.mxu0 }
 0x4d4   :  { %1846 = vst.msk [vmem:[#allocation4 + $0x10] sm:$0xff] %vm4390_vm8, %v1830_v39  ;;  %v1833_v45 = vadd.f32 %v2645_v51, %v1608_v34  ;;  %v2025_v39 = vld [vmem:[%s4290_s6 + $0x10] sm:$0xff]  ;;  %vm4406_vm8 = vmmov %vm4398_vm0 }
 0x4d5   :  { %v1769_v55 = vpop.f32.mrf.mxu0  ;;  %v1912_v47 = vld [vmem:[#allocation4 + $0x8] sm:$0xff] }
 0x4d6   :  { %1849 = vst.msk [vmem:[#allocation4 + $0x28] sm:$0xff] %vm4391_vm9, %v1833_v45  ;;  %v1832_v22 = vadd.f32 %v1769_v55, %v1607_v4  ;;  %v2026_v55 = vld [vmem:[%s4290_s6 + $0x18] sm:$0xff]  ;;  %vm4407_vm9 = vmmov %vm4398_vm0 }
 0x4d7   :  { %v2648_v26 = vpop.f32.mrf.mxu0  ;;  %v1911_v59 = vld [vmem:[#allocation4] sm:$0xff] }
 0x4d8   :  { %1848 = vst.msk [vmem:[#allocation4 + $0x20] sm:$0xff] %vm4392_vm10, %v1832_v22  ;;  %v1835_v28 = vadd.f32 %v2648_v26, %v1610_v27  ;;  %v2027_v26 = vld [vmem:[%s4290_s6 + $0x20] sm:$0xff]  ;;  %vm4408_vm10 = vmmov %vm4398_vm0 }
 0x4d9   :  { %v1779_v21 = vpop.f32.mrf.mxu0  ;;  %v1914_v22 = vld [vmem:[#allocation4 + $0x18] sm:$0xff] }
 0x4da   :  { %1851 = vst.msk [vmem:[#allocation4 + $0x38] sm:$0xff] %vm4393_vm11, %v1835_v28  ;;  %v1834_v24 = vadd.f32 %v1779_v21, %v1609_v32  ;;  %vm4409_vm11 = vmmov %vm4398_vm0 }
 0x4db   :  { %v2651_v15 = vpop.f32.mrf.mxu0  ;;  %v1913_v34 = vld [vmem:[#allocation4 + $0x10] sm:$0xff] }
 0x4dc   :  { %1850 = vst.msk [vmem:[#allocation4 + $0x30] sm:$0xff] %vm4394_vm12, %v1834_v24  ;;  %v1837_v50 = vadd.f32 %v2651_v15, %v1612_v35  ;;  %v2028_v24 = vld [vmem:[%s4290_s6 + $0x28] sm:$0xff]  ;;  %vm4410_vm12 = vmmov %vm4398_vm0 }
 0x4dd   :  { %v1789_v48 = vpop.f32.mrf.mxu0  ;;  %v1916_v15 = vld [vmem:[#allocation4 + $0x28] sm:$0xff] }
 0x4de   :  { %1853 = vst.msk [vmem:[#allocation4 + $0x48] sm:$0xff] %vm4395_vm13, %v1837_v50  ;;  %v1836_v3 = vadd.f32 %v1789_v48, %v1611_v17  ;;  %vm4411_vm13 = vmmov %vm4398_vm0 }
 0x4df   :  { %v2654_v58 = vpop.f32.mrf.mxu0  ;;  %v1915_v5 = vld [vmem:[#allocation4 + $0x20] sm:$0xff] }
 0x4e0   :  { %1852 = vst.msk [vmem:[#allocation4 + $0x40] sm:$0xff] %vm4396_vm14, %v1836_v3  ;;  %v1839_v8 = vadd.f32 %v2654_v58, %v1614_v0  ;;  %vm4412_vm14 = vmmov %vm4398_vm0 }
 0x4e1   :  { %v1799_v16 = vpop.f32.mrf.mxu0 }
 0x4e2   :  { %1855 = vst.msk [vmem:[#allocation4 + $0x58] sm:$0xff] %vm4397_vm15, %v1839_v8  ;;  %v1838_v11 = vadd.f32 %v1799_v16, %v1613_v31  ;;  %v2030_v31 = vld [vmem:[%s4290_s6 + $0x38] sm:$0xff]  ;;  %vm4413_vm15 = vmmov %vm4398_vm0 }
 0x4e3   :  { %v2657_v12 = vpop.f32.mrf.mxu0  ;;  %v1917_v50 = vld [vmem:[#allocation4 + $0x30] sm:$0xff]  ;;  %v1918_v16 = vld [vmem:[#allocation4 + $0x38] sm:$0xff] }
 0x4e4   :  { %1854 = vst.msk [vmem:[#allocation4 + $0x50] sm:$0xff] %vm4398_vm0, %v1838_v11  ;;  %v1841_v33 = vadd.f32 %v2657_v12, %v1616_v41 }
 0x4e5   :  { %v1809_v1 = vpop.f32.mrf.mxu0 }
 0x4e6   :  { %1857 = vst.msk [vmem:[#allocation4 + $0x68] sm:$0xff] %vm4399_vm2, %v1841_v33  ;;  %v1840_v61 = vadd.f32 %v1809_v1, %v1615_v54  ;;  %vm4414_vm2 = vmmov %vm4398_vm0 }
 0x4e7   :  { %v2660_v23 = vpop.f32.mrf.mxu0  ;;  %v1919_v11 = vld [vmem:[#allocation4 + $0x40] sm:$0xff] }
 0x4e8   :  { %1856 = vst.msk [vmem:[#allocation4 + $0x60] sm:$0xff] %vm4400_vm3, %v1840_v61  ;;  %v1843_v29 = vadd.f32 %v2660_v23, %v1618_v2  ;;  %v2032_v2 = vld [vmem:[%s4290_s6 + $0x48] sm:$0xff]  ;;  %vm4415_vm3 = vmmov %vm4398_vm0 }
 0x4e9   :  { %v1819_v44 = vpop.f32.mrf.mxu0 }
 0x4ea   :  { %1859 = vst.msk [vmem:[#allocation4 + $0x78] sm:$0xff] %vm4401_vm6, %v1843_v29  ;;  %v1842_v56 = vadd.f32 %v1819_v44, %v1617_v9  ;;  %v1920_v9 = vld [vmem:[#allocation4 + $0x48] sm:$0xff]  ;;  %vm4416_vm6 = vmmov %vm4398_vm0 }
 0x4eb   :  { %v1921_v44 = vld [vmem:[#allocation4 + $0x50] sm:$0xff] }
 0x4ec   :  { %1858 = vst.msk [vmem:[#allocation4 + $0x70] sm:$0xff] %vm4402_vm1, %v1842_v56  ;;  %v2033_v56 = vld [vmem:[%s4290_s6 + $0x50] sm:$0xff]  ;;  %vm4417_vm1 = vmmov %vm4398_vm0 }
 0x4f7   :  { %v1935_v63 = vpop.permute.xlu1 %1934 }
 0x4f8   :  { %v2008_v18 = vmul.f32 %v1935_v63, %v1912_v47  ;;  %v1930_v25 = vpop.permute.xlu0 %1929 }
 0x4f9   :  { %v2007_v60 = vmul.f32 %v1930_v25, %v1911_v59 }
 0x4fa   :  { %v4081_v37 = vadd.f32 %v2024_v6, %v2008_v18 }
 0x4fb   :  { %v4083_v20 = vadd.f32 %v2023_v52, %v2007_v60  ;;  %v2034_v60 = vld [vmem:[%s4290_s6 + $0x58] sm:$0xff] }
 0x4fc   :  { %v1940_v7 = vpop.permute.xlu0 %1939  ;;  %v2056_v19 = vmul.f32 %v4081_v37, %v4081_v37 }
 0x4fd   :  { %v2009_v51 = vmul.f32 %v1940_v7, %v1913_v34  ;;  %v2055_v4 = vmul.f32 %v4083_v20, %v4083_v20  ;;  %v1922_v7 = vld [vmem:[#allocation4 + $0x58] sm:$0xff] }
 0x4fe   :  { %v2074_v45 = vsel %vm4403_vm4, %v2056_v19, 0.0  ;;  %vm4418_vm4 = vmmov %vm4398_vm0 }
 0x4ff   :  { %v4093_v36 = vadd.f32 %v2025_v39, %v2009_v51  ;;  %2075 = vadd.xlane.f32.xlu1 %v2074_v45  ;;  %v2071_v27 = vsel %vm4404_vm5, %v2055_v4, 0.0  ;;  %v1923_v51 = vld [vmem:[#allocation4 + $0x60] sm:$0xff]  ;;  %vm4419_vm5 = vmmov %vm4398_vm0 }
 0x500   :  { %v1945_v30 = vpop.permute.xlu1 %1944  ;;  %2072 = vadd.xlane.f32.xlu0 %v2071_v27  ;;  %v1950_v32 = vpop.permute.xlu0 %1949  ;;  %v2035_v4 = vld [vmem:[%s4290_s6 + $0x60] sm:$0xff] }
 0x501   :  { %v2010_v28 = vmul.f32 %v1945_v30, %v1914_v22  ;;  %v2011_v46 = vmul.f32 %v1950_v32, %v1915_v5  ;;  %v2057_v14 = vmul.f32 %v4093_v36, %v4093_v36  ;;  %v2036_v32 = vld [vmem:[%s4290_s6 + $0x68] sm:$0xff] }
 0x503   :  { %v4104_v21 = vadd.f32 %v2026_v55, %v2010_v28  ;;  %v4106_v35 = vadd.f32 %v2027_v26, %v2011_v46  ;;  %v2077_v10 = vsel %vm4405_vm7, %v2057_v14, 0.0  ;;  %v1924_v14 = vld [vmem:[#allocation4 + $0x68] sm:$0xff]  ;;  %vm4420_vm7 = vmmov %vm4398_vm0 }
 0x504   :  { %v1955_v17 = vpop.permute.xlu1 %1954  ;;  %2078 = vadd.xlane.f32.xlu0 %v2077_v10  ;;  %v1960_v42 = vpop.permute.xlu0 %1959  ;;  %v1925_v10 = vld [vmem:[#allocation4 + $0x70] sm:$0xff] }
 0x505   :  { %v2012_v48 = vmul.f32 %v1955_v17, %v1916_v15  ;;  %v2013_v0 = vmul.f32 %v1960_v42, %v1917_v50  ;;  %v2058_v3 = vmul.f32 %v4104_v21, %v4104_v21  ;;  %v2059_v49 = vmul.f32 %v4106_v35, %v4106_v35  ;;  %v2037_v15 = vld [vmem:[%s4290_s6 + $0x70] sm:$0xff] }
 0x507   :  { %v4119_v43 = vadd.f32 %v2028_v24, %v2012_v48  ;;  %v4121_v58 = vadd.f32 %v2029_v38, %v2013_v0  ;;  %v2080_v8 = vsel %vm4406_vm8, %v2058_v3, 0.0  ;;  %v2083_v53 = vsel %vm4407_vm9, %v2059_v49, 0.0  ;;  %vm4421_vm8 = vmmov %vm4398_vm0 }
 0x508   :  { %v1965_v41 = vpop.permute.xlu1 %1964  ;;  %2081 = vadd.xlane.f32.xlu0 %v2080_v8  ;;  %2084 = vadd.xlane.f32.xlu1 %v2083_v53  ;;  %v1970_v62 = vpop.permute.xlu0 %1969  ;;  %v1926_v8 = vld [vmem:[#allocation4 + $0x78] sm:$0xff]  ;;  %vm4422_vm9 = vmmov %vm4398_vm0 }
 0x509   :  { %v2014_v12 = vmul.f32 %v1965_v41, %v1918_v16  ;;  %v2015_v54 = vmul.f32 %v1970_v62, %v1919_v11  ;;  %v2060_v33 = vmul.f32 %v4119_v43, %v4119_v43  ;;  %v2061_v40 = vmul.f32 %v4121_v58, %v4121_v58  ;;  %v2038_v53 = vld [vmem:[%s4290_s6 + $0x78] sm:$0xff] }
 0x50b   :  { %v4135_v57 = vadd.f32 %v2030_v31, %v2014_v12  ;;  %v4137_v1 = vadd.f32 %v2031_v13, %v2015_v54  ;;  %v2086_v61 = vsel %vm4408_vm10, %v2060_v33, 0.0  ;;  %v2089_v23 = vsel %vm4409_vm11, %v2061_v40, 0.0  ;;  %vm4423_vm10 = vmmov %vm4398_vm0 }
 0x50c   :  { %v1975_v29 = vpop.permute.xlu1 %1974  ;;  %2087 = vadd.xlane.f32.xlu0 %v2086_v61  ;;  %2090 = vadd.xlane.f32.xlu1 %v2089_v23  ;;  %v1980_v6 = vpop.permute.xlu0 %1979  ;;  %vm4424_vm11 = vmmov %vm4398_vm0 }
 0x50d   :  { %v2016_v63 = vmul.f32 %v1975_v29, %v1920_v9  ;;  %v2017_v47 = vmul.f32 %v1980_v6, %v1921_v44  ;;  %v2062_v18 = vmul.f32 %v4135_v57, %v4135_v57  ;;  %v2063_v59 = vmul.f32 %v4137_v1, %v4137_v1 }
 0x50f   :  { %v4151_v52 = vadd.f32 %v2032_v2, %v2016_v63  ;;  %v4153_v25 = vadd.f32 %v2033_v56, %v2017_v47  ;;  %v2092_v34 = vsel %vm4410_vm12, %v2062_v18, 0.0  ;;  %v2095_v39 = vsel %vm4411_vm13, %v2063_v59, 0.0  ;;  %vm4425_vm12 = vmmov %vm4398_vm0 }
 0x510   :  { %v1985_v19 = vpop.permute.xlu1 %1984  ;;  %2093 = vadd.xlane.f32.xlu0 %v2092_v34  ;;  %2096 = vadd.xlane.f32.xlu1 %v2095_v39  ;;  %v1990_v45 = vpop.permute.xlu0 %1989  ;;  %vm4426_vm13 = vmmov %vm4398_vm0 }
 0x511   :  { %v2018_v55 = vmul.f32 %v1985_v19, %v1922_v7  ;;  %v2019_v27 = vmul.f32 %v1990_v45, %v1923_v51  ;;  %v2064_v22 = vmul.f32 %v4151_v52, %v4151_v52  ;;  %v2065_v30 = vmul.f32 %v4153_v25, %v4153_v25 }
 0x513   :  { %v4167_v5 = vadd.f32 %v2034_v60, %v2018_v55  ;;  %v4169_v26 = vadd.f32 %v2035_v4, %v2019_v27  ;;  %v2098_v28 = vsel %vm4412_vm14, %v2064_v22, 0.0  ;;  %v2101_v46 = vsel %vm4413_vm15, %v2065_v30, 0.0  ;;  %vm4427_vm14 = vmmov %vm4398_vm0 }
 0x514   :  { %v1995_v24 = vpop.permute.xlu1 %1994  ;;  %2099 = vadd.xlane.f32.xlu0 %v2098_v28  ;;  %2102 = vadd.xlane.f32.xlu1 %v2101_v46  ;;  %v2000_v17 = vpop.permute.xlu0 %1999  ;;  %vm4428_vm15 = vmmov %vm4398_vm0 }
 0x515   :  { %v2020_v50 = vmul.f32 %v1995_v24, %v1924_v14  ;;  %v2021_v38 = vmul.f32 %v2000_v17, %v1925_v10  ;;  %v2066_v42 = vmul.f32 %v4167_v5, %v4167_v5  ;;  %v2067_v48 = vmul.f32 %v4169_v26, %v4169_v26 }
 0x517   :  { %v4183_v0 = vadd.f32 %v2036_v32, %v2020_v50  ;;  %v4185_v3 = vadd.f32 %v2037_v15, %v2021_v38  ;;  %v2104_v49 = vsel %vm4398_vm0, %v2066_v42, 0.0  ;;  %v2107_v31 = vsel %vm4414_vm2, %v2067_v48, 0.0  ;;  %vm4429_vm2 = vmmov %vm4398_vm0 }
 0x518   :  { %v2005_v16 = vpop.permute.xlu1 %2004  ;;  %2105 = vadd.xlane.f32.xlu0 %v2104_v49  ;;  %2108 = vadd.xlane.f32.xlu1 %v2107_v31 }
 0x519   :  { %v2022_v41 = vmul.f32 %v2005_v16, %v1926_v8  ;;  %v2068_v11 = vmul.f32 %v4183_v0, %v4183_v0  ;;  %v2069_v13 = vmul.f32 %v4185_v3, %v4185_v3 }
 0x51b   :  { %v4196_v62 = vadd.f32 %v2038_v53, %v2022_v41  ;;  %v2110_v12 = vsel %vm4415_vm3, %v2068_v11, 0.0  ;;  %v2113_v54 = vsel %vm4416_vm6, %v2069_v13, 0.0  ;;  %vm4430_vm3 = vmmov %vm4398_vm0 }
 0x51c   :  { %2111 = vadd.xlane.f32.xlu0 %v2110_v12  ;;  %2114 = vadd.xlane.f32.xlu1 %v2113_v54  ;;  %vm4431_vm6 = vmmov %vm4398_vm0 }
 0x51d   :  { %v2070_v33 = vmul.f32 %v4196_v62, %v4196_v62 }
 0x51f   :  { %v2116_v40 = vsel %vm4417_vm1, %v2070_v33, 0.0  ;;  %vm4432_vm1 = vmmov %vm4398_vm0 }
 0x520   :  { %2117 = vadd.xlane.f32.xlu0 %v2116_v40 }
 0x588   :  { %v2076_v2 = vpop.xlane.xlu1 %2075 }
 0x589   :  { %v2120_v61 = vmax.f32 %v2076_v2, 1e-24  ;;  %v2073_v23 = vpop.xlane.xlu0 %2072 }
 0x58a   :  { %v2119_v9 = vmax.f32 %v2073_v23, 1e-24 }
 0x58b   :  { %2736 = vrsqrt.f32 %v2120_v61 }
 0x58c   :  { %2738 = vrsqrt.f32 %v2119_v9 }
 0x58d   :  { %v2079_v29 = vpop.xlane.xlu0 %2078 }
 0x58e   :  { %v2121_v44 = vmax.f32 %v2079_v29, 1e-24 }
 0x590   :  { %2740 = vrsqrt.f32 %v2121_v44 }
 0x591   :  { %v2085_v56 = vpop.xlane.xlu1 %2084  ;;  %v2082_v6 = vpop.xlane.xlu0 %2081 }
 0x592   :  { %v2123_v63 = vmax.f32 %v2085_v56, 1e-24  ;;  %v2122_v47 = vmax.f32 %v2082_v6, 1e-24 }
 0x594   :  { %2742 = vrsqrt.f32 %v2123_v63 }
 0x595   :  { %2744 = vrsqrt.f32 %v2122_v47  ;;  %v2091_v18 = vpop.xlane.xlu1 %2090  ;;  %v2088_v59 = vpop.xlane.xlu0 %2087 }
 0x596   :  { %v2125_v60 = vmax.f32 %v2091_v18, 1e-24  ;;  %v2124_v34 = vmax.f32 %v2088_v59, 1e-24 }
 0x598   :  { %v2737_v39 = vpop.eup %2736  ;;  %2746 = vrsqrt.f32 %v2125_v60 }
 0x599   :  { %v2739_v7 = vpop.eup %2738  ;;  %v2152_v19 = vmul.f32 %v2737_v39, %v4081_v37  ;;  %2748 = vrsqrt.f32 %v2124_v34  ;;  %v2097_v51 = vpop.xlane.xlu1 %2096 }
 0x59a   :  { %v2094_v4 = vpop.xlane.xlu0 %2093  ;;  %v2151_v45 = vmul.f32 %v2739_v7, %v4083_v20  ;;  %v2127_v55 = vmax.f32 %v2097_v51, 1e-24 }
 0x59b   :  { %v2126_v27 = vmax.f32 %v2094_v4, 1e-24  ;;  %2168 = vst.msk [vmem:[%s4291_s8 + $0x8] sm:$0xff] %vm4418_vm4, %v2152_v19 }
 0x59c   :  { %2167 = vst.msk [vmem:[%s4291_s8] sm:$0xff] %vm4419_vm5, %v2151_v45  ;;  %2750 = vrsqrt.f32 %v2127_v55 }
 0x59d   :  { %v2741_v22 = vpop.eup %2740  ;;  %2752 = vrsqrt.f32 %v2126_v27  ;;  %v2103_v37 = vpop.xlane.xlu1 %2102 }
 0x59e   :  { %v2100_v30 = vpop.xlane.xlu0 %2099  ;;  %v2153_v32 = vmul.f32 %v2741_v22, %v4093_v36  ;;  %v2129_v20 = vmax.f32 %v2103_v37, 1e-24 }
 0x59f   :  { %v2128_v28 = vmax.f32 %v2100_v30, 1e-24 }
 0x5a0   :  { %2169 = vst.msk [vmem:[%s4291_s8 + $0x10] sm:$0xff] %vm4420_vm7, %v2153_v32  ;;  %2754 = vrsqrt.f32 %v2129_v20 }
 0x5a1   :  { %v2743_v46 = vpop.eup %2742  ;;  %2756 = vrsqrt.f32 %v2128_v28  ;;  %v2109_v14 = vpop.xlane.xlu1 %2108 }
 0x5a2   :  { %v2106_v24 = vpop.xlane.xlu0 %2105  ;;  %v2745_v10 = vpop.eup %2744  ;;  %v2155_v15 = vmul.f32 %v2743_v46, %v4106_v35  ;;  %v2131_v17 = vmax.f32 %v2109_v14, 1e-24 }
 0x5a3   :  { %v2130_v50 = vmax.f32 %v2106_v24, 1e-24  ;;  %v2154_v38 = vmul.f32 %v2745_v10, %v4104_v21 }
 0x5a4   :  { %2171 = vst.msk [vmem:[%s4291_s8 + $0x20] sm:$0xff] %vm4421_vm8, %v2155_v15  ;;  %2758 = vrsqrt.f32 %v2131_v17 }
 0x5a5   :  { %v2747_v36 = vpop.eup %2746  ;;  %2170 = vst.msk [vmem:[%s4291_s8 + $0x18] sm:$0xff] %vm4422_vm9, %v2154_v38  ;;  %2760 = vrsqrt.f32 %v2130_v50  ;;  %v2115_v42 = vpop.xlane.xlu1 %2114 }
 0x5a6   :  { %v2112_v48 = vpop.xlane.xlu0 %2111  ;;  %v2749_v35 = vpop.eup %2748  ;;  %v2157_v49 = vmul.f32 %v2747_v36, %v4121_v58  ;;  %v2133_v31 = vmax.f32 %v2115_v42, 1e-24 }
 0x5a7   :  { %v2132_v21 = vmax.f32 %v2112_v48, 1e-24  ;;  %v2156_v8 = vmul.f32 %v2749_v35, %v4119_v43 }
 0x5a8   :  { %2173 = vst.msk [vmem:[%s4291_s8 + $0x30] sm:$0xff] %vm4423_vm10, %v2157_v49  ;;  %2762 = vrsqrt.f32 %v2133_v31 }
 0x5a9   :  { %v2751_v53 = vpop.eup %2750  ;;  %2172 = vst.msk [vmem:[%s4291_s8 + $0x28] sm:$0xff] %vm4424_vm11, %v2156_v8  ;;  %2764 = vrsqrt.f32 %v2132_v21 }
 0x5aa   :  { %v2118_v16 = vpop.xlane.xlu0 %2117  ;;  %v2753_v41 = vpop.eup %2752  ;;  %v2159_v58 = vmul.f32 %v2751_v53, %v4137_v1 }
 0x5ab   :  { %v2134_v11 = vmax.f32 %v2118_v16, 1e-24  ;;  %v2158_v43 = vmul.f32 %v2753_v41, %v4135_v57 }
 0x5ac   :  { %2175 = vst.msk [vmem:[%s4291_s8 + $0x40] sm:$0xff] %vm4425_vm12, %v2159_v58 }
 0x5ad   :  { %2766 = vrsqrt.f32 %v2134_v11  ;;  %v2755_v13 = vpop.eup %2754  ;;  %2174 = vst.msk [vmem:[%s4291_s8 + $0x38] sm:$0xff] %vm4426_vm13, %v2158_v43 }
 0x5ae   :  { %v2757_v12 = vpop.eup %2756  ;;  %v2161_v54 = vmul.f32 %v2755_v13, %v4153_v25 }
 0x5af   :  { %v2160_v1 = vmul.f32 %v2757_v12, %v4151_v52 }
 0x5b0   :  { %2177 = vst.msk [vmem:[%s4291_s8 + $0x50] sm:$0xff] %vm4427_vm14, %v2161_v54 }
 0x5b1   :  { %v2759_v57 = vpop.eup %2758  ;;  %2176 = vst.msk [vmem:[%s4291_s8 + $0x48] sm:$0xff] %vm4428_vm15, %v2160_v1 }
 0x5b2   :  { %v2761_v33 = vpop.eup %2760  ;;  %v2163_v40 = vmul.f32 %v2759_v57, %v4169_v26 }
 0x5b3   :  { %v2162_v2 = vmul.f32 %v2761_v33, %v4167_v5 }
 0x5b4   :  { %2179 = vst.msk [vmem:[%s4291_s8 + $0x60] sm:$0xff] %vm4398_vm0, %v2163_v40 }
 0x5b5   :  { %v2763_v52 = vpop.eup %2762  ;;  %2178 = vst.msk [vmem:[%s4291_s8 + $0x58] sm:$0xff] %vm4429_vm2, %v2162_v2 }
 0x5b6   :  { %v2765_v25 = vpop.eup %2764  ;;  %v2165_v61 = vmul.f32 %v2763_v52, %v4185_v3 }
 0x5b7   :  { %v2164_v23 = vmul.f32 %v2765_v25, %v4183_v0 }
 0x5b8   :  { %2181 = vst.msk [vmem:[%s4291_s8 + $0x70] sm:$0xff] %vm4430_vm3, %v2165_v61 }
 0x5b9   :  { %2180 = vst.msk [vmem:[%s4291_s8 + $0x68] sm:$0xff] %vm4431_vm6, %v2164_v23 }
 0x5ba   :  { %v2767_v5 = vpop.eup %2766 }
 0x5bb   :  { %v2166_v26 = vmul.f32 %v2767_v5, %v4196_v62 }
 0x5bd   :  { %2182 = vst.msk [vmem:[%s4291_s8 + $0x78] sm:$0xff] %vm4432_vm1, %v2166_v26 }

</bundles_post_ra>
